<compile_context>
chip_gen: v7x
topology: tpu7x:2x2x1
jax: 0.10.0
libtpu: 0.0.40
codegen_flags: <defaults>
</compile_context>

<pallas_src>
import functools

import jax
import jax.numpy as jnp
from jax import lax
from jax.experimental import pallas as pl
from jax.experimental.pallas import tpu as pltpu


def _round_up(x, m):
    return (x + m - 1) // m * m


def attn_decoder_kernel(
    approx_recip,                                # static bool (partial-bound)
    flags_ref,                                   # SMEM (5,) int32 (scalar prefetch)
    enc_ref, yh_ref, yt_ref,                     # blocked VMEM inputs
    w1e_ref, b1_ref, w2_ref,                     # attention: hoisted enc proj / score row
    w1s_ref, wgs_ref, wy_ref, bg_ref,            # packed-state attn proj + fused gates
    wffs_ref, bff_ref,                           # packed-state fc_final
    out_ref,                                     # VMEM output (Bb, 6, F)
    state_ref,                                   # VMEM scratch (Bb, S): [h | c | ctx | 0]
):
    enc = enc_ref[...]                           # (Bb, T, E) f32
    Bb, T, E = enc.shape
    D4 = wgs_ref.shape[-1]                       # 4*D (a full 128-lane tile at D=32)
    D = D4 // 4
    S = state_ref.shape[-1]

    w1e = w1e_ref[...]                           # (E, E)   mxu dtype
    w1s = w1s_ref[...]                           # (S, E)   rows [0:D]=w1_h, [D:2D]=w1_c
    wgs = wgs_ref[...]                           # (S, 4D)  rows [0:D]=whh, [2D:2D+E]=wc
    wy = wy_ref[...]                             # (F, 4D)
    wffs = wffs_ref[...]                         # (S, F)   rows [0:D]=wff_h, [2D:2D+E]=wff_c
    b1 = b1_ref[...]                             # (1, 1, E) f32
    w2 = w2_ref[...]                             # (1, 1, E) f32
    bg = bg_ref[...]                             # (1, 4D)   f32
    bff = bff_ref[...]                           # (1, F)    f32
    mdt = w1e.dtype                              # MXU operand dtype (f32 or bf16)

    # Hoisted encoder projection (computed once; b1 folded in).
    enc_proj = (
        jnp.dot(enc.astype(mdt).reshape(Bb * T, E), w1e,
                preferred_element_type=jnp.float32).reshape(Bb, T, E)
        + b1
    )

    # Static lane mask selecting the tanh (g) block of the fused 4D-wide gates.
    lane = lax.broadcasted_iota(jnp.int32, (Bb, D4), 1)
    g_block = (lane >= 2 * D) & (lane < 3 * D)

    # Packed recurrent state [h | c | ctx | 0]: one lane-dense MXU operand.
    # Zero-init also clears padding lanes so the zero weight rows stay exact.
    state_ref[...] = jnp.zeros((Bb, S), jnp.float32)

    def attn_context():
        st = state_ref[...].astype(mdt)                                  # (Bb, S)
        pre = jnp.dot(st, w1s, preferred_element_type=jnp.float32)       # (Bb, E)
        z = jnp.tanh(enc_proj + pre[:, None, :])                         # (Bb, T, E)
        logit = jnp.sum(z * w2, axis=-1)                                 # (Bb, T)
        # |logit| <= ||w2||_1 (|tanh| <= 1): exp cannot overflow, so skip the
        # max subtraction and defer normalization to a single reciprocal.
        p = jnp.exp(logit)
        num = jnp.sum(p[:, :, None] * enc, axis=1)                       # (Bb, E)
        den = jnp.sum(p, axis=1, keepdims=True)                          # (Bb, 1)
        return num * pl.reciprocal(den, approx=approx_recip)

    def lstm_update(y, c):
        # state_ref holds [h_t | c_t | ctx_{t+1}] here; fc is folded into
        # wgs/wy on the host so y_tilde never materializes, and all four gates
        # come out of one 4D(=128)-lane matmul per input stream.
        st = state_ref[...].astype(mdt)
        gates = (jnp.dot(st, wgs, preferred_element_type=jnp.float32)
                 + jnp.dot(y.astype(mdt), wy, preferred_element_type=jnp.float32)
                 + bg)                                                   # (Bb, 4D)
        act = jnp.where(g_block, jnp.tanh(gates), jax.nn.sigmoid(gates))
        i = act[:, 0 * D:1 * D]
        f = act[:, 1 * D:2 * D]
        g = act[:, 2 * D:3 * D]
        o = act[:, 3 * D:4 * D]
        c_new = f * c + i * g
        h_new = o * jnp.tanh(c_new)
        return h_new, c_new

    def predict():
        st = state_ref[...].astype(mdt)
        return jnp.dot(st, wffs, preferred_element_type=jnp.float32) + bff   # (Bb, F)

    def step(y, c):
        ctx = attn_context()
        state_ref[:, 2 * D:2 * D + E] = ctx
        h_new, c_new = lstm_update(y, c)
        state_ref[:, 0:D] = h_new
        state_ref[:, D:2 * D] = c_new
        return c_new

    # Phase 1: T attention + LSTM steps driven by y_hists ((T, Bb, F) layout so
    # the dynamic step index is a documented first-axis ref index).
    def phase1_body(t, c):
        return step(yh_ref[t], c)

    c = lax.fori_loop(0, T, phase1_body, jnp.zeros((Bb, D), jnp.float32),
                      unroll=(T <= 8))

    # Phase 2: 6 autoregressive prediction steps, stored directly as produced.
    y_pred = predict()
    out_ref[:, 0, :] = y_pred
    for t in range(1, 6):
        y = jnp.where(flags_ref[t - 1] > 0, yt_ref[:, t - 1, :], y_pred)
        c = step(y, c)
        y_pred = predict()
        out_ref[:, t, :] = y_pred


def _prep_weights(params, E, D, F, mxu_dtype):
    """Exact host-side algebraic prep: split, fuse and zero-pad module weights."""
    w1 = params["w1"]                              # (2D+E, E)
    b1 = params["b1"].reshape(1, 1, E)
    w2 = params["w2"].reshape(1, 1, E)             # b2 dropped (softmax shift-invariant)

    S = max(_round_up(2 * D + E, 128), 128)        # packed-state lane width

    # Attention score pre-projection from packed state [h | c | ctx | 0].
    w1s = jnp.zeros((S, E), jnp.float32)
    w1s = w1s.at[0:D].set(w1[0:D]).at[D:2 * D].set(w1[D:2 * D])
    w1e = w1[2 * D:]                               # (E, E) hoisted encoder projection

    # fc folded into the LSTM input matmul; gates kept 4D-wide (lane dense).
    w_fused = params["wfc"] @ params["wih"]                                   # (E+F, 4D)
    b_gate = params["bfc"] @ params["wih"] + params["bih"] + params["bhh"]    # (1, 4D)
    wgs = jnp.zeros((S, 4 * D), jnp.float32)
    wgs = wgs.at[0:D].set(params["whh"]).at[2 * D:2 * D + E].set(w_fused[:E])
    wy = w_fused[E:]                                                          # (F, 4D)

    # fc_final from packed state.
    wff = params["wff"]                            # (D+E, F)
    wffs = jnp.zeros((S, F), jnp.float32)
    wffs = wffs.at[0:D].set(wff[:D]).at[2 * D:2 * D + E].set(wff[D:])
    bff = params["bff"]

    cast = lambda a: a.astype(mxu_dtype)
    weights = (cast(w1e), b1, w2, cast(w1s), cast(wgs), cast(wy), b_gate,
               cast(wffs), bff)
    return weights, S


def _num_batch_blocks(batch):
    """Split across the two v7x TensorCores only when each core keeps >= 8
    batch rows (full sublane occupancy); at small B the kernel is serial
    latency-bound and splitting only adds grid overhead."""
    if batch < 16 or batch % 2 != 0:
        return 1
    try:
        dev = jax.devices()[0]
        cores = getattr(dev, "num_cores", None)
        if isinstance(cores, int) and cores >= 2:
            return 2
        if "v7" in dev.device_kind.lower():
            return 2
    except Exception:
        pass
    return 1


def attn_decoder(params, input_encoded, y_hists, y_targs, tf_flags, *, use_bf16=True):
    B, T, E = input_encoded.shape
    D = params["whh"].shape[0]
    F = params["wfc"].shape[1]

    mxu_dtype = jnp.bfloat16 if use_bf16 else jnp.float32
    weights, S = _prep_weights(params, E, D, F, mxu_dtype)

    # (T, B, F) layout so the in-kernel recurrence uses a first-axis index.
    yh_t = jnp.transpose(y_hists, (1, 0, 2))

    nb = _num_batch_blocks(B)
    bb = B // nb

    vmem = pl.BlockSpec(memory_space=pltpu.MemorySpace.VMEM)
    grid_spec = pltpu.PrefetchScalarGridSpec(
        num_scalar_prefetch=1,
        grid=(nb,),
        in_specs=[
            pl.BlockSpec((bb, T, E), lambda i, flags: (i, 0, 0)),
            pl.BlockSpec((T, bb, F), lambda i, flags: (0, i, 0)),
            pl.BlockSpec((bb, 5, F), lambda i, flags: (i, 0, 0)),
        ] + [vmem] * 9,
        out_specs=pl.BlockSpec((bb, 6, F), lambda i, flags: (i, 0, 0)),
        scratch_shapes=[pltpu.VMEM((bb, S), jnp.float32)],
    )

    # Approx (EUP) reciprocal only on the bf16 fast path, where its error is
    # dwarfed by bf16 operand rounding; the f32 path stays tight vs reference.
    kernel = functools.partial(attn_decoder_kernel, bool(use_bf16))

    # CORE_PARALLEL only when the grid axis is really split across TensorCores.
    dim_sem = (pltpu.CORE_PARALLEL,) if nb > 1 else ("arbitrary",)

    # VMEM footprint is KBs at these dims.  If T/E/B scale, budget explicitly
    # (vmem_limit_bytes) against v7x's 64 MiB (vs 128 MiB on v5e/v6e); enc_proj
    # doubles the largest resident buffer and can be chunked over T if needed.
    return pl.pallas_call(
        kernel,
        out_shape=jax.ShapeDtypeStruct((B, 6, F), jnp.float32),
        grid_spec=grid_spec,
        compiler_params=pltpu.CompilerParams(dimension_semantics=dim_sem),
    )(tf_flags, input_encoded, yh_t, y_targs, *weights)


def reference_jax(params, enc, yh, yt, flags):
    """Pure-JAX mirror of the original (un-fused) module math."""
    B, T, E = enc.shape
    D = params["whh"].shape[0]

    def attn_context(h, c):
        hb = jnp.broadcast_to(h[:, None, :], (B, T, D))
        cb = jnp.broadcast_to(c[:, None, :], (B, T, D))
        x = jnp.concatenate([hb, cb, enc], axis=2).reshape(B * T, -1)
        z = jnp.tanh(x @ params["w1"] + params["b1"])
        logit = (z @ params["w2"] + params["b2"]).reshape(B, T)
        p = jax.nn.softmax(logit, axis=1)
        return jnp.sum(p[:, :, None] * enc, axis=1)

    def lstm_step(x, h, c):
        g = x @ params["wih"] + params["bih"] + h @ params["whh"] + params["bhh"]
        i, f, gg, o = (jax.nn.sigmoid(g[:, :D]), jax.nn.sigmoid(g[:, D:2 * D]),
                       jnp.tanh(g[:, 2 * D:3 * D]), jax.nn.sigmoid(g[:, 3 * D:]))
        c_new = f * c + i * gg
        return o * jnp.tanh(c_new), c_new

    h = jnp.zeros((B, D), jnp.float32)
    c = jnp.zeros((B, D), jnp.float32)
    ctx = jnp.zeros((B, E), jnp.float32)
    for t in range(T):
        ctx = attn_context(h, c)
        y_tilde = jnp.concatenate([ctx, yh[:, t, :]], 1) @ params["wfc"] + params["bfc"]
        h, c = lstm_step(y_tilde, h, c)
    y_pred = jnp.concatenate([h, ctx], 1) @ params["wff"] + params["bff"]
    preds = [y_pred]
    for t in range(1, 6):
        ctx = attn_context(h, c)
        y = jnp.where(flags[t - 1] > 0, yt[:, t - 1, :], preds[t - 1])
        y_tilde = jnp.concatenate([ctx, y], 1) @ params["wfc"] + params["bfc"]
        h, c = lstm_step(y_tilde, h, c)
        y_pred = jnp.concatenate([h, ctx], 1) @ params["wff"] + params["bff"]
        preds.append(y_pred)
    return jnp.stack(preds, axis=1)


def init_params(key, enc_h, dec_h, out_feats):
    """Deterministic synthetic parameters (shapes from AttnDecoder.__init__)."""
    ks = jax.random.split(key, 13)
    n = jax.random.normal

    def lin(kw, kb, fan_in, fan_out, scale=None):
        s = scale if scale is not None else 1.0 / jnp.sqrt(fan_in)
        w = n(kw, (fan_in, fan_out), jnp.float32) * s          # pre-transposed
        b = n(kb, (1, fan_out), jnp.float32) * s
        return w, b

    p = {}
    p["w1"], p["b1"] = lin(ks[0], ks[1], 2 * dec_h + enc_h, enc_h)
    p["w2"], p["b2"] = lin(ks[2], ks[3], enc_h, 1)
    p["wih"], p["bih"] = lin(ks[4], ks[5], out_feats, 4 * dec_h,
                             scale=1.0 / jnp.sqrt(dec_h))
    p["whh"], p["bhh"] = lin(ks[6], ks[7], dec_h, 4 * dec_h,
                             scale=1.0 / jnp.sqrt(dec_h))
    # fc.weight.data.normal_() -> standard normal weights
    p["wfc"], p["bfc"] = lin(ks[8], ks[9], enc_h + out_feats, out_feats, scale=1.0)
    p["wff"], p["bff"] = lin(ks[10], ks[11], dec_h + enc_h, out_feats)
    return p


if __name__ == "__main__":
    B, T, ENC, DEC, F = 2, 8, 32, 32, 11
    teacher_force = 0.5

    key = jax.random.PRNGKey(0)
    k_par, k_enc, k_yh, k_yt, k_tf = jax.random.split(key, 5)

    params = init_params(k_par, ENC, DEC, F)
    input_encoded = jax.random.normal(k_enc, (B, T, ENC), jnp.float32)
    y_hists = jax.random.normal(k_yh, (B, T, F), jnp.float32)
    y_targs = jax.random.normal(k_yt, (B, 5, F), jnp.float32)
    # TODO(synk): torch.rand(1) per-step teacher forcing is nondeterministic;
    # replaced with deterministic host-precomputed flags (same decision logic).
    tf_flags = (jax.random.uniform(k_tf, (5,)) < teacher_force).astype(jnp.int32)

    ref = reference_jax(params, input_encoded, y_hists, y_targs, tf_flags)

    # Exact path (f32 MXU operands): validates the restructured algebra tightly
    # (host-side weight fusion / zero-padded slabs only reassociate f32 sums).
    out_f32 = jax.block_until_ready(
        attn_decoder(params, input_encoded, y_hists, y_targs, tf_flags,
                     use_bf16=False))
    assert out_f32.shape == (B, 6, F)
    assert bool(jnp.allclose(out_f32, ref, atol=2e-3, rtol=2e-3)), "f32 mismatch"

    # Fast path (bf16 MXU operands, f32 accumulation): per the perf review,
    # expect ~1e-2-relative drift through the 13-step recurrence.
    out_bf16 = jax.block_until_ready(
        attn_decoder(params, input_encoded, y_hists, y_targs, tf_flags,
                     use_bf16=True))
    assert out_bf16.shape == (B, 6, F)
    assert bool(jnp.all(jnp.isfinite(out_bf16))), "bf16 path produced non-finite"
    assert bool(jnp.allclose(out_bf16, ref, atol=2e-1, rtol=2e-1)), "bf16 drift too large"

    print("KERNEL_OK")
</pallas_src>

<mosaic_0001>
module attributes {stable_mosaic.version = 11 : i64} {
  func.func @attn_decoder_kernel(%arg0: i32, %arg1: memref<5xi32, #tpu.memory_space<smem>>, %arg2: memref<2x8x32xf32, #tpu.memory_space<vmem>>, %arg3: memref<8x2x11xf32, #tpu.memory_space<vmem>>, %arg4: memref<2x5x11xf32, #tpu.memory_space<vmem>>, %arg5: memref<32x32xf32, #tpu.memory_space<vmem>>, %arg6: memref<1x1x32xf32, #tpu.memory_space<vmem>>, %arg7: memref<1x1x32xf32, #tpu.memory_space<vmem>>, %arg8: memref<128x32xf32, #tpu.memory_space<vmem>>, %arg9: memref<128x128xf32, #tpu.memory_space<vmem>>, %arg10: memref<11x128xf32, #tpu.memory_space<vmem>>, %arg11: memref<1x128xf32, #tpu.memory_space<vmem>>, %arg12: memref<128x11xf32, #tpu.memory_space<vmem>>, %arg13: memref<1x11xf32, #tpu.memory_space<vmem>>, %arg14: memref<2x6x11xf32, #tpu.memory_space<vmem>>, %arg15: memref<2x128xf32, #tpu.memory_space<vmem>>) attributes {dimension_semantics = [#tpu.dimension_semantics<arbitrary>], iteration_bounds = array<i64: 1>, scalar_prefetch = 1 : i64, scratch_operands = 1 : i64, tpu.core_type = #tpu.core_type<tc>, window_params = [{transform_indices = @transform_0, window_bounds = array<i64: 2, 8, 32>}, {transform_indices = @transform_1, window_bounds = array<i64: 8, 2, 11>}, {transform_indices = @transform_2, window_bounds = array<i64: 2, 5, 11>}, {pipeline_mode = #tpu.pipeline_mode<synchronous>, transform_indices = @transform_3, window_bounds = array<i64: 32, 32>}, {pipeline_mode = #tpu.pipeline_mode<synchronous>, transform_indices = @transform_4, window_bounds = array<i64: 1, 1, 32>}, {pipeline_mode = #tpu.pipeline_mode<synchronous>, transform_indices = @transform_5, window_bounds = array<i64: 1, 1, 32>}, {pipeline_mode = #tpu.pipeline_mode<synchronous>, transform_indices = @transform_6, window_bounds = array<i64: 128, 32>}, {pipeline_mode = #tpu.pipeline_mode<synchronous>, transform_indices = @transform_7, window_bounds = array<i64: 128, 128>}, {pipeline_mode = #tpu.pipeline_mode<synchronous>, transform_indices = @transform_8, window_bounds = array<i64: 11, 128>}, {pipeline_mode = #tpu.pipeline_mode<synchronous>, transform_indices = @transform_9, window_bounds = array<i64: 1, 128>}, {pipeline_mode = #tpu.pipeline_mode<synchronous>, transform_indices = @transform_10, window_bounds = array<i64: 128, 11>}, {pipeline_mode = #tpu.pipeline_mode<synchronous>, transform_indices = @transform_11, window_bounds = array<i64: 1, 11>}, {transform_indices = @transform_12, window_bounds = array<i64: 2, 6, 11>}]} {
    %c0 = arith.constant 0 : index
    %c0_0 = arith.constant 0 : index
    %c0_1 = arith.constant 0 : index
    %0 = vector.load %arg2[%c0, %c0_0, %c0_1] : memref<2x8x32xf32, #tpu.memory_space<vmem>>, vector<2x8x32xf32>
    %c0_2 = arith.constant 0 : index
    %c0_3 = arith.constant 0 : index
    %1 = vector.load %arg5[%c0_2, %c0_3] : memref<32x32xf32, #tpu.memory_space<vmem>>, vector<32x32xf32>
    %c0_4 = arith.constant 0 : index
    %c0_5 = arith.constant 0 : index
    %2 = vector.load %arg8[%c0_4, %c0_5] : memref<128x32xf32, #tpu.memory_space<vmem>>, vector<128x32xf32>
    %c0_6 = arith.constant 0 : index
    %c0_7 = arith.constant 0 : index
    %3 = vector.load %arg9[%c0_6, %c0_7] : memref<128x128xf32, #tpu.memory_space<vmem>>, vector<128x128xf32>
    %c0_8 = arith.constant 0 : index
    %c0_9 = arith.constant 0 : index
    %4 = vector.load %arg10[%c0_8, %c0_9] : memref<11x128xf32, #tpu.memory_space<vmem>>, vector<11x128xf32>
    %c0_10 = arith.constant 0 : index
    %c0_11 = arith.constant 0 : index
    %5 = vector.load %arg12[%c0_10, %c0_11] : memref<128x11xf32, #tpu.memory_space<vmem>>, vector<128x11xf32>
    %c0_12 = arith.constant 0 : index
    %c0_13 = arith.constant 0 : index
    %c0_14 = arith.constant 0 : index
    %6 = vector.load %arg6[%c0_12, %c0_13, %c0_14] : memref<1x1x32xf32, #tpu.memory_space<vmem>>, vector<1x1x32xf32>
    %c0_15 = arith.constant 0 : index
    %c0_16 = arith.constant 0 : index
    %c0_17 = arith.constant 0 : index
    %7 = vector.load %arg7[%c0_15, %c0_16, %c0_17] : memref<1x1x32xf32, #tpu.memory_space<vmem>>, vector<1x1x32xf32>
    %c0_18 = arith.constant 0 : index
    %c0_19 = arith.constant 0 : index
    %8 = vector.load %arg11[%c0_18, %c0_19] : memref<1x128xf32, #tpu.memory_space<vmem>>, vector<1x128xf32>
    %c0_20 = arith.constant 0 : index
    %c0_21 = arith.constant 0 : index
    %9 = vector.load %arg13[%c0_20, %c0_21] : memref<1x11xf32, #tpu.memory_space<vmem>>, vector<1x11xf32>
    %10 = vector.shape_cast %0 : vector<2x8x32xf32> to vector<16x32xf32>
    %cst = arith.constant dense<0.000000e+00> : vector<16x32xf32>
    %11 = tpu.matmul %10, %1, %cst {dimension_numbers = #tpu.dot_dimension_numbers<[1], [0], [0], [1], [0, 0, 1, 1], [], []>} : vector<16x32xf32>, vector<32x32xf32>, vector<16x32xf32> -> vector<16x32xf32>
    %12 = vector.shape_cast %11 : vector<16x32xf32> to vector<2x8x32xf32>
    %13 = vector.broadcast %6 : vector<1x1x32xf32> to vector<2x8x32xf32>
    %14 = arith.addf %12, %13 : vector<2x8x32xf32>
    %15 = tpu.iota {dimensions = array<i32: 1>} : vector<2x128xi32>
    %c64_i32 = arith.constant 64 : i32
    %16 = vector.broadcast %c64_i32 : i32 to vector<2x128xi32>
    %17 = arith.cmpi sge, %15, %16 : vector<2x128xi32>
    %c96_i32 = arith.constant 96 : i32
    %18 = vector.broadcast %c96_i32 : i32 to vector<2x128xi32>
    %19 = arith.cmpi slt, %15, %18 : vector<2x128xi32>
    %20 = arith.andi %17, %19 : vector<2x128xi1>
    %cst_22 = arith.constant 0.000000e+00 : f32
    %21 = vector.broadcast %cst_22 : f32 to vector<2x128xf32>
    %c0_23 = arith.constant 0 : index
    %c0_24 = arith.constant 0 : index
    %22 = vector.load %arg15[%c0_23, %c0_24] : memref<2x128xf32, #tpu.memory_space<vmem>>, vector<2x128xf32>
    tpu.vector_store %arg15[%c0_23, %c0_24], %21 {strides = array<i32>} : memref<2x128xf32, #tpu.memory_space<vmem>>, vector<2x128xf32>,
    %cst_25 = arith.constant 0.000000e+00 : f32
    %23 = vector.broadcast %cst_25 : f32 to vector<2x32xf32>
    %c0_i32 = arith.constant 0 : i32
    %24 = arith.index_cast %c0_i32 : i32 to index
    %c0_26 = arith.constant 0 : index
    %c0_27 = arith.constant 0 : index
    %25 = vector.load %arg3[%24, %c0_26, %c0_27] : memref<8x2x11xf32, #tpu.memory_space<vmem>>, vector<1x2x11xf32>
    %26 = vector.shape_cast %25 : vector<1x2x11xf32> to vector<2x11xf32>
    %c0_28 = arith.constant 0 : index
    %c0_29 = arith.constant 0 : index
    %27 = vector.load %arg15[%c0_28, %c0_29] : memref<2x128xf32, #tpu.memory_space<vmem>>, vector<2x128xf32>
    %cst_30 = arith.constant dense<0.000000e+00> : vector<2x32xf32>
    %28 = tpu.matmul %27, %2, %cst_30 {dimension_numbers = #tpu.dot_dimension_numbers<[1], [0], [0], [1], [0, 0, 1, 1], [], []>} : vector<2x128xf32>, vector<128x32xf32>, vector<2x32xf32> -> vector<2x32xf32>
    %29 = vector.shape_cast %28 : vector<2x32xf32> to vector<2x1x32xf32>
    %30 = vector.broadcast %29 : vector<2x1x32xf32> to vector<2x8x32xf32>
    %31 = arith.addf %14, %30 : vector<2x8x32xf32>
    %32 = math.tanh %31 : vector<2x8x32xf32>
    %33 = vector.broadcast %7 : vector<1x1x32xf32> to vector<2x8x32xf32>
    %34 = arith.mulf %32, %33 : vector<2x8x32xf32>
    %cst_31 = arith.constant dense<0.000000e+00> : vector<2x8xf32>
    %35 = vector.multi_reduction <add>, %34, %cst_31 [2] : vector<2x8x32xf32> to vector<2x8xf32>
    %36 = math.exp %35 : vector<2x8xf32>
    %37 = vector.shape_cast %36 : vector<2x8xf32> to vector<2x8x1xf32>
    %38 = vector.broadcast %37 : vector<2x8x1xf32> to vector<2x8x32xf32>
    %39 = arith.mulf %38, %0 : vector<2x8x32xf32>
    %cst_32 = arith.constant dense<0.000000e+00> : vector<2x32xf32>
    %40 = vector.multi_reduction <add>, %39, %cst_32 [1] : vector<2x8x32xf32> to vector<2x32xf32>
    %cst_33 = arith.constant dense<0.000000e+00> : vector<2xf32>
    %41 = vector.multi_reduction <add>, %36, %cst_33 [1] : vector<2x8xf32> to vector<2xf32>
    %42 = vector.shape_cast %41 : vector<2xf32> to vector<2x1xf32>
    %43 = tpu.reciprocal %42 : vector<2x1xf32> -> vector<2x1xf32>
    %44 = vector.broadcast %43 : vector<2x1xf32> to vector<2x32xf32>
    %45 = arith.mulf %40, %44 : vector<2x32xf32>
    %c0_34 = arith.constant 0 : index
    %c64 = arith.constant 64 : index
    %46 = vector.load %arg15[%c0_34, %c64] : memref<2x128xf32, #tpu.memory_space<vmem>>, vector<2x32xf32>
    tpu.vector_store %arg15[%c0_34, %c64], %45 {strides = array<i32>} : memref<2x128xf32, #tpu.memory_space<vmem>>, vector<2x32xf32>,
    %c0_35 = arith.constant 0 : index
    %c0_36 = arith.constant 0 : index
    %47 = vector.load %arg15[%c0_35, %c0_36] : memref<2x128xf32, #tpu.memory_space<vmem>>, vector<2x128xf32>
    %cst_37 = arith.constant dense<0.000000e+00> : vector<2x128xf32>
    %48 = tpu.matmul %47, %3, %cst_37 {dimension_numbers = #tpu.dot_dimension_numbers<[1], [0], [0], [1], [0, 0, 1, 1], [], []>} : vector<2x128xf32>, vector<128x128xf32>, vector<2x128xf32> -> vector<2x128xf32>
    %cst_38 = arith.constant dense<0.000000e+00> : vector<2x128xf32>
    %49 = tpu.matmul %26, %4, %cst_38 {dimension_numbers = #tpu.dot_dimension_numbers<[1], [0], [0], [1], [0, 0, 1, 1], [], []>} : vector<2x11xf32>, vector<11x128xf32>, vector<2x128xf32> -> vector<2x128xf32>
    %50 = arith.addf %48, %49 : vector<2x128xf32>
    %51 = vector.broadcast %8 : vector<1x128xf32> to vector<2x128xf32>
    %52 = arith.addf %50, %51 : vector<2x128xf32>
    %53 = math.tanh %52 : vector<2x128xf32>
    %54 = arith.negf %52 : vector<2x128xf32>
    %55 = math.exp %54 : vector<2x128xf32>
    %cst_39 = arith.constant 1.000000e+00 : f32
    %56 = vector.broadcast %cst_39 : f32 to vector<2x128xf32>
    %57 = arith.addf %56, %55 : vector<2x128xf32>
    %58 = arith.divf %56, %57 : vector<2x128xf32>
    %59 = arith.select %20, %53, %58 : vector<2x128xi1>, vector<2x128xf32>
    %60 = vector.extract_strided_slice %59 {offsets = [0, 0], sizes = [2, 32], strides = [1, 1]} : vector<2x128xf32> to vector<2x32xf32>
    %61 = vector.extract_strided_slice %59 {offsets = [0, 32], sizes = [2, 32], strides = [1, 1]} : vector<2x128xf32> to vector<2x32xf32>
    %62 = vector.extract_strided_slice %59 {offsets = [0, 64], sizes = [2, 32], strides = [1, 1]} : vector<2x128xf32> to vector<2x32xf32>
    %63 = vector.extract_strided_slice %59 {offsets = [0, 96], sizes = [2, 32], strides = [1, 1]} : vector<2x128xf32> to vector<2x32xf32>
    %64 = arith.mulf %61, %23 : vector<2x32xf32>
    %65 = arith.mulf %60, %62 : vector<2x32xf32>
    %66 = arith.addf %64, %65 : vector<2x32xf32>
    %67 = math.tanh %66 : vector<2x32xf32>
    %68 = arith.mulf %63, %67 : vector<2x32xf32>
    %c0_40 = arith.constant 0 : index
    %c0_41 = arith.constant 0 : index
    %69 = vector.load %arg15[%c0_40, %c0_41] : memref<2x128xf32, #tpu.memory_space<vmem>>, vector<2x32xf32>
    tpu.vector_store %arg15[%c0_40, %c0_41], %68 {strides = array<i32>} : memref<2x128xf32, #tpu.memory_space<vmem>>, vector<2x32xf32>,
    %c0_42 = arith.constant 0 : index
    %c32 = arith.constant 32 : index
    %70 = vector.load %arg15[%c0_42, %c32] : memref<2x128xf32, #tpu.memory_space<vmem>>, vector<2x32xf32>
    tpu.vector_store %arg15[%c0_42, %c32], %66 {strides = array<i32>} : memref<2x128xf32, #tpu.memory_space<vmem>>, vector<2x32xf32>,
    %c1_i32 = arith.constant 1 : i32
    %71 = arith.index_cast %c1_i32 : i32 to index
    %c0_43 = arith.constant 0 : index
    %c0_44 = arith.constant 0 : index
    %72 = vector.load %arg3[%71, %c0_43, %c0_44] : memref<8x2x11xf32, #tpu.memory_space<vmem>>, vector<1x2x11xf32>
    %73 = vector.shape_cast %72 : vector<1x2x11xf32> to vector<2x11xf32>
    %c0_45 = arith.constant 0 : index
    %c0_46 = arith.constant 0 : index
    %74 = vector.load %arg15[%c0_45, %c0_46] : memref<2x128xf32, #tpu.memory_space<vmem>>, vector<2x128xf32>
    %cst_47 = arith.constant dense<0.000000e+00> : vector<2x32xf32>
    %75 = tpu.matmul %74, %2, %cst_47 {dimension_numbers = #tpu.dot_dimension_numbers<[1], [0], [0], [1], [0, 0, 1, 1], [], []>} : vector<2x128xf32>, vector<128x32xf32>, vector<2x32xf32> -> vector<2x32xf32>
    %76 = vector.shape_cast %75 : vector<2x32xf32> to vector<2x1x32xf32>
    %77 = vector.broadcast %76 : vector<2x1x32xf32> to vector<2x8x32xf32>
    %78 = arith.addf %14, %77 : vector<2x8x32xf32>
    %79 = math.tanh %78 : vector<2x8x32xf32>
    %80 = vector.broadcast %7 : vector<1x1x32xf32> to vector<2x8x32xf32>
    %81 = arith.mulf %79, %80 : vector<2x8x32xf32>
    %cst_48 = arith.constant dense<0.000000e+00> : vector<2x8xf32>
    %82 = vector.multi_reduction <add>, %81, %cst_48 [2] : vector<2x8x32xf32> to vector<2x8xf32>
    %83 = math.exp %82 : vector<2x8xf32>
    %84 = vector.shape_cast %83 : vector<2x8xf32> to vector<2x8x1xf32>
    %85 = vector.broadcast %84 : vector<2x8x1xf32> to vector<2x8x32xf32>
    %86 = arith.mulf %85, %0 : vector<2x8x32xf32>
    %cst_49 = arith.constant dense<0.000000e+00> : vector<2x32xf32>
    %87 = vector.multi_reduction <add>, %86, %cst_49 [1] : vector<2x8x32xf32> to vector<2x32xf32>
    %cst_50 = arith.constant dense<0.000000e+00> : vector<2xf32>
    %88 = vector.multi_reduction <add>, %83, %cst_50 [1] : vector<2x8xf32> to vector<2xf32>
    %89 = vector.shape_cast %88 : vector<2xf32> to vector<2x1xf32>
    %90 = tpu.reciprocal %89 : vector<2x1xf32> -> vector<2x1xf32>
    %91 = vector.broadcast %90 : vector<2x1xf32> to vector<2x32xf32>
    %92 = arith.mulf %87, %91 : vector<2x32xf32>
    %c0_51 = arith.constant 0 : index
    %c64_52 = arith.constant 64 : index
    %93 = vector.load %arg15[%c0_51, %c64_52] : memref<2x128xf32, #tpu.memory_space<vmem>>, vector<2x32xf32>
    tpu.vector_store %arg15[%c0_51, %c64_52], %92 {strides = array<i32>} : memref<2x128xf32, #tpu.memory_space<vmem>>, vector<2x32xf32>,
    %c0_53 = arith.constant 0 : index
    %c0_54 = arith.constant 0 : index
    %94 = vector.load %arg15[%c0_53, %c0_54] : memref<2x128xf32, #tpu.memory_space<vmem>>, vector<2x128xf32>
    %cst_55 = arith.constant dense<0.000000e+00> : vector<2x128xf32>
    %95 = tpu.matmul %94, %3, %cst_55 {dimension_numbers = #tpu.dot_dimension_numbers<[1], [0], [0], [1], [0, 0, 1, 1], [], []>} : vector<2x128xf32>, vector<128x128xf32>, vector<2x128xf32> -> vector<2x128xf32>
    %cst_56 = arith.constant dense<0.000000e+00> : vector<2x128xf32>
    %96 = tpu.matmul %73, %4, %cst_56 {dimension_numbers = #tpu.dot_dimension_numbers<[1], [0], [0], [1], [0, 0, 1, 1], [], []>} : vector<2x11xf32>, vector<11x128xf32>, vector<2x128xf32> -> vector<2x128xf32>
    %97 = arith.addf %95, %96 : vector<2x128xf32>
    %98 = vector.broadcast %8 : vector<1x128xf32> to vector<2x128xf32>
    %99 = arith.addf %97, %98 : vector<2x128xf32>
    %100 = math.tanh %99 : vector<2x128xf32>
    %101 = arith.negf %99 : vector<2x128xf32>
    %102 = math.exp %101 : vector<2x128xf32>
    %cst_57 = arith.constant 1.000000e+00 : f32
    %103 = vector.broadcast %cst_57 : f32 to vector<2x128xf32>
    %104 = arith.addf %103, %102 : vector<2x128xf32>
    %105 = arith.divf %103, %104 : vector<2x128xf32>
    %106 = arith.select %20, %100, %105 : vector<2x128xi1>, vector<2x128xf32>
    %107 = vector.extract_strided_slice %106 {offsets = [0, 0], sizes = [2, 32], strides = [1, 1]} : vector<2x128xf32> to vector<2x32xf32>
    %108 = vector.extract_strided_slice %106 {offsets = [0, 32], sizes = [2, 32], strides = [1, 1]} : vector<2x128xf32> to vector<2x32xf32>
    %109 = vector.extract_strided_slice %106 {offsets = [0, 64], sizes = [2, 32], strides = [1, 1]} : vector<2x128xf32> to vector<2x32xf32>
    %110 = vector.extract_strided_slice %106 {offsets = [0, 96], sizes = [2, 32], strides = [1, 1]} : vector<2x128xf32> to vector<2x32xf32>
    %111 = arith.mulf %108, %66 : vector<2x32xf32>
    %112 = arith.mulf %107, %109 : vector<2x32xf32>
    %113 = arith.addf %111, %112 : vector<2x32xf32>
    %114 = math.tanh %113 : vector<2x32xf32>
    %115 = arith.mulf %110, %114 : vector<2x32xf32>
    %c0_58 = arith.constant 0 : index
    %c0_59 = arith.constant 0 : index
    %116 = vector.load %arg15[%c0_58, %c0_59] : memref<2x128xf32, #tpu.memory_space<vmem>>, vector<2x32xf32>
    tpu.vector_store %arg15[%c0_58, %c0_59], %115 {strides = array<i32>} : memref<2x128xf32, #tpu.memory_space<vmem>>, vector<2x32xf32>,
    %c0_60 = arith.constant 0 : index
    %c32_61 = arith.constant 32 : index
    %117 = vector.load %arg15[%c0_60, %c32_61] : memref<2x128xf32, #tpu.memory_space<vmem>>, vector<2x32xf32>
    tpu.vector_store %arg15[%c0_60, %c32_61], %113 {strides = array<i32>} : memref<2x128xf32, #tpu.memory_space<vmem>>, vector<2x32xf32>,
    %c2_i32 = arith.constant 2 : i32
    %118 = arith.index_cast %c2_i32 : i32 to index
    %c0_62 = arith.constant 0 : index
    %c0_63 = arith.constant 0 : index
    %119 = vector.load %arg3[%118, %c0_62, %c0_63] : memref<8x2x11xf32, #tpu.memory_space<vmem>>, vector<1x2x11xf32>
    %120 = vector.shape_cast %119 : vector<1x2x11xf32> to vector<2x11xf32>
    %c0_64 = arith.constant 0 : index
    %c0_65 = arith.constant 0 : index
    %121 = vector.load %arg15[%c0_64, %c0_65] : memref<2x128xf32, #tpu.memory_space<vmem>>, vector<2x128xf32>
    %cst_66 = arith.constant dense<0.000000e+00> : vector<2x32xf32>
    %122 = tpu.matmul %121, %2, %cst_66 {dimension_numbers = #tpu.dot_dimension_numbers<[1], [0], [0], [1], [0, 0, 1, 1], [], []>} : vector<2x128xf32>, vector<128x32xf32>, vector<2x32xf32> -> vector<2x32xf32>
    %123 = vector.shape_cast %122 : vector<2x32xf32> to vector<2x1x32xf32>
    %124 = vector.broadcast %123 : vector<2x1x32xf32> to vector<2x8x32xf32>
    %125 = arith.addf %14, %124 : vector<2x8x32xf32>
    %126 = math.tanh %125 : vector<2x8x32xf32>
    %127 = vector.broadcast %7 : vector<1x1x32xf32> to vector<2x8x32xf32>
    %128 = arith.mulf %126, %127 : vector<2x8x32xf32>
    %cst_67 = arith.constant dense<0.000000e+00> : vector<2x8xf32>
    %129 = vector.multi_reduction <add>, %128, %cst_67 [2] : vector<2x8x32xf32> to vector<2x8xf32>
    %130 = math.exp %129 : vector<2x8xf32>
    %131 = vector.shape_cast %130 : vector<2x8xf32> to vector<2x8x1xf32>
    %132 = vector.broadcast %131 : vector<2x8x1xf32> to vector<2x8x32xf32>
    %133 = arith.mulf %132, %0 : vector<2x8x32xf32>
    %cst_68 = arith.constant dense<0.000000e+00> : vector<2x32xf32>
    %134 = vector.multi_reduction <add>, %133, %cst_68 [1] : vector<2x8x32xf32> to vector<2x32xf32>
    %cst_69 = arith.constant dense<0.000000e+00> : vector<2xf32>
    %135 = vector.multi_reduction <add>, %130, %cst_69 [1] : vector<2x8xf32> to vector<2xf32>
    %136 = vector.shape_cast %135 : vector<2xf32> to vector<2x1xf32>
    %137 = tpu.reciprocal %136 : vector<2x1xf32> -> vector<2x1xf32>
    %138 = vector.broadcast %137 : vector<2x1xf32> to vector<2x32xf32>
    %139 = arith.mulf %134, %138 : vector<2x32xf32>
    %c0_70 = arith.constant 0 : index
    %c64_71 = arith.constant 64 : index
    %140 = vector.load %arg15[%c0_70, %c64_71] : memref<2x128xf32, #tpu.memory_space<vmem>>, vector<2x32xf32>
    tpu.vector_store %arg15[%c0_70, %c64_71], %139 {strides = array<i32>} : memref<2x128xf32, #tpu.memory_space<vmem>>, vector<2x32xf32>,
    %c0_72 = arith.constant 0 : index
    %c0_73 = arith.constant 0 : index
    %141 = vector.load %arg15[%c0_72, %c0_73] : memref<2x128xf32, #tpu.memory_space<vmem>>, vector<2x128xf32>
    %cst_74 = arith.constant dense<0.000000e+00> : vector<2x128xf32>
    %142 = tpu.matmul %141, %3, %cst_74 {dimension_numbers = #tpu.dot_dimension_numbers<[1], [0], [0], [1], [0, 0, 1, 1], [], []>} : vector<2x128xf32>, vector<128x128xf32>, vector<2x128xf32> -> vector<2x128xf32>
    %cst_75 = arith.constant dense<0.000000e+00> : vector<2x128xf32>
    %143 = tpu.matmul %120, %4, %cst_75 {dimension_numbers = #tpu.dot_dimension_numbers<[1], [0], [0], [1], [0, 0, 1, 1], [], []>} : vector<2x11xf32>, vector<11x128xf32>, vector<2x128xf32> -> vector<2x128xf32>
    %144 = arith.addf %142, %143 : vector<2x128xf32>
    %145 = vector.broadcast %8 : vector<1x128xf32> to vector<2x128xf32>
    %146 = arith.addf %144, %145 : vector<2x128xf32>
    %147 = math.tanh %146 : vector<2x128xf32>
    %148 = arith.negf %146 : vector<2x128xf32>
    %149 = math.exp %148 : vector<2x128xf32>
    %cst_76 = arith.constant 1.000000e+00 : f32
    %150 = vector.broadcast %cst_76 : f32 to vector<2x128xf32>
    %151 = arith.addf %150, %149 : vector<2x128xf32>
    %152 = arith.divf %150, %151 : vector<2x128xf32>
    %153 = arith.select %20, %147, %152 : vector<2x128xi1>, vector<2x128xf32>
    %154 = vector.extract_strided_slice %153 {offsets = [0, 0], sizes = [2, 32], strides = [1, 1]} : vector<2x128xf32> to vector<2x32xf32>
    %155 = vector.extract_strided_slice %153 {offsets = [0, 32], sizes = [2, 32], strides = [1, 1]} : vector<2x128xf32> to vector<2x32xf32>
    %156 = vector.extract_strided_slice %153 {offsets = [0, 64], sizes = [2, 32], strides = [1, 1]} : vector<2x128xf32> to vector<2x32xf32>
    %157 = vector.extract_strided_slice %153 {offsets = [0, 96], sizes = [2, 32], strides = [1, 1]} : vector<2x128xf32> to vector<2x32xf32>
    %158 = arith.mulf %155, %113 : vector<2x32xf32>
    %159 = arith.mulf %154, %156 : vector<2x32xf32>
    %160 = arith.addf %158, %159 : vector<2x32xf32>
    %161 = math.tanh %160 : vector<2x32xf32>
    %162 = arith.mulf %157, %161 : vector<2x32xf32>
    %c0_77 = arith.constant 0 : index
    %c0_78 = arith.constant 0 : index
    %163 = vector.load %arg15[%c0_77, %c0_78] : memref<2x128xf32, #tpu.memory_space<vmem>>, vector<2x32xf32>
    tpu.vector_store %arg15[%c0_77, %c0_78], %162 {strides = array<i32>} : memref<2x128xf32, #tpu.memory_space<vmem>>, vector<2x32xf32>,
    %c0_79 = arith.constant 0 : index
    %c32_80 = arith.constant 32 : index
    %164 = vector.load %arg15[%c0_79, %c32_80] : memref<2x128xf32, #tpu.memory_space<vmem>>, vector<2x32xf32>
    tpu.vector_store %arg15[%c0_79, %c32_80], %160 {strides = array<i32>} : memref<2x128xf32, #tpu.memory_space<vmem>>, vector<2x32xf32>,
    %c3_i32 = arith.constant 3 : i32
    %165 = arith.index_cast %c3_i32 : i32 to index
    %c0_81 = arith.constant 0 : index
    %c0_82 = arith.constant 0 : index
    %166 = vector.load %arg3[%165, %c0_81, %c0_82] : memref<8x2x11xf32, #tpu.memory_space<vmem>>, vector<1x2x11xf32>
    %167 = vector.shape_cast %166 : vector<1x2x11xf32> to vector<2x11xf32>
    %c0_83 = arith.constant 0 : index
    %c0_84 = arith.constant 0 : index
    %168 = vector.load %arg15[%c0_83, %c0_84] : memref<2x128xf32, #tpu.memory_space<vmem>>, vector<2x128xf32>
    %cst_85 = arith.constant dense<0.000000e+00> : vector<2x32xf32>
    %169 = tpu.matmul %168, %2, %cst_85 {dimension_numbers = #tpu.dot_dimension_numbers<[1], [0], [0], [1], [0, 0, 1, 1], [], []>} : vector<2x128xf32>, vector<128x32xf32>, vector<2x32xf32> -> vector<2x32xf32>
    %170 = vector.shape_cast %169 : vector<2x32xf32> to vector<2x1x32xf32>
    %171 = vector.broadcast %170 : vector<2x1x32xf32> to vector<2x8x32xf32>
    %172 = arith.addf %14, %171 : vector<2x8x32xf32>
    %173 = math.tanh %172 : vector<2x8x32xf32>
    %174 = vector.broadcast %7 : vector<1x1x32xf32> to vector<2x8x32xf32>
    %175 = arith.mulf %173, %174 : vector<2x8x32xf32>
    %cst_86 = arith.constant dense<0.000000e+00> : vector<2x8xf32>
    %176 = vector.multi_reduction <add>, %175, %cst_86 [2] : vector<2x8x32xf32> to vector<2x8xf32>
    %177 = math.exp %176 : vector<2x8xf32>
    %178 = vector.shape_cast %177 : vector<2x8xf32> to vector<2x8x1xf32>
    %179 = vector.broadcast %178 : vector<2x8x1xf32> to vector<2x8x32xf32>
    %180 = arith.mulf %179, %0 : vector<2x8x32xf32>
    %cst_87 = arith.constant dense<0.000000e+00> : vector<2x32xf32>
    %181 = vector.multi_reduction <add>, %180, %cst_87 [1] : vector<2x8x32xf32> to vector<2x32xf32>
    %cst_88 = arith.constant dense<0.000000e+00> : vector<2xf32>
    %182 = vector.multi_reduction <add>, %177, %cst_88 [1] : vector<2x8xf32> to vector<2xf32>
    %183 = vector.shape_cast %182 : vector<2xf32> to vector<2x1xf32>
    %184 = tpu.reciprocal %183 : vector<2x1xf32> -> vector<2x1xf32>
    %185 = vector.broadcast %184 : vector<2x1xf32> to vector<2x32xf32>
    %186 = arith.mulf %181, %185 : vector<2x32xf32>
    %c0_89 = arith.constant 0 : index
    %c64_90 = arith.constant 64 : index
    %187 = vector.load %arg15[%c0_89, %c64_90] : memref<2x128xf32, #tpu.memory_space<vmem>>, vector<2x32xf32>
    tpu.vector_store %arg15[%c0_89, %c64_90], %186 {strides = array<i32>} : memref<2x128xf32, #tpu.memory_space<vmem>>, vector<2x32xf32>,
    %c0_91 = arith.constant 0 : index
    %c0_92 = arith.constant 0 : index
    %188 = vector.load %arg15[%c0_91, %c0_92] : memref<2x128xf32, #tpu.memory_space<vmem>>, vector<2x128xf32>
    %cst_93 = arith.constant dense<0.000000e+00> : vector<2x128xf32>
    %189 = tpu.matmul %188, %3, %cst_93 {dimension_numbers = #tpu.dot_dimension_numbers<[1], [0], [0], [1], [0, 0, 1, 1], [], []>} : vector<2x128xf32>, vector<128x128xf32>, vector<2x128xf32> -> vector<2x128xf32>
    %cst_94 = arith.constant dense<0.000000e+00> : vector<2x128xf32>
    %190 = tpu.matmul %167, %4, %cst_94 {dimension_numbers = #tpu.dot_dimension_numbers<[1], [0], [0], [1], [0, 0, 1, 1], [], []>} : vector<2x11xf32>, vector<11x128xf32>, vector<2x128xf32> -> vector<2x128xf32>
    %191 = arith.addf %189, %190 : vector<2x128xf32>
    %192 = vector.broadcast %8 : vector<1x128xf32> to vector<2x128xf32>
    %193 = arith.addf %191, %192 : vector<2x128xf32>
    %194 = math.tanh %193 : vector<2x128xf32>
    %195 = arith.negf %193 : vector<2x128xf32>
    %196 = math.exp %195 : vector<2x128xf32>
    %cst_95 = arith.constant 1.000000e+00 : f32
    %197 = vector.broadcast %cst_95 : f32 to vector<2x128xf32>
    %198 = arith.addf %197, %196 : vector<2x128xf32>
    %199 = arith.divf %197, %198 : vector<2x128xf32>
    %200 = arith.select %20, %194, %199 : vector<2x128xi1>, vector<2x128xf32>
    %201 = vector.extract_strided_slice %200 {offsets = [0, 0], sizes = [2, 32], strides = [1, 1]} : vector<2x128xf32> to vector<2x32xf32>
    %202 = vector.extract_strided_slice %200 {offsets = [0, 32], sizes = [2, 32], strides = [1, 1]} : vector<2x128xf32> to vector<2x32xf32>
    %203 = vector.extract_strided_slice %200 {offsets = [0, 64], sizes = [2, 32], strides = [1, 1]} : vector<2x128xf32> to vector<2x32xf32>
    %204 = vector.extract_strided_slice %200 {offsets = [0, 96], sizes = [2, 32], strides = [1, 1]} : vector<2x128xf32> to vector<2x32xf32>
    %205 = arith.mulf %202, %160 : vector<2x32xf32>
    %206 = arith.mulf %201, %203 : vector<2x32xf32>
    %207 = arith.addf %205, %206 : vector<2x32xf32>
    %208 = math.tanh %207 : vector<2x32xf32>
    %209 = arith.mulf %204, %208 : vector<2x32xf32>
    %c0_96 = arith.constant 0 : index
    %c0_97 = arith.constant 0 : index
    %210 = vector.load %arg15[%c0_96, %c0_97] : memref<2x128xf32, #tpu.memory_space<vmem>>, vector<2x32xf32>
    tpu.vector_store %arg15[%c0_96, %c0_97], %209 {strides = array<i32>} : memref<2x128xf32, #tpu.memory_space<vmem>>, vector<2x32xf32>,
    %c0_98 = arith.constant 0 : index
    %c32_99 = arith.constant 32 : index
    %211 = vector.load %arg15[%c0_98, %c32_99] : memref<2x128xf32, #tpu.memory_space<vmem>>, vector<2x32xf32>
    tpu.vector_store %arg15[%c0_98, %c32_99], %207 {strides = array<i32>} : memref<2x128xf32, #tpu.memory_space<vmem>>, vector<2x32xf32>,
    %c4_i32 = arith.constant 4 : i32
    %212 = arith.index_cast %c4_i32 : i32 to index
    %c0_100 = arith.constant 0 : index
    %c0_101 = arith.constant 0 : index
    %213 = vector.load %arg3[%212, %c0_100, %c0_101] : memref<8x2x11xf32, #tpu.memory_space<vmem>>, vector<1x2x11xf32>
    %214 = vector.shape_cast %213 : vector<1x2x11xf32> to vector<2x11xf32>
    %c0_102 = arith.constant 0 : index
    %c0_103 = arith.constant 0 : index
    %215 = vector.load %arg15[%c0_102, %c0_103] : memref<2x128xf32, #tpu.memory_space<vmem>>, vector<2x128xf32>
    %cst_104 = arith.constant dense<0.000000e+00> : vector<2x32xf32>
    %216 = tpu.matmul %215, %2, %cst_104 {dimension_numbers = #tpu.dot_dimension_numbers<[1], [0], [0], [1], [0, 0, 1, 1], [], []>} : vector<2x128xf32>, vector<128x32xf32>, vector<2x32xf32> -> vector<2x32xf32>
    %217 = vector.shape_cast %216 : vector<2x32xf32> to vector<2x1x32xf32>
    %218 = vector.broadcast %217 : vector<2x1x32xf32> to vector<2x8x32xf32>
    %219 = arith.addf %14, %218 : vector<2x8x32xf32>
    %220 = math.tanh %219 : vector<2x8x32xf32>
    %221 = vector.broadcast %7 : vector<1x1x32xf32> to vector<2x8x32xf32>
    %222 = arith.mulf %220, %221 : vector<2x8x32xf32>
    %cst_105 = arith.constant dense<0.000000e+00> : vector<2x8xf32>
    %223 = vector.multi_reduction <add>, %222, %cst_105 [2] : vector<2x8x32xf32> to vector<2x8xf32>
    %224 = math.exp %223 : vector<2x8xf32>
    %225 = vector.shape_cast %224 : vector<2x8xf32> to vector<2x8x1xf32>
    %226 = vector.broadcast %225 : vector<2x8x1xf32> to vector<2x8x32xf32>
    %227 = arith.mulf %226, %0 : vector<2x8x32xf32>
    %cst_106 = arith.constant dense<0.000000e+00> : vector<2x32xf32>
    %228 = vector.multi_reduction <add>, %227, %cst_106 [1] : vector<2x8x32xf32> to vector<2x32xf32>
    %cst_107 = arith.constant dense<0.000000e+00> : vector<2xf32>
    %229 = vector.multi_reduction <add>, %224, %cst_107 [1] : vector<2x8xf32> to vector<2xf32>
    %230 = vector.shape_cast %229 : vector<2xf32> to vector<2x1xf32>
    %231 = tpu.reciprocal %230 : vector<2x1xf32> -> vector<2x1xf32>
    %232 = vector.broadcast %231 : vector<2x1xf32> to vector<2x32xf32>
    %233 = arith.mulf %228, %232 : vector<2x32xf32>
    %c0_108 = arith.constant 0 : index
    %c64_109 = arith.constant 64 : index
    %234 = vector.load %arg15[%c0_108, %c64_109] : memref<2x128xf32, #tpu.memory_space<vmem>>, vector<2x32xf32>
    tpu.vector_store %arg15[%c0_108, %c64_109], %233 {strides = array<i32>} : memref<2x128xf32, #tpu.memory_space<vmem>>, vector<2x32xf32>,
    %c0_110 = arith.constant 0 : index
    %c0_111 = arith.constant 0 : index
    %235 = vector.load %arg15[%c0_110, %c0_111] : memref<2x128xf32, #tpu.memory_space<vmem>>, vector<2x128xf32>
    %cst_112 = arith.constant dense<0.000000e+00> : vector<2x128xf32>
    %236 = tpu.matmul %235, %3, %cst_112 {dimension_numbers = #tpu.dot_dimension_numbers<[1], [0], [0], [1], [0, 0, 1, 1], [], []>} : vector<2x128xf32>, vector<128x128xf32>, vector<2x128xf32> -> vector<2x128xf32>
    %cst_113 = arith.constant dense<0.000000e+00> : vector<2x128xf32>
    %237 = tpu.matmul %214, %4, %cst_113 {dimension_numbers = #tpu.dot_dimension_numbers<[1], [0], [0], [1], [0, 0, 1, 1], [], []>} : vector<2x11xf32>, vector<11x128xf32>, vector<2x128xf32> -> vector<2x128xf32>
    %238 = arith.addf %236, %237 : vector<2x128xf32>
    %239 = vector.broadcast %8 : vector<1x128xf32> to vector<2x128xf32>
    %240 = arith.addf %238, %239 : vector<2x128xf32>
    %241 = math.tanh %240 : vector<2x128xf32>
    %242 = arith.negf %240 : vector<2x128xf32>
    %243 = math.exp %242 : vector<2x128xf32>
    %cst_114 = arith.constant 1.000000e+00 : f32
    %244 = vector.broadcast %cst_114 : f32 to vector<2x128xf32>
    %245 = arith.addf %244, %243 : vector<2x128xf32>
    %246 = arith.divf %244, %245 : vector<2x128xf32>
    %247 = arith.select %20, %241, %246 : vector<2x128xi1>, vector<2x128xf32>
    %248 = vector.extract_strided_slice %247 {offsets = [0, 0], sizes = [2, 32], strides = [1, 1]} : vector<2x128xf32> to vector<2x32xf32>
    %249 = vector.extract_strided_slice %247 {offsets = [0, 32], sizes = [2, 32], strides = [1, 1]} : vector<2x128xf32> to vector<2x32xf32>
    %250 = vector.extract_strided_slice %247 {offsets = [0, 64], sizes = [2, 32], strides = [1, 1]} : vector<2x128xf32> to vector<2x32xf32>
    %251 = vector.extract_strided_slice %247 {offsets = [0, 96], sizes = [2, 32], strides = [1, 1]} : vector<2x128xf32> to vector<2x32xf32>
    %252 = arith.mulf %249, %207 : vector<2x32xf32>
    %253 = arith.mulf %248, %250 : vector<2x32xf32>
    %254 = arith.addf %252, %253 : vector<2x32xf32>
    %255 = math.tanh %254 : vector<2x32xf32>
    %256 = arith.mulf %251, %255 : vector<2x32xf32>
    %c0_115 = arith.constant 0 : index
    %c0_116 = arith.constant 0 : index
    %257 = vector.load %arg15[%c0_115, %c0_116] : memref<2x128xf32, #tpu.memory_space<vmem>>, vector<2x32xf32>
    tpu.vector_store %arg15[%c0_115, %c0_116], %256 {strides = array<i32>} : memref<2x128xf32, #tpu.memory_space<vmem>>, vector<2x32xf32>,
    %c0_117 = arith.constant 0 : index
    %c32_118 = arith.constant 32 : index
    %258 = vector.load %arg15[%c0_117, %c32_118] : memref<2x128xf32, #tpu.memory_space<vmem>>, vector<2x32xf32>
    tpu.vector_store %arg15[%c0_117, %c32_118], %254 {strides = array<i32>} : memref<2x128xf32, #tpu.memory_space<vmem>>, vector<2x32xf32>,
    %c5_i32 = arith.constant 5 : i32
    %259 = arith.index_cast %c5_i32 : i32 to index
    %c0_119 = arith.constant 0 : index
    %c0_120 = arith.constant 0 : index
    %260 = vector.load %arg3[%259, %c0_119, %c0_120] : memref<8x2x11xf32, #tpu.memory_space<vmem>>, vector<1x2x11xf32>
    %261 = vector.shape_cast %260 : vector<1x2x11xf32> to vector<2x11xf32>
    %c0_121 = arith.constant 0 : index
    %c0_122 = arith.constant 0 : index
    %262 = vector.load %arg15[%c0_121, %c0_122] : memref<2x128xf32, #tpu.memory_space<vmem>>, vector<2x128xf32>
    %cst_123 = arith.constant dense<0.000000e+00> : vector<2x32xf32>
    %263 = tpu.matmul %262, %2, %cst_123 {dimension_numbers = #tpu.dot_dimension_numbers<[1], [0], [0], [1], [0, 0, 1, 1], [], []>} : vector<2x128xf32>, vector<128x32xf32>, vector<2x32xf32> -> vector<2x32xf32>
    %264 = vector.shape_cast %263 : vector<2x32xf32> to vector<2x1x32xf32>
    %265 = vector.broadcast %264 : vector<2x1x32xf32> to vector<2x8x32xf32>
    %266 = arith.addf %14, %265 : vector<2x8x32xf32>
    %267 = math.tanh %266 : vector<2x8x32xf32>
    %268 = vector.broadcast %7 : vector<1x1x32xf32> to vector<2x8x32xf32>
    %269 = arith.mulf %267, %268 : vector<2x8x32xf32>
    %cst_124 = arith.constant dense<0.000000e+00> : vector<2x8xf32>
    %270 = vector.multi_reduction <add>, %269, %cst_124 [2] : vector<2x8x32xf32> to vector<2x8xf32>
    %271 = math.exp %270 : vector<2x8xf32>
    %272 = vector.shape_cast %271 : vector<2x8xf32> to vector<2x8x1xf32>
    %273 = vector.broadcast %272 : vector<2x8x1xf32> to vector<2x8x32xf32>
    %274 = arith.mulf %273, %0 : vector<2x8x32xf32>
    %cst_125 = arith.constant dense<0.000000e+00> : vector<2x32xf32>
    %275 = vector.multi_reduction <add>, %274, %cst_125 [1] : vector<2x8x32xf32> to vector<2x32xf32>
    %cst_126 = arith.constant dense<0.000000e+00> : vector<2xf32>
    %276 = vector.multi_reduction <add>, %271, %cst_126 [1] : vector<2x8xf32> to vector<2xf32>
    %277 = vector.shape_cast %276 : vector<2xf32> to vector<2x1xf32>
    %278 = tpu.reciprocal %277 : vector<2x1xf32> -> vector<2x1xf32>
    %279 = vector.broadcast %278 : vector<2x1xf32> to vector<2x32xf32>
    %280 = arith.mulf %275, %279 : vector<2x32xf32>
    %c0_127 = arith.constant 0 : index
    %c64_128 = arith.constant 64 : index
    %281 = vector.load %arg15[%c0_127, %c64_128] : memref<2x128xf32, #tpu.memory_space<vmem>>, vector<2x32xf32>
    tpu.vector_store %arg15[%c0_127, %c64_128], %280 {strides = array<i32>} : memref<2x128xf32, #tpu.memory_space<vmem>>, vector<2x32xf32>,
    %c0_129 = arith.constant 0 : index
    %c0_130 = arith.constant 0 : index
    %282 = vector.load %arg15[%c0_129, %c0_130] : memref<2x128xf32, #tpu.memory_space<vmem>>, vector<2x128xf32>
    %cst_131 = arith.constant dense<0.000000e+00> : vector<2x128xf32>
    %283 = tpu.matmul %282, %3, %cst_131 {dimension_numbers = #tpu.dot_dimension_numbers<[1], [0], [0], [1], [0, 0, 1, 1], [], []>} : vector<2x128xf32>, vector<128x128xf32>, vector<2x128xf32> -> vector<2x128xf32>
    %cst_132 = arith.constant dense<0.000000e+00> : vector<2x128xf32>
    %284 = tpu.matmul %261, %4, %cst_132 {dimension_numbers = #tpu.dot_dimension_numbers<[1], [0], [0], [1], [0, 0, 1, 1], [], []>} : vector<2x11xf32>, vector<11x128xf32>, vector<2x128xf32> -> vector<2x128xf32>
    %285 = arith.addf %283, %284 : vector<2x128xf32>
    %286 = vector.broadcast %8 : vector<1x128xf32> to vector<2x128xf32>
    %287 = arith.addf %285, %286 : vector<2x128xf32>
    %288 = math.tanh %287 : vector<2x128xf32>
    %289 = arith.negf %287 : vector<2x128xf32>
    %290 = math.exp %289 : vector<2x128xf32>
    %cst_133 = arith.constant 1.000000e+00 : f32
    %291 = vector.broadcast %cst_133 : f32 to vector<2x128xf32>
    %292 = arith.addf %291, %290 : vector<2x128xf32>
    %293 = arith.divf %291, %292 : vector<2x128xf32>
    %294 = arith.select %20, %288, %293 : vector<2x128xi1>, vector<2x128xf32>
    %295 = vector.extract_strided_slice %294 {offsets = [0, 0], sizes = [2, 32], strides = [1, 1]} : vector<2x128xf32> to vector<2x32xf32>
    %296 = vector.extract_strided_slice %294 {offsets = [0, 32], sizes = [2, 32], strides = [1, 1]} : vector<2x128xf32> to vector<2x32xf32>
    %297 = vector.extract_strided_slice %294 {offsets = [0, 64], sizes = [2, 32], strides = [1, 1]} : vector<2x128xf32> to vector<2x32xf32>
    %298 = vector.extract_strided_slice %294 {offsets = [0, 96], sizes = [2, 32], strides = [1, 1]} : vector<2x128xf32> to vector<2x32xf32>
    %299 = arith.mulf %296, %254 : vector<2x32xf32>
    %300 = arith.mulf %295, %297 : vector<2x32xf32>
    %301 = arith.addf %299, %300 : vector<2x32xf32>
    %302 = math.tanh %301 : vector<2x32xf32>
    %303 = arith.mulf %298, %302 : vector<2x32xf32>
    %c0_134 = arith.constant 0 : index
    %c0_135 = arith.constant 0 : index
    %304 = vector.load %arg15[%c0_134, %c0_135] : memref<2x128xf32, #tpu.memory_space<vmem>>, vector<2x32xf32>
    tpu.vector_store %arg15[%c0_134, %c0_135], %303 {strides = array<i32>} : memref<2x128xf32, #tpu.memory_space<vmem>>, vector<2x32xf32>,
    %c0_136 = arith.constant 0 : index
    %c32_137 = arith.constant 32 : index
    %305 = vector.load %arg15[%c0_136, %c32_137] : memref<2x128xf32, #tpu.memory_space<vmem>>, vector<2x32xf32>
    tpu.vector_store %arg15[%c0_136, %c32_137], %301 {strides = array<i32>} : memref<2x128xf32, #tpu.memory_space<vmem>>, vector<2x32xf32>,
    %c6_i32 = arith.constant 6 : i32
    %306 = arith.index_cast %c6_i32 : i32 to index
    %c0_138 = arith.constant 0 : index
    %c0_139 = arith.constant 0 : index
    %307 = vector.load %arg3[%306, %c0_138, %c0_139] : memref<8x2x11xf32, #tpu.memory_space<vmem>>, vector<1x2x11xf32>
    %308 = vector.shape_cast %307 : vector<1x2x11xf32> to vector<2x11xf32>
    %c0_140 = arith.constant 0 : index
    %c0_141 = arith.constant 0 : index
    %309 = vector.load %arg15[%c0_140, %c0_141] : memref<2x128xf32, #tpu.memory_space<vmem>>, vector<2x128xf32>
    %cst_142 = arith.constant dense<0.000000e+00> : vector<2x32xf32>
    %310 = tpu.matmul %309, %2, %cst_142 {dimension_numbers = #tpu.dot_dimension_numbers<[1], [0], [0], [1], [0, 0, 1, 1], [], []>} : vector<2x128xf32>, vector<128x32xf32>, vector<2x32xf32> -> vector<2x32xf32>
    %311 = vector.shape_cast %310 : vector<2x32xf32> to vector<2x1x32xf32>
    %312 = vector.broadcast %311 : vector<2x1x32xf32> to vector<2x8x32xf32>
    %313 = arith.addf %14, %312 : vector<2x8x32xf32>
    %314 = math.tanh %313 : vector<2x8x32xf32>
    %315 = vector.broadcast %7 : vector<1x1x32xf32> to vector<2x8x32xf32>
    %316 = arith.mulf %314, %315 : vector<2x8x32xf32>
    %cst_143 = arith.constant dense<0.000000e+00> : vector<2x8xf32>
    %317 = vector.multi_reduction <add>, %316, %cst_143 [2] : vector<2x8x32xf32> to vector<2x8xf32>
    %318 = math.exp %317 : vector<2x8xf32>
    %319 = vector.shape_cast %318 : vector<2x8xf32> to vector<2x8x1xf32>
    %320 = vector.broadcast %319 : vector<2x8x1xf32> to vector<2x8x32xf32>
    %321 = arith.mulf %320, %0 : vector<2x8x32xf32>
    %cst_144 = arith.constant dense<0.000000e+00> : vector<2x32xf32>
    %322 = vector.multi_reduction <add>, %321, %cst_144 [1] : vector<2x8x32xf32> to vector<2x32xf32>
    %cst_145 = arith.constant dense<0.000000e+00> : vector<2xf32>
    %323 = vector.multi_reduction <add>, %318, %cst_145 [1] : vector<2x8xf32> to vector<2xf32>
    %324 = vector.shape_cast %323 : vector<2xf32> to vector<2x1xf32>
    %325 = tpu.reciprocal %324 : vector<2x1xf32> -> vector<2x1xf32>
    %326 = vector.broadcast %325 : vector<2x1xf32> to vector<2x32xf32>
    %327 = arith.mulf %322, %326 : vector<2x32xf32>
    %c0_146 = arith.constant 0 : index
    %c64_147 = arith.constant 64 : index
    %328 = vector.load %arg15[%c0_146, %c64_147] : memref<2x128xf32, #tpu.memory_space<vmem>>, vector<2x32xf32>
    tpu.vector_store %arg15[%c0_146, %c64_147], %327 {strides = array<i32>} : memref<2x128xf32, #tpu.memory_space<vmem>>, vector<2x32xf32>,
    %c0_148 = arith.constant 0 : index
    %c0_149 = arith.constant 0 : index
    %329 = vector.load %arg15[%c0_148, %c0_149] : memref<2x128xf32, #tpu.memory_space<vmem>>, vector<2x128xf32>
    %cst_150 = arith.constant dense<0.000000e+00> : vector<2x128xf32>
    %330 = tpu.matmul %329, %3, %cst_150 {dimension_numbers = #tpu.dot_dimension_numbers<[1], [0], [0], [1], [0, 0, 1, 1], [], []>} : vector<2x128xf32>, vector<128x128xf32>, vector<2x128xf32> -> vector<2x128xf32>
    %cst_151 = arith.constant dense<0.000000e+00> : vector<2x128xf32>
    %331 = tpu.matmul %308, %4, %cst_151 {dimension_numbers = #tpu.dot_dimension_numbers<[1], [0], [0], [1], [0, 0, 1, 1], [], []>} : vector<2x11xf32>, vector<11x128xf32>, vector<2x128xf32> -> vector<2x128xf32>
    %332 = arith.addf %330, %331 : vector<2x128xf32>
    %333 = vector.broadcast %8 : vector<1x128xf32> to vector<2x128xf32>
    %334 = arith.addf %332, %333 : vector<2x128xf32>
    %335 = math.tanh %334 : vector<2x128xf32>
    %336 = arith.negf %334 : vector<2x128xf32>
    %337 = math.exp %336 : vector<2x128xf32>
    %cst_152 = arith.constant 1.000000e+00 : f32
    %338 = vector.broadcast %cst_152 : f32 to vector<2x128xf32>
    %339 = arith.addf %338, %337 : vector<2x128xf32>
    %340 = arith.divf %338, %339 : vector<2x128xf32>
    %341 = arith.select %20, %335, %340 : vector<2x128xi1>, vector<2x128xf32>
    %342 = vector.extract_strided_slice %341 {offsets = [0, 0], sizes = [2, 32], strides = [1, 1]} : vector<2x128xf32> to vector<2x32xf32>
    %343 = vector.extract_strided_slice %341 {offsets = [0, 32], sizes = [2, 32], strides = [1, 1]} : vector<2x128xf32> to vector<2x32xf32>
    %344 = vector.extract_strided_slice %341 {offsets = [0, 64], sizes = [2, 32], strides = [1, 1]} : vector<2x128xf32> to vector<2x32xf32>
    %345 = vector.extract_strided_slice %341 {offsets = [0, 96], sizes = [2, 32], strides = [1, 1]} : vector<2x128xf32> to vector<2x32xf32>
    %346 = arith.mulf %343, %301 : vector<2x32xf32>
    %347 = arith.mulf %342, %344 : vector<2x32xf32>
    %348 = arith.addf %346, %347 : vector<2x32xf32>
    %349 = math.tanh %348 : vector<2x32xf32>
    %350 = arith.mulf %345, %349 : vector<2x32xf32>
    %c0_153 = arith.constant 0 : index
    %c0_154 = arith.constant 0 : index
    %351 = vector.load %arg15[%c0_153, %c0_154] : memref<2x128xf32, #tpu.memory_space<vmem>>, vector<2x32xf32>
    tpu.vector_store %arg15[%c0_153, %c0_154], %350 {strides = array<i32>} : memref<2x128xf32, #tpu.memory_space<vmem>>, vector<2x32xf32>,
    %c0_155 = arith.constant 0 : index
    %c32_156 = arith.constant 32 : index
    %352 = vector.load %arg15[%c0_155, %c32_156] : memref<2x128xf32, #tpu.memory_space<vmem>>, vector<2x32xf32>
    tpu.vector_store %arg15[%c0_155, %c32_156], %348 {strides = array<i32>} : memref<2x128xf32, #tpu.memory_space<vmem>>, vector<2x32xf32>,
    %c7_i32 = arith.constant 7 : i32
    %353 = arith.index_cast %c7_i32 : i32 to index
    %c0_157 = arith.constant 0 : index
    %c0_158 = arith.constant 0 : index
    %354 = vector.load %arg3[%353, %c0_157, %c0_158] : memref<8x2x11xf32, #tpu.memory_space<vmem>>, vector<1x2x11xf32>
    %355 = vector.shape_cast %354 : vector<1x2x11xf32> to vector<2x11xf32>
    %c0_159 = arith.constant 0 : index
    %c0_160 = arith.constant 0 : index
    %356 = vector.load %arg15[%c0_159, %c0_160] : memref<2x128xf32, #tpu.memory_space<vmem>>, vector<2x128xf32>
    %cst_161 = arith.constant dense<0.000000e+00> : vector<2x32xf32>
    %357 = tpu.matmul %356, %2, %cst_161 {dimension_numbers = #tpu.dot_dimension_numbers<[1], [0], [0], [1], [0, 0, 1, 1], [], []>} : vector<2x128xf32>, vector<128x32xf32>, vector<2x32xf32> -> vector<2x32xf32>
    %358 = vector.shape_cast %357 : vector<2x32xf32> to vector<2x1x32xf32>
    %359 = vector.broadcast %358 : vector<2x1x32xf32> to vector<2x8x32xf32>
    %360 = arith.addf %14, %359 : vector<2x8x32xf32>
    %361 = math.tanh %360 : vector<2x8x32xf32>
    %362 = vector.broadcast %7 : vector<1x1x32xf32> to vector<2x8x32xf32>
    %363 = arith.mulf %361, %362 : vector<2x8x32xf32>
    %cst_162 = arith.constant dense<0.000000e+00> : vector<2x8xf32>
    %364 = vector.multi_reduction <add>, %363, %cst_162 [2] : vector<2x8x32xf32> to vector<2x8xf32>
    %365 = math.exp %364 : vector<2x8xf32>
    %366 = vector.shape_cast %365 : vector<2x8xf32> to vector<2x8x1xf32>
    %367 = vector.broadcast %366 : vector<2x8x1xf32> to vector<2x8x32xf32>
    %368 = arith.mulf %367, %0 : vector<2x8x32xf32>
    %cst_163 = arith.constant dense<0.000000e+00> : vector<2x32xf32>
    %369 = vector.multi_reduction <add>, %368, %cst_163 [1] : vector<2x8x32xf32> to vector<2x32xf32>
    %cst_164 = arith.constant dense<0.000000e+00> : vector<2xf32>
    %370 = vector.multi_reduction <add>, %365, %cst_164 [1] : vector<2x8xf32> to vector<2xf32>
    %371 = vector.shape_cast %370 : vector<2xf32> to vector<2x1xf32>
    %372 = tpu.reciprocal %371 : vector<2x1xf32> -> vector<2x1xf32>
    %373 = vector.broadcast %372 : vector<2x1xf32> to vector<2x32xf32>
    %374 = arith.mulf %369, %373 : vector<2x32xf32>
    %c0_165 = arith.constant 0 : index
    %c64_166 = arith.constant 64 : index
    %375 = vector.load %arg15[%c0_165, %c64_166] : memref<2x128xf32, #tpu.memory_space<vmem>>, vector<2x32xf32>
    tpu.vector_store %arg15[%c0_165, %c64_166], %374 {strides = array<i32>} : memref<2x128xf32, #tpu.memory_space<vmem>>, vector<2x32xf32>,
    %c0_167 = arith.constant 0 : index
    %c0_168 = arith.constant 0 : index
    %376 = vector.load %arg15[%c0_167, %c0_168] : memref<2x128xf32, #tpu.memory_space<vmem>>, vector<2x128xf32>
    %cst_169 = arith.constant dense<0.000000e+00> : vector<2x128xf32>
    %377 = tpu.matmul %376, %3, %cst_169 {dimension_numbers = #tpu.dot_dimension_numbers<[1], [0], [0], [1], [0, 0, 1, 1], [], []>} : vector<2x128xf32>, vector<128x128xf32>, vector<2x128xf32> -> vector<2x128xf32>
    %cst_170 = arith.constant dense<0.000000e+00> : vector<2x128xf32>
    %378 = tpu.matmul %355, %4, %cst_170 {dimension_numbers = #tpu.dot_dimension_numbers<[1], [0], [0], [1], [0, 0, 1, 1], [], []>} : vector<2x11xf32>, vector<11x128xf32>, vector<2x128xf32> -> vector<2x128xf32>
    %379 = arith.addf %377, %378 : vector<2x128xf32>
    %380 = vector.broadcast %8 : vector<1x128xf32> to vector<2x128xf32>
    %381 = arith.addf %379, %380 : vector<2x128xf32>
    %382 = math.tanh %381 : vector<2x128xf32>
    %383 = arith.negf %381 : vector<2x128xf32>
    %384 = math.exp %383 : vector<2x128xf32>
    %cst_171 = arith.constant 1.000000e+00 : f32
    %385 = vector.broadcast %cst_171 : f32 to vector<2x128xf32>
    %386 = arith.addf %385, %384 : vector<2x128xf32>
    %387 = arith.divf %385, %386 : vector<2x128xf32>
    %388 = arith.select %20, %382, %387 : vector<2x128xi1>, vector<2x128xf32>
    %389 = vector.extract_strided_slice %388 {offsets = [0, 0], sizes = [2, 32], strides = [1, 1]} : vector<2x128xf32> to vector<2x32xf32>
    %390 = vector.extract_strided_slice %388 {offsets = [0, 32], sizes = [2, 32], strides = [1, 1]} : vector<2x128xf32> to vector<2x32xf32>
    %391 = vector.extract_strided_slice %388 {offsets = [0, 64], sizes = [2, 32], strides = [1, 1]} : vector<2x128xf32> to vector<2x32xf32>
    %392 = vector.extract_strided_slice %388 {offsets = [0, 96], sizes = [2, 32], strides = [1, 1]} : vector<2x128xf32> to vector<2x32xf32>
    %393 = arith.mulf %390, %348 : vector<2x32xf32>
    %394 = arith.mulf %389, %391 : vector<2x32xf32>
    %395 = arith.addf %393, %394 : vector<2x32xf32>
    %396 = math.tanh %395 : vector<2x32xf32>
    %397 = arith.mulf %392, %396 : vector<2x32xf32>
    %c0_172 = arith.constant 0 : index
    %c0_173 = arith.constant 0 : index
    %398 = vector.load %arg15[%c0_172, %c0_173] : memref<2x128xf32, #tpu.memory_space<vmem>>, vector<2x32xf32>
    tpu.vector_store %arg15[%c0_172, %c0_173], %397 {strides = array<i32>} : memref<2x128xf32, #tpu.memory_space<vmem>>, vector<2x32xf32>,
    %c0_174 = arith.constant 0 : index
    %c32_175 = arith.constant 32 : index
    %399 = vector.load %arg15[%c0_174, %c32_175] : memref<2x128xf32, #tpu.memory_space<vmem>>, vector<2x32xf32>
    tpu.vector_store %arg15[%c0_174, %c32_175], %395 {strides = array<i32>} : memref<2x128xf32, #tpu.memory_space<vmem>>, vector<2x32xf32>,
    %c8_i32 = arith.constant 8 : i32
    %c0_176 = arith.constant 0 : index
    %c0_177 = arith.constant 0 : index
    %400 = vector.load %arg15[%c0_176, %c0_177] : memref<2x128xf32, #tpu.memory_space<vmem>>, vector<2x128xf32>
    %cst_178 = arith.constant dense<0.000000e+00> : vector<2x11xf32>
    %401 = tpu.matmul %400, %5, %cst_178 {dimension_numbers = #tpu.dot_dimension_numbers<[1], [0], [0], [1], [0, 0, 1, 1], [], []>} : vector<2x128xf32>, vector<128x11xf32>, vector<2x11xf32> -> vector<2x11xf32>
    %402 = vector.broadcast %9 : vector<1x11xf32> to vector<2x11xf32>
    %403 = arith.addf %401, %402 : vector<2x11xf32>
    %c0_179 = arith.constant 0 : index
    %c0_180 = arith.constant 0 : index
    %c0_181 = arith.constant 0 : index
    %404 = vector.load %arg14[%c0_179, %c0_180, %c0_181] : memref<2x6x11xf32, #tpu.memory_space<vmem>>, vector<2x1x11xf32>
    %405 = vector.shape_cast %404 : vector<2x1x11xf32> to vector<2x11xf32>
    %406 = vector.shape_cast %403 : vector<2x11xf32> to vector<2x1x11xf32>
    tpu.vector_store %arg14[%c0_179, %c0_180, %c0_181], %406 {strides = array<i32>} : memref<2x6x11xf32, #tpu.memory_space<vmem>>, vector<2x1x11xf32>,
    %c0_182 = arith.constant 0 : index
    %407 = memref.load %arg1[%c0_182] : memref<5xi32, #tpu.memory_space<smem>>
    %c0_i32_183 = arith.constant 0 : i32
    %408 = arith.cmpi sgt, %407, %c0_i32_183 : i32
    %c0_184 = arith.constant 0 : index
    %c0_185 = arith.constant 0 : index
    %c0_186 = arith.constant 0 : index
    %409 = vector.load %arg4[%c0_184, %c0_185, %c0_186] : memref<2x5x11xf32, #tpu.memory_space<vmem>>, vector<2x1x11xf32>
    %410 = vector.shape_cast %409 : vector<2x1x11xf32> to vector<2x11xf32>
    %411 = arith.select %408, %410, %403 : vector<2x11xf32>
    %c0_187 = arith.constant 0 : index
    %c0_188 = arith.constant 0 : index
    %412 = vector.load %arg15[%c0_187, %c0_188] : memref<2x128xf32, #tpu.memory_space<vmem>>, vector<2x128xf32>
    %cst_189 = arith.constant dense<0.000000e+00> : vector<2x32xf32>
    %413 = tpu.matmul %412, %2, %cst_189 {dimension_numbers = #tpu.dot_dimension_numbers<[1], [0], [0], [1], [0, 0, 1, 1], [], []>} : vector<2x128xf32>, vector<128x32xf32>, vector<2x32xf32> -> vector<2x32xf32>
    %414 = vector.shape_cast %413 : vector<2x32xf32> to vector<2x1x32xf32>
    %415 = vector.broadcast %414 : vector<2x1x32xf32> to vector<2x8x32xf32>
    %416 = arith.addf %14, %415 : vector<2x8x32xf32>
    %417 = math.tanh %416 : vector<2x8x32xf32>
    %418 = vector.broadcast %7 : vector<1x1x32xf32> to vector<2x8x32xf32>
    %419 = arith.mulf %417, %418 : vector<2x8x32xf32>
    %cst_190 = arith.constant dense<0.000000e+00> : vector<2x8xf32>
    %420 = vector.multi_reduction <add>, %419, %cst_190 [2] : vector<2x8x32xf32> to vector<2x8xf32>
    %421 = math.exp %420 : vector<2x8xf32>
    %422 = vector.shape_cast %421 : vector<2x8xf32> to vector<2x8x1xf32>
    %423 = vector.broadcast %422 : vector<2x8x1xf32> to vector<2x8x32xf32>
    %424 = arith.mulf %423, %0 : vector<2x8x32xf32>
    %cst_191 = arith.constant dense<0.000000e+00> : vector<2x32xf32>
    %425 = vector.multi_reduction <add>, %424, %cst_191 [1] : vector<2x8x32xf32> to vector<2x32xf32>
    %cst_192 = arith.constant dense<0.000000e+00> : vector<2xf32>
    %426 = vector.multi_reduction <add>, %421, %cst_192 [1] : vector<2x8xf32> to vector<2xf32>
    %427 = vector.shape_cast %426 : vector<2xf32> to vector<2x1xf32>
    %428 = tpu.reciprocal %427 : vector<2x1xf32> -> vector<2x1xf32>
    %429 = vector.broadcast %428 : vector<2x1xf32> to vector<2x32xf32>
    %430 = arith.mulf %425, %429 : vector<2x32xf32>
    %c0_193 = arith.constant 0 : index
    %c64_194 = arith.constant 64 : index
    %431 = vector.load %arg15[%c0_193, %c64_194] : memref<2x128xf32, #tpu.memory_space<vmem>>, vector<2x32xf32>
    tpu.vector_store %arg15[%c0_193, %c64_194], %430 {strides = array<i32>} : memref<2x128xf32, #tpu.memory_space<vmem>>, vector<2x32xf32>,
    %c0_195 = arith.constant 0 : index
    %c0_196 = arith.constant 0 : index
    %432 = vector.load %arg15[%c0_195, %c0_196] : memref<2x128xf32, #tpu.memory_space<vmem>>, vector<2x128xf32>
    %cst_197 = arith.constant dense<0.000000e+00> : vector<2x128xf32>
    %433 = tpu.matmul %432, %3, %cst_197 {dimension_numbers = #tpu.dot_dimension_numbers<[1], [0], [0], [1], [0, 0, 1, 1], [], []>} : vector<2x128xf32>, vector<128x128xf32>, vector<2x128xf32> -> vector<2x128xf32>
    %cst_198 = arith.constant dense<0.000000e+00> : vector<2x128xf32>
    %434 = tpu.matmul %411, %4, %cst_198 {dimension_numbers = #tpu.dot_dimension_numbers<[1], [0], [0], [1], [0, 0, 1, 1], [], []>} : vector<2x11xf32>, vector<11x128xf32>, vector<2x128xf32> -> vector<2x128xf32>
    %435 = arith.addf %433, %434 : vector<2x128xf32>
    %436 = vector.broadcast %8 : vector<1x128xf32> to vector<2x128xf32>
    %437 = arith.addf %435, %436 : vector<2x128xf32>
    %438 = math.tanh %437 : vector<2x128xf32>
    %439 = arith.negf %437 : vector<2x128xf32>
    %440 = math.exp %439 : vector<2x128xf32>
    %cst_199 = arith.constant 1.000000e+00 : f32
    %441 = vector.broadcast %cst_199 : f32 to vector<2x128xf32>
    %442 = arith.addf %441, %440 : vector<2x128xf32>
    %443 = arith.divf %441, %442 : vector<2x128xf32>
    %444 = arith.select %20, %438, %443 : vector<2x128xi1>, vector<2x128xf32>
    %445 = vector.extract_strided_slice %444 {offsets = [0, 0], sizes = [2, 32], strides = [1, 1]} : vector<2x128xf32> to vector<2x32xf32>
    %446 = vector.extract_strided_slice %444 {offsets = [0, 32], sizes = [2, 32], strides = [1, 1]} : vector<2x128xf32> to vector<2x32xf32>
    %447 = vector.extract_strided_slice %444 {offsets = [0, 64], sizes = [2, 32], strides = [1, 1]} : vector<2x128xf32> to vector<2x32xf32>
    %448 = vector.extract_strided_slice %444 {offsets = [0, 96], sizes = [2, 32], strides = [1, 1]} : vector<2x128xf32> to vector<2x32xf32>
    %449 = arith.mulf %446, %395 : vector<2x32xf32>
    %450 = arith.mulf %445, %447 : vector<2x32xf32>
    %451 = arith.addf %449, %450 : vector<2x32xf32>
    %452 = math.tanh %451 : vector<2x32xf32>
    %453 = arith.mulf %448, %452 : vector<2x32xf32>
    %c0_200 = arith.constant 0 : index
    %c0_201 = arith.constant 0 : index
    %454 = vector.load %arg15[%c0_200, %c0_201] : memref<2x128xf32, #tpu.memory_space<vmem>>, vector<2x32xf32>
    tpu.vector_store %arg15[%c0_200, %c0_201], %453 {strides = array<i32>} : memref<2x128xf32, #tpu.memory_space<vmem>>, vector<2x32xf32>,
    %c0_202 = arith.constant 0 : index
    %c32_203 = arith.constant 32 : index
    %455 = vector.load %arg15[%c0_202, %c32_203] : memref<2x128xf32, #tpu.memory_space<vmem>>, vector<2x32xf32>
    tpu.vector_store %arg15[%c0_202, %c32_203], %451 {strides = array<i32>} : memref<2x128xf32, #tpu.memory_space<vmem>>, vector<2x32xf32>,
    %c0_204 = arith.constant 0 : index
    %c0_205 = arith.constant 0 : index
    %456 = vector.load %arg15[%c0_204, %c0_205] : memref<2x128xf32, #tpu.memory_space<vmem>>, vector<2x128xf32>
    %cst_206 = arith.constant dense<0.000000e+00> : vector<2x11xf32>
    %457 = tpu.matmul %456, %5, %cst_206 {dimension_numbers = #tpu.dot_dimension_numbers<[1], [0], [0], [1], [0, 0, 1, 1], [], []>} : vector<2x128xf32>, vector<128x11xf32>, vector<2x11xf32> -> vector<2x11xf32>
    %458 = vector.broadcast %9 : vector<1x11xf32> to vector<2x11xf32>
    %459 = arith.addf %457, %458 : vector<2x11xf32>
    %c0_207 = arith.constant 0 : index
    %c1 = arith.constant 1 : index
    %c0_208 = arith.constant 0 : index
    %460 = vector.load %arg14[%c0_207, %c1, %c0_208] : memref<2x6x11xf32, #tpu.memory_space<vmem>>, vector<2x1x11xf32>
    %461 = vector.shape_cast %460 : vector<2x1x11xf32> to vector<2x11xf32>
    %462 = vector.shape_cast %459 : vector<2x11xf32> to vector<2x1x11xf32>
    tpu.vector_store %arg14[%c0_207, %c1, %c0_208], %462 {strides = array<i32>} : memref<2x6x11xf32, #tpu.memory_space<vmem>>, vector<2x1x11xf32>,
    %c1_209 = arith.constant 1 : index
    %463 = memref.load %arg1[%c1_209] : memref<5xi32, #tpu.memory_space<smem>>
    %c0_i32_210 = arith.constant 0 : i32
    %464 = arith.cmpi sgt, %463, %c0_i32_210 : i32
    %c0_211 = arith.constant 0 : index
    %c1_212 = arith.constant 1 : index
    %c0_213 = arith.constant 0 : index
    %465 = vector.load %arg4[%c0_211, %c1_212, %c0_213] : memref<2x5x11xf32, #tpu.memory_space<vmem>>, vector<2x1x11xf32>
    %466 = vector.shape_cast %465 : vector<2x1x11xf32> to vector<2x11xf32>
    %467 = arith.select %464, %466, %459 : vector<2x11xf32>
    %c0_214 = arith.constant 0 : index
    %c0_215 = arith.constant 0 : index
    %468 = vector.load %arg15[%c0_214, %c0_215] : memref<2x128xf32, #tpu.memory_space<vmem>>, vector<2x128xf32>
    %cst_216 = arith.constant dense<0.000000e+00> : vector<2x32xf32>
    %469 = tpu.matmul %468, %2, %cst_216 {dimension_numbers = #tpu.dot_dimension_numbers<[1], [0], [0], [1], [0, 0, 1, 1], [], []>} : vector<2x128xf32>, vector<128x32xf32>, vector<2x32xf32> -> vector<2x32xf32>
    %470 = vector.shape_cast %469 : vector<2x32xf32> to vector<2x1x32xf32>
    %471 = vector.broadcast %470 : vector<2x1x32xf32> to vector<2x8x32xf32>
    %472 = arith.addf %14, %471 : vector<2x8x32xf32>
    %473 = math.tanh %472 : vector<2x8x32xf32>
    %474 = vector.broadcast %7 : vector<1x1x32xf32> to vector<2x8x32xf32>
    %475 = arith.mulf %473, %474 : vector<2x8x32xf32>
    %cst_217 = arith.constant dense<0.000000e+00> : vector<2x8xf32>
    %476 = vector.multi_reduction <add>, %475, %cst_217 [2] : vector<2x8x32xf32> to vector<2x8xf32>
    %477 = math.exp %476 : vector<2x8xf32>
    %478 = vector.shape_cast %477 : vector<2x8xf32> to vector<2x8x1xf32>
    %479 = vector.broadcast %478 : vector<2x8x1xf32> to vector<2x8x32xf32>
    %480 = arith.mulf %479, %0 : vector<2x8x32xf32>
    %cst_218 = arith.constant dense<0.000000e+00> : vector<2x32xf32>
    %481 = vector.multi_reduction <add>, %480, %cst_218 [1] : vector<2x8x32xf32> to vector<2x32xf32>
    %cst_219 = arith.constant dense<0.000000e+00> : vector<2xf32>
    %482 = vector.multi_reduction <add>, %477, %cst_219 [1] : vector<2x8xf32> to vector<2xf32>
    %483 = vector.shape_cast %482 : vector<2xf32> to vector<2x1xf32>
    %484 = tpu.reciprocal %483 : vector<2x1xf32> -> vector<2x1xf32>
    %485 = vector.broadcast %484 : vector<2x1xf32> to vector<2x32xf32>
    %486 = arith.mulf %481, %485 : vector<2x32xf32>
    %c0_220 = arith.constant 0 : index
    %c64_221 = arith.constant 64 : index
    %487 = vector.load %arg15[%c0_220, %c64_221] : memref<2x128xf32, #tpu.memory_space<vmem>>, vector<2x32xf32>
    tpu.vector_store %arg15[%c0_220, %c64_221], %486 {strides = array<i32>} : memref<2x128xf32, #tpu.memory_space<vmem>>, vector<2x32xf32>,
    %c0_222 = arith.constant 0 : index
    %c0_223 = arith.constant 0 : index
    %488 = vector.load %arg15[%c0_222, %c0_223] : memref<2x128xf32, #tpu.memory_space<vmem>>, vector<2x128xf32>
    %cst_224 = arith.constant dense<0.000000e+00> : vector<2x128xf32>
    %489 = tpu.matmul %488, %3, %cst_224 {dimension_numbers = #tpu.dot_dimension_numbers<[1], [0], [0], [1], [0, 0, 1, 1], [], []>} : vector<2x128xf32>, vector<128x128xf32>, vector<2x128xf32> -> vector<2x128xf32>
    %cst_225 = arith.constant dense<0.000000e+00> : vector<2x128xf32>
    %490 = tpu.matmul %467, %4, %cst_225 {dimension_numbers = #tpu.dot_dimension_numbers<[1], [0], [0], [1], [0, 0, 1, 1], [], []>} : vector<2x11xf32>, vector<11x128xf32>, vector<2x128xf32> -> vector<2x128xf32>
    %491 = arith.addf %489, %490 : vector<2x128xf32>
    %492 = vector.broadcast %8 : vector<1x128xf32> to vector<2x128xf32>
    %493 = arith.addf %491, %492 : vector<2x128xf32>
    %494 = math.tanh %493 : vector<2x128xf32>
    %495 = arith.negf %493 : vector<2x128xf32>
    %496 = math.exp %495 : vector<2x128xf32>
    %cst_226 = arith.constant 1.000000e+00 : f32
    %497 = vector.broadcast %cst_226 : f32 to vector<2x128xf32>
    %498 = arith.addf %497, %496 : vector<2x128xf32>
    %499 = arith.divf %497, %498 : vector<2x128xf32>
    %500 = arith.select %20, %494, %499 : vector<2x128xi1>, vector<2x128xf32>
    %501 = vector.extract_strided_slice %500 {offsets = [0, 0], sizes = [2, 32], strides = [1, 1]} : vector<2x128xf32> to vector<2x32xf32>
    %502 = vector.extract_strided_slice %500 {offsets = [0, 32], sizes = [2, 32], strides = [1, 1]} : vector<2x128xf32> to vector<2x32xf32>
    %503 = vector.extract_strided_slice %500 {offsets = [0, 64], sizes = [2, 32], strides = [1, 1]} : vector<2x128xf32> to vector<2x32xf32>
    %504 = vector.extract_strided_slice %500 {offsets = [0, 96], sizes = [2, 32], strides = [1, 1]} : vector<2x128xf32> to vector<2x32xf32>
    %505 = arith.mulf %502, %451 : vector<2x32xf32>
    %506 = arith.mulf %501, %503 : vector<2x32xf32>
    %507 = arith.addf %505, %506 : vector<2x32xf32>
    %508 = math.tanh %507 : vector<2x32xf32>
    %509 = arith.mulf %504, %508 : vector<2x32xf32>
    %c0_227 = arith.constant 0 : index
    %c0_228 = arith.constant 0 : index
    %510 = vector.load %arg15[%c0_227, %c0_228] : memref<2x128xf32, #tpu.memory_space<vmem>>, vector<2x32xf32>
    tpu.vector_store %arg15[%c0_227, %c0_228], %509 {strides = array<i32>} : memref<2x128xf32, #tpu.memory_space<vmem>>, vector<2x32xf32>,
    %c0_229 = arith.constant 0 : index
    %c32_230 = arith.constant 32 : index
    %511 = vector.load %arg15[%c0_229, %c32_230] : memref<2x128xf32, #tpu.memory_space<vmem>>, vector<2x32xf32>
    tpu.vector_store %arg15[%c0_229, %c32_230], %507 {strides = array<i32>} : memref<2x128xf32, #tpu.memory_space<vmem>>, vector<2x32xf32>,
    %c0_231 = arith.constant 0 : index
    %c0_232 = arith.constant 0 : index
    %512 = vector.load %arg15[%c0_231, %c0_232] : memref<2x128xf32, #tpu.memory_space<vmem>>, vector<2x128xf32>
    %cst_233 = arith.constant dense<0.000000e+00> : vector<2x11xf32>
    %513 = tpu.matmul %512, %5, %cst_233 {dimension_numbers = #tpu.dot_dimension_numbers<[1], [0], [0], [1], [0, 0, 1, 1], [], []>} : vector<2x128xf32>, vector<128x11xf32>, vector<2x11xf32> -> vector<2x11xf32>
    %514 = vector.broadcast %9 : vector<1x11xf32> to vector<2x11xf32>
    %515 = arith.addf %513, %514 : vector<2x11xf32>
    %c0_234 = arith.constant 0 : index
    %c2 = arith.constant 2 : index
    %c0_235 = arith.constant 0 : index
    %516 = vector.load %arg14[%c0_234, %c2, %c0_235] : memref<2x6x11xf32, #tpu.memory_space<vmem>>, vector<2x1x11xf32>
    %517 = vector.shape_cast %516 : vector<2x1x11xf32> to vector<2x11xf32>
    %518 = vector.shape_cast %515 : vector<2x11xf32> to vector<2x1x11xf32>
    tpu.vector_store %arg14[%c0_234, %c2, %c0_235], %518 {strides = array<i32>} : memref<2x6x11xf32, #tpu.memory_space<vmem>>, vector<2x1x11xf32>,
    %c2_236 = arith.constant 2 : index
    %519 = memref.load %arg1[%c2_236] : memref<5xi32, #tpu.memory_space<smem>>
    %c0_i32_237 = arith.constant 0 : i32
    %520 = arith.cmpi sgt, %519, %c0_i32_237 : i32
    %c0_238 = arith.constant 0 : index
    %c2_239 = arith.constant 2 : index
    %c0_240 = arith.constant 0 : index
    %521 = vector.load %arg4[%c0_238, %c2_239, %c0_240] : memref<2x5x11xf32, #tpu.memory_space<vmem>>, vector<2x1x11xf32>
    %522 = vector.shape_cast %521 : vector<2x1x11xf32> to vector<2x11xf32>
    %523 = arith.select %520, %522, %515 : vector<2x11xf32>
    %c0_241 = arith.constant 0 : index
    %c0_242 = arith.constant 0 : index
    %524 = vector.load %arg15[%c0_241, %c0_242] : memref<2x128xf32, #tpu.memory_space<vmem>>, vector<2x128xf32>
    %cst_243 = arith.constant dense<0.000000e+00> : vector<2x32xf32>
    %525 = tpu.matmul %524, %2, %cst_243 {dimension_numbers = #tpu.dot_dimension_numbers<[1], [0], [0], [1], [0, 0, 1, 1], [], []>} : vector<2x128xf32>, vector<128x32xf32>, vector<2x32xf32> -> vector<2x32xf32>
    %526 = vector.shape_cast %525 : vector<2x32xf32> to vector<2x1x32xf32>
    %527 = vector.broadcast %526 : vector<2x1x32xf32> to vector<2x8x32xf32>
    %528 = arith.addf %14, %527 : vector<2x8x32xf32>
    %529 = math.tanh %528 : vector<2x8x32xf32>
    %530 = vector.broadcast %7 : vector<1x1x32xf32> to vector<2x8x32xf32>
    %531 = arith.mulf %529, %530 : vector<2x8x32xf32>
    %cst_244 = arith.constant dense<0.000000e+00> : vector<2x8xf32>
    %532 = vector.multi_reduction <add>, %531, %cst_244 [2] : vector<2x8x32xf32> to vector<2x8xf32>
    %533 = math.exp %532 : vector<2x8xf32>
    %534 = vector.shape_cast %533 : vector<2x8xf32> to vector<2x8x1xf32>
    %535 = vector.broadcast %534 : vector<2x8x1xf32> to vector<2x8x32xf32>
    %536 = arith.mulf %535, %0 : vector<2x8x32xf32>
    %cst_245 = arith.constant dense<0.000000e+00> : vector<2x32xf32>
    %537 = vector.multi_reduction <add>, %536, %cst_245 [1] : vector<2x8x32xf32> to vector<2x32xf32>
    %cst_246 = arith.constant dense<0.000000e+00> : vector<2xf32>
    %538 = vector.multi_reduction <add>, %533, %cst_246 [1] : vector<2x8xf32> to vector<2xf32>
    %539 = vector.shape_cast %538 : vector<2xf32> to vector<2x1xf32>
    %540 = tpu.reciprocal %539 : vector<2x1xf32> -> vector<2x1xf32>
    %541 = vector.broadcast %540 : vector<2x1xf32> to vector<2x32xf32>
    %542 = arith.mulf %537, %541 : vector<2x32xf32>
    %c0_247 = arith.constant 0 : index
    %c64_248 = arith.constant 64 : index
    %543 = vector.load %arg15[%c0_247, %c64_248] : memref<2x128xf32, #tpu.memory_space<vmem>>, vector<2x32xf32>
    tpu.vector_store %arg15[%c0_247, %c64_248], %542 {strides = array<i32>} : memref<2x128xf32, #tpu.memory_space<vmem>>, vector<2x32xf32>,
    %c0_249 = arith.constant 0 : index
    %c0_250 = arith.constant 0 : index
    %544 = vector.load %arg15[%c0_249, %c0_250] : memref<2x128xf32, #tpu.memory_space<vmem>>, vector<2x128xf32>
    %cst_251 = arith.constant dense<0.000000e+00> : vector<2x128xf32>
    %545 = tpu.matmul %544, %3, %cst_251 {dimension_numbers = #tpu.dot_dimension_numbers<[1], [0], [0], [1], [0, 0, 1, 1], [], []>} : vector<2x128xf32>, vector<128x128xf32>, vector<2x128xf32> -> vector<2x128xf32>
    %cst_252 = arith.constant dense<0.000000e+00> : vector<2x128xf32>
    %546 = tpu.matmul %523, %4, %cst_252 {dimension_numbers = #tpu.dot_dimension_numbers<[1], [0], [0], [1], [0, 0, 1, 1], [], []>} : vector<2x11xf32>, vector<11x128xf32>, vector<2x128xf32> -> vector<2x128xf32>
    %547 = arith.addf %545, %546 : vector<2x128xf32>
    %548 = vector.broadcast %8 : vector<1x128xf32> to vector<2x128xf32>
    %549 = arith.addf %547, %548 : vector<2x128xf32>
    %550 = math.tanh %549 : vector<2x128xf32>
    %551 = arith.negf %549 : vector<2x128xf32>
    %552 = math.exp %551 : vector<2x128xf32>
    %cst_253 = arith.constant 1.000000e+00 : f32
    %553 = vector.broadcast %cst_253 : f32 to vector<2x128xf32>
    %554 = arith.addf %553, %552 : vector<2x128xf32>
    %555 = arith.divf %553, %554 : vector<2x128xf32>
    %556 = arith.select %20, %550, %555 : vector<2x128xi1>, vector<2x128xf32>
    %557 = vector.extract_strided_slice %556 {offsets = [0, 0], sizes = [2, 32], strides = [1, 1]} : vector<2x128xf32> to vector<2x32xf32>
    %558 = vector.extract_strided_slice %556 {offsets = [0, 32], sizes = [2, 32], strides = [1, 1]} : vector<2x128xf32> to vector<2x32xf32>
    %559 = vector.extract_strided_slice %556 {offsets = [0, 64], sizes = [2, 32], strides = [1, 1]} : vector<2x128xf32> to vector<2x32xf32>
    %560 = vector.extract_strided_slice %556 {offsets = [0, 96], sizes = [2, 32], strides = [1, 1]} : vector<2x128xf32> to vector<2x32xf32>
    %561 = arith.mulf %558, %507 : vector<2x32xf32>
    %562 = arith.mulf %557, %559 : vector<2x32xf32>
    %563 = arith.addf %561, %562 : vector<2x32xf32>
    %564 = math.tanh %563 : vector<2x32xf32>
    %565 = arith.mulf %560, %564 : vector<2x32xf32>
    %c0_254 = arith.constant 0 : index
    %c0_255 = arith.constant 0 : index
    %566 = vector.load %arg15[%c0_254, %c0_255] : memref<2x128xf32, #tpu.memory_space<vmem>>, vector<2x32xf32>
    tpu.vector_store %arg15[%c0_254, %c0_255], %565 {strides = array<i32>} : memref<2x128xf32, #tpu.memory_space<vmem>>, vector<2x32xf32>,
    %c0_256 = arith.constant 0 : index
    %c32_257 = arith.constant 32 : index
    %567 = vector.load %arg15[%c0_256, %c32_257] : memref<2x128xf32, #tpu.memory_space<vmem>>, vector<2x32xf32>
    tpu.vector_store %arg15[%c0_256, %c32_257], %563 {strides = array<i32>} : memref<2x128xf32, #tpu.memory_space<vmem>>, vector<2x32xf32>,
    %c0_258 = arith.constant 0 : index
    %c0_259 = arith.constant 0 : index
    %568 = vector.load %arg15[%c0_258, %c0_259] : memref<2x128xf32, #tpu.memory_space<vmem>>, vector<2x128xf32>
    %cst_260 = arith.constant dense<0.000000e+00> : vector<2x11xf32>
    %569 = tpu.matmul %568, %5, %cst_260 {dimension_numbers = #tpu.dot_dimension_numbers<[1], [0], [0], [1], [0, 0, 1, 1], [], []>} : vector<2x128xf32>, vector<128x11xf32>, vector<2x11xf32> -> vector<2x11xf32>
    %570 = vector.broadcast %9 : vector<1x11xf32> to vector<2x11xf32>
    %571 = arith.addf %569, %570 : vector<2x11xf32>
    %c0_261 = arith.constant 0 : index
    %c3 = arith.constant 3 : index
    %c0_262 = arith.constant 0 : index
    %572 = vector.load %arg14[%c0_261, %c3, %c0_262] : memref<2x6x11xf32, #tpu.memory_space<vmem>>, vector<2x1x11xf32>
    %573 = vector.shape_cast %572 : vector<2x1x11xf32> to vector<2x11xf32>
    %574 = vector.shape_cast %571 : vector<2x11xf32> to vector<2x1x11xf32>
    tpu.vector_store %arg14[%c0_261, %c3, %c0_262], %574 {strides = array<i32>} : memref<2x6x11xf32, #tpu.memory_space<vmem>>, vector<2x1x11xf32>,
    %c3_263 = arith.constant 3 : index
    %575 = memref.load %arg1[%c3_263] : memref<5xi32, #tpu.memory_space<smem>>
    %c0_i32_264 = arith.constant 0 : i32
    %576 = arith.cmpi sgt, %575, %c0_i32_264 : i32
    %c0_265 = arith.constant 0 : index
    %c3_266 = arith.constant 3 : index
    %c0_267 = arith.constant 0 : index
    %577 = vector.load %arg4[%c0_265, %c3_266, %c0_267] : memref<2x5x11xf32, #tpu.memory_space<vmem>>, vector<2x1x11xf32>
    %578 = vector.shape_cast %577 : vector<2x1x11xf32> to vector<2x11xf32>
    %579 = arith.select %576, %578, %571 : vector<2x11xf32>
    %c0_268 = arith.constant 0 : index
    %c0_269 = arith.constant 0 : index
    %580 = vector.load %arg15[%c0_268, %c0_269] : memref<2x128xf32, #tpu.memory_space<vmem>>, vector<2x128xf32>
    %cst_270 = arith.constant dense<0.000000e+00> : vector<2x32xf32>
    %581 = tpu.matmul %580, %2, %cst_270 {dimension_numbers = #tpu.dot_dimension_numbers<[1], [0], [0], [1], [0, 0, 1, 1], [], []>} : vector<2x128xf32>, vector<128x32xf32>, vector<2x32xf32> -> vector<2x32xf32>
    %582 = vector.shape_cast %581 : vector<2x32xf32> to vector<2x1x32xf32>
    %583 = vector.broadcast %582 : vector<2x1x32xf32> to vector<2x8x32xf32>
    %584 = arith.addf %14, %583 : vector<2x8x32xf32>
    %585 = math.tanh %584 : vector<2x8x32xf32>
    %586 = vector.broadcast %7 : vector<1x1x32xf32> to vector<2x8x32xf32>
    %587 = arith.mulf %585, %586 : vector<2x8x32xf32>
    %cst_271 = arith.constant dense<0.000000e+00> : vector<2x8xf32>
    %588 = vector.multi_reduction <add>, %587, %cst_271 [2] : vector<2x8x32xf32> to vector<2x8xf32>
    %589 = math.exp %588 : vector<2x8xf32>
    %590 = vector.shape_cast %589 : vector<2x8xf32> to vector<2x8x1xf32>
    %591 = vector.broadcast %590 : vector<2x8x1xf32> to vector<2x8x32xf32>
    %592 = arith.mulf %591, %0 : vector<2x8x32xf32>
    %cst_272 = arith.constant dense<0.000000e+00> : vector<2x32xf32>
    %593 = vector.multi_reduction <add>, %592, %cst_272 [1] : vector<2x8x32xf32> to vector<2x32xf32>
    %cst_273 = arith.constant dense<0.000000e+00> : vector<2xf32>
    %594 = vector.multi_reduction <add>, %589, %cst_273 [1] : vector<2x8xf32> to vector<2xf32>
    %595 = vector.shape_cast %594 : vector<2xf32> to vector<2x1xf32>
    %596 = tpu.reciprocal %595 : vector<2x1xf32> -> vector<2x1xf32>
    %597 = vector.broadcast %596 : vector<2x1xf32> to vector<2x32xf32>
    %598 = arith.mulf %593, %597 : vector<2x32xf32>
    %c0_274 = arith.constant 0 : index
    %c64_275 = arith.constant 64 : index
    %599 = vector.load %arg15[%c0_274, %c64_275] : memref<2x128xf32, #tpu.memory_space<vmem>>, vector<2x32xf32>
    tpu.vector_store %arg15[%c0_274, %c64_275], %598 {strides = array<i32>} : memref<2x128xf32, #tpu.memory_space<vmem>>, vector<2x32xf32>,
    %c0_276 = arith.constant 0 : index
    %c0_277 = arith.constant 0 : index
    %600 = vector.load %arg15[%c0_276, %c0_277] : memref<2x128xf32, #tpu.memory_space<vmem>>, vector<2x128xf32>
    %cst_278 = arith.constant dense<0.000000e+00> : vector<2x128xf32>
    %601 = tpu.matmul %600, %3, %cst_278 {dimension_numbers = #tpu.dot_dimension_numbers<[1], [0], [0], [1], [0, 0, 1, 1], [], []>} : vector<2x128xf32>, vector<128x128xf32>, vector<2x128xf32> -> vector<2x128xf32>
    %cst_279 = arith.constant dense<0.000000e+00> : vector<2x128xf32>
    %602 = tpu.matmul %579, %4, %cst_279 {dimension_numbers = #tpu.dot_dimension_numbers<[1], [0], [0], [1], [0, 0, 1, 1], [], []>} : vector<2x11xf32>, vector<11x128xf32>, vector<2x128xf32> -> vector<2x128xf32>
    %603 = arith.addf %601, %602 : vector<2x128xf32>
    %604 = vector.broadcast %8 : vector<1x128xf32> to vector<2x128xf32>
    %605 = arith.addf %603, %604 : vector<2x128xf32>
    %606 = math.tanh %605 : vector<2x128xf32>
    %607 = arith.negf %605 : vector<2x128xf32>
    %608 = math.exp %607 : vector<2x128xf32>
    %cst_280 = arith.constant 1.000000e+00 : f32
    %609 = vector.broadcast %cst_280 : f32 to vector<2x128xf32>
    %610 = arith.addf %609, %608 : vector<2x128xf32>
    %611 = arith.divf %609, %610 : vector<2x128xf32>
    %612 = arith.select %20, %606, %611 : vector<2x128xi1>, vector<2x128xf32>
    %613 = vector.extract_strided_slice %612 {offsets = [0, 0], sizes = [2, 32], strides = [1, 1]} : vector<2x128xf32> to vector<2x32xf32>
    %614 = vector.extract_strided_slice %612 {offsets = [0, 32], sizes = [2, 32], strides = [1, 1]} : vector<2x128xf32> to vector<2x32xf32>
    %615 = vector.extract_strided_slice %612 {offsets = [0, 64], sizes = [2, 32], strides = [1, 1]} : vector<2x128xf32> to vector<2x32xf32>
    %616 = vector.extract_strided_slice %612 {offsets = [0, 96], sizes = [2, 32], strides = [1, 1]} : vector<2x128xf32> to vector<2x32xf32>
    %617 = arith.mulf %614, %563 : vector<2x32xf32>
    %618 = arith.mulf %613, %615 : vector<2x32xf32>
    %619 = arith.addf %617, %618 : vector<2x32xf32>
    %620 = math.tanh %619 : vector<2x32xf32>
    %621 = arith.mulf %616, %620 : vector<2x32xf32>
    %c0_281 = arith.constant 0 : index
    %c0_282 = arith.constant 0 : index
    %622 = vector.load %arg15[%c0_281, %c0_282] : memref<2x128xf32, #tpu.memory_space<vmem>>, vector<2x32xf32>
    tpu.vector_store %arg15[%c0_281, %c0_282], %621 {strides = array<i32>} : memref<2x128xf32, #tpu.memory_space<vmem>>, vector<2x32xf32>,
    %c0_283 = arith.constant 0 : index
    %c32_284 = arith.constant 32 : index
    %623 = vector.load %arg15[%c0_283, %c32_284] : memref<2x128xf32, #tpu.memory_space<vmem>>, vector<2x32xf32>
    tpu.vector_store %arg15[%c0_283, %c32_284], %619 {strides = array<i32>} : memref<2x128xf32, #tpu.memory_space<vmem>>, vector<2x32xf32>,
    %c0_285 = arith.constant 0 : index
    %c0_286 = arith.constant 0 : index
    %624 = vector.load %arg15[%c0_285, %c0_286] : memref<2x128xf32, #tpu.memory_space<vmem>>, vector<2x128xf32>
    %cst_287 = arith.constant dense<0.000000e+00> : vector<2x11xf32>
    %625 = tpu.matmul %624, %5, %cst_287 {dimension_numbers = #tpu.dot_dimension_numbers<[1], [0], [0], [1], [0, 0, 1, 1], [], []>} : vector<2x128xf32>, vector<128x11xf32>, vector<2x11xf32> -> vector<2x11xf32>
    %626 = vector.broadcast %9 : vector<1x11xf32> to vector<2x11xf32>
    %627 = arith.addf %625, %626 : vector<2x11xf32>
    %c0_288 = arith.constant 0 : index
    %c4 = arith.constant 4 : index
    %c0_289 = arith.constant 0 : index
    %628 = vector.load %arg14[%c0_288, %c4, %c0_289] : memref<2x6x11xf32, #tpu.memory_space<vmem>>, vector<2x1x11xf32>
    %629 = vector.shape_cast %628 : vector<2x1x11xf32> to vector<2x11xf32>
    %630 = vector.shape_cast %627 : vector<2x11xf32> to vector<2x1x11xf32>
    tpu.vector_store %arg14[%c0_288, %c4, %c0_289], %630 {strides = array<i32>} : memref<2x6x11xf32, #tpu.memory_space<vmem>>, vector<2x1x11xf32>,
    %c4_290 = arith.constant 4 : index
    %631 = memref.load %arg1[%c4_290] : memref<5xi32, #tpu.memory_space<smem>>
    %c0_i32_291 = arith.constant 0 : i32
    %632 = arith.cmpi sgt, %631, %c0_i32_291 : i32
    %c0_292 = arith.constant 0 : index
    %c4_293 = arith.constant 4 : index
    %c0_294 = arith.constant 0 : index
    %633 = vector.load %arg4[%c0_292, %c4_293, %c0_294] : memref<2x5x11xf32, #tpu.memory_space<vmem>>, vector<2x1x11xf32>
    %634 = vector.shape_cast %633 : vector<2x1x11xf32> to vector<2x11xf32>
    %635 = arith.select %632, %634, %627 : vector<2x11xf32>
    %c0_295 = arith.constant 0 : index
    %c0_296 = arith.constant 0 : index
    %636 = vector.load %arg15[%c0_295, %c0_296] : memref<2x128xf32, #tpu.memory_space<vmem>>, vector<2x128xf32>
    %cst_297 = arith.constant dense<0.000000e+00> : vector<2x32xf32>
    %637 = tpu.matmul %636, %2, %cst_297 {dimension_numbers = #tpu.dot_dimension_numbers<[1], [0], [0], [1], [0, 0, 1, 1], [], []>} : vector<2x128xf32>, vector<128x32xf32>, vector<2x32xf32> -> vector<2x32xf32>
    %638 = vector.shape_cast %637 : vector<2x32xf32> to vector<2x1x32xf32>
    %639 = vector.broadcast %638 : vector<2x1x32xf32> to vector<2x8x32xf32>
    %640 = arith.addf %14, %639 : vector<2x8x32xf32>
    %641 = math.tanh %640 : vector<2x8x32xf32>
    %642 = vector.broadcast %7 : vector<1x1x32xf32> to vector<2x8x32xf32>
    %643 = arith.mulf %641, %642 : vector<2x8x32xf32>
    %cst_298 = arith.constant dense<0.000000e+00> : vector<2x8xf32>
    %644 = vector.multi_reduction <add>, %643, %cst_298 [2] : vector<2x8x32xf32> to vector<2x8xf32>
    %645 = math.exp %644 : vector<2x8xf32>
    %646 = vector.shape_cast %645 : vector<2x8xf32> to vector<2x8x1xf32>
    %647 = vector.broadcast %646 : vector<2x8x1xf32> to vector<2x8x32xf32>
    %648 = arith.mulf %647, %0 : vector<2x8x32xf32>
    %cst_299 = arith.constant dense<0.000000e+00> : vector<2x32xf32>
    %649 = vector.multi_reduction <add>, %648, %cst_299 [1] : vector<2x8x32xf32> to vector<2x32xf32>
    %cst_300 = arith.constant dense<0.000000e+00> : vector<2xf32>
    %650 = vector.multi_reduction <add>, %645, %cst_300 [1] : vector<2x8xf32> to vector<2xf32>
    %651 = vector.shape_cast %650 : vector<2xf32> to vector<2x1xf32>
    %652 = tpu.reciprocal %651 : vector<2x1xf32> -> vector<2x1xf32>
    %653 = vector.broadcast %652 : vector<2x1xf32> to vector<2x32xf32>
    %654 = arith.mulf %649, %653 : vector<2x32xf32>
    %c0_301 = arith.constant 0 : index
    %c64_302 = arith.constant 64 : index
    %655 = vector.load %arg15[%c0_301, %c64_302] : memref<2x128xf32, #tpu.memory_space<vmem>>, vector<2x32xf32>
    tpu.vector_store %arg15[%c0_301, %c64_302], %654 {strides = array<i32>} : memref<2x128xf32, #tpu.memory_space<vmem>>, vector<2x32xf32>,
    %c0_303 = arith.constant 0 : index
    %c0_304 = arith.constant 0 : index
    %656 = vector.load %arg15[%c0_303, %c0_304] : memref<2x128xf32, #tpu.memory_space<vmem>>, vector<2x128xf32>
    %cst_305 = arith.constant dense<0.000000e+00> : vector<2x128xf32>
    %657 = tpu.matmul %656, %3, %cst_305 {dimension_numbers = #tpu.dot_dimension_numbers<[1], [0], [0], [1], [0, 0, 1, 1], [], []>} : vector<2x128xf32>, vector<128x128xf32>, vector<2x128xf32> -> vector<2x128xf32>
    %cst_306 = arith.constant dense<0.000000e+00> : vector<2x128xf32>
    %658 = tpu.matmul %635, %4, %cst_306 {dimension_numbers = #tpu.dot_dimension_numbers<[1], [0], [0], [1], [0, 0, 1, 1], [], []>} : vector<2x11xf32>, vector<11x128xf32>, vector<2x128xf32> -> vector<2x128xf32>
    %659 = arith.addf %657, %658 : vector<2x128xf32>
    %660 = vector.broadcast %8 : vector<1x128xf32> to vector<2x128xf32>
    %661 = arith.addf %659, %660 : vector<2x128xf32>
    %662 = math.tanh %661 : vector<2x128xf32>
    %663 = arith.negf %661 : vector<2x128xf32>
    %664 = math.exp %663 : vector<2x128xf32>
    %cst_307 = arith.constant 1.000000e+00 : f32
    %665 = vector.broadcast %cst_307 : f32 to vector<2x128xf32>
    %666 = arith.addf %665, %664 : vector<2x128xf32>
    %667 = arith.divf %665, %666 : vector<2x128xf32>
    %668 = arith.select %20, %662, %667 : vector<2x128xi1>, vector<2x128xf32>
    %669 = vector.extract_strided_slice %668 {offsets = [0, 0], sizes = [2, 32], strides = [1, 1]} : vector<2x128xf32> to vector<2x32xf32>
    %670 = vector.extract_strided_slice %668 {offsets = [0, 32], sizes = [2, 32], strides = [1, 1]} : vector<2x128xf32> to vector<2x32xf32>
    %671 = vector.extract_strided_slice %668 {offsets = [0, 64], sizes = [2, 32], strides = [1, 1]} : vector<2x128xf32> to vector<2x32xf32>
    %672 = vector.extract_strided_slice %668 {offsets = [0, 96], sizes = [2, 32], strides = [1, 1]} : vector<2x128xf32> to vector<2x32xf32>
    %673 = arith.mulf %670, %619 : vector<2x32xf32>
    %674 = arith.mulf %669, %671 : vector<2x32xf32>
    %675 = arith.addf %673, %674 : vector<2x32xf32>
    %676 = math.tanh %675 : vector<2x32xf32>
    %677 = arith.mulf %672, %676 : vector<2x32xf32>
    %c0_308 = arith.constant 0 : index
    %c0_309 = arith.constant 0 : index
    %678 = vector.load %arg15[%c0_308, %c0_309] : memref<2x128xf32, #tpu.memory_space<vmem>>, vector<2x32xf32>
    tpu.vector_store %arg15[%c0_308, %c0_309], %677 {strides = array<i32>} : memref<2x128xf32, #tpu.memory_space<vmem>>, vector<2x32xf32>,
    %c0_310 = arith.constant 0 : index
    %c32_311 = arith.constant 32 : index
    %679 = vector.load %arg15[%c0_310, %c32_311] : memref<2x128xf32, #tpu.memory_space<vmem>>, vector<2x32xf32>
    tpu.vector_store %arg15[%c0_310, %c32_311], %675 {strides = array<i32>} : memref<2x128xf32, #tpu.memory_space<vmem>>, vector<2x32xf32>,
    %c0_312 = arith.constant 0 : index
    %c0_313 = arith.constant 0 : index
    %680 = vector.load %arg15[%c0_312, %c0_313] : memref<2x128xf32, #tpu.memory_space<vmem>>, vector<2x128xf32>
    %cst_314 = arith.constant dense<0.000000e+00> : vector<2x11xf32>
    %681 = tpu.matmul %680, %5, %cst_314 {dimension_numbers = #tpu.dot_dimension_numbers<[1], [0], [0], [1], [0, 0, 1, 1], [], []>} : vector<2x128xf32>, vector<128x11xf32>, vector<2x11xf32> -> vector<2x11xf32>
    %682 = vector.broadcast %9 : vector<1x11xf32> to vector<2x11xf32>
    %683 = arith.addf %681, %682 : vector<2x11xf32>
    %c0_315 = arith.constant 0 : index
    %c5 = arith.constant 5 : index
    %c0_316 = arith.constant 0 : index
    %684 = vector.load %arg14[%c0_315, %c5, %c0_316] : memref<2x6x11xf32, #tpu.memory_space<vmem>>, vector<2x1x11xf32>
    %685 = vector.shape_cast %684 : vector<2x1x11xf32> to vector<2x11xf32>
    %686 = vector.shape_cast %683 : vector<2x11xf32> to vector<2x1x11xf32>
    tpu.vector_store %arg14[%c0_315, %c5, %c0_316], %686 {strides = array<i32>} : memref<2x6x11xf32, #tpu.memory_space<vmem>>, vector<2x1x11xf32>,
    return
  }
  func.func @transform_0(%arg0: i32, %arg1: memref<5xi32, #tpu.memory_space<smem>>) -> (i32, i32, i32) {
    %c0_i32 = arith.constant 0 : i32
    %c0_i32_0 = arith.constant 0 : i32
    %c0_i32_1 = arith.constant 0 : i32
    return %arg0, %c0_i32, %c0_i32_0 : i32, i32, i32
  }
  func.func @transform_1(%arg0: i32, %arg1: memref<5xi32, #tpu.memory_space<smem>>) -> (i32, i32, i32) {
    %c0_i32 = arith.constant 0 : i32
    %c0_i32_0 = arith.constant 0 : i32
    %c0_i32_1 = arith.constant 0 : i32
    return %c0_i32, %arg0, %c0_i32_0 : i32, i32, i32
  }
  func.func @transform_2(%arg0: i32, %arg1: memref<5xi32, #tpu.memory_space<smem>>) -> (i32, i32, i32) {
    %c0_i32 = arith.constant 0 : i32
    %c0_i32_0 = arith.constant 0 : i32
    %c0_i32_1 = arith.constant 0 : i32
    return %arg0, %c0_i32, %c0_i32_0 : i32, i32, i32
  }
  func.func @transform_3(%arg0: i32, %arg1: memref<5xi32, #tpu.memory_space<smem>>) -> (i32, i32) {
    %c0_i32 = arith.constant 0 : i32
    %c0_i32_0 = arith.constant 0 : i32
    %c0_i32_1 = arith.constant 0 : i32
    return %c0_i32, %c0_i32_0 : i32, i32
  }
  func.func @transform_4(%arg0: i32, %arg1: memref<5xi32, #tpu.memory_space<smem>>) -> (i32, i32, i32) {
    %c0_i32 = arith.constant 0 : i32
    %c0_i32_0 = arith.constant 0 : i32
    %c0_i32_1 = arith.constant 0 : i32
    %c0_i32_2 = arith.constant 0 : i32
    return %c0_i32, %c0_i32_0, %c0_i32_1 : i32, i32, i32
  }
  func.func @transform_5(%arg0: i32, %arg1: memref<5xi32, #tpu.memory_space<smem>>) -> (i32, i32, i32) {
    %c0_i32 = arith.constant 0 : i32
    %c0_i32_0 = arith.constant 0 : i32
    %c0_i32_1 = arith.constant 0 : i32
    %c0_i32_2 = arith.constant 0 : i32
    return %c0_i32, %c0_i32_0, %c0_i32_1 : i32, i32, i32
  }
  func.func @transform_6(%arg0: i32, %arg1: memref<5xi32, #tpu.memory_space<smem>>) -> (i32, i32) {
    %c0_i32 = arith.constant 0 : i32
    %c0_i32_0 = arith.constant 0 : i32
    %c0_i32_1 = arith.constant 0 : i32
    return %c0_i32, %c0_i32_0 : i32, i32
  }
  func.func @transform_7(%arg0: i32, %arg1: memref<5xi32, #tpu.memory_space<smem>>) -> (i32, i32) {
    %c0_i32 = arith.constant 0 : i32
    %c0_i32_0 = arith.constant 0 : i32
    %c0_i32_1 = arith.constant 0 : i32
    return %c0_i32, %c0_i32_0 : i32, i32
  }
  func.func @transform_8(%arg0: i32, %arg1: memref<5xi32, #tpu.memory_space<smem>>) -> (i32, i32) {
    %c0_i32 = arith.constant 0 : i32
    %c0_i32_0 = arith.constant 0 : i32
    %c0_i32_1 = arith.constant 0 : i32
    return %c0_i32, %c0_i32_0 : i32, i32
  }
  func.func @transform_9(%arg0: i32, %arg1: memref<5xi32, #tpu.memory_space<smem>>) -> (i32, i32) {
    %c0_i32 = arith.constant 0 : i32
    %c0_i32_0 = arith.constant 0 : i32
    %c0_i32_1 = arith.constant 0 : i32
    return %c0_i32, %c0_i32_0 : i32, i32
  }
  func.func @transform_10(%arg0: i32, %arg1: memref<5xi32, #tpu.memory_space<smem>>) -> (i32, i32) {
    %c0_i32 = arith.constant 0 : i32
    %c0_i32_0 = arith.constant 0 : i32
    %c0_i32_1 = arith.constant 0 : i32
    return %c0_i32, %c0_i32_0 : i32, i32
  }
  func.func @transform_11(%arg0: i32, %arg1: memref<5xi32, #tpu.memory_space<smem>>) -> (i32, i32) {
    %c0_i32 = arith.constant 0 : i32
    %c0_i32_0 = arith.constant 0 : i32
    %c0_i32_1 = arith.constant 0 : i32
    return %c0_i32, %c0_i32_0 : i32, i32
  }
  func.func @transform_12(%arg0: i32, %arg1: memref<5xi32, #tpu.memory_space<smem>>) -> (i32, i32, i32) {
    %c0_i32 = arith.constant 0 : i32
    %c0_i32_0 = arith.constant 0 : i32
    %c0_i32_1 = arith.constant 0 : i32
    return %arg0, %c0_i32, %c0_i32_0 : i32, i32, i32
  }
}

</mosaic_0001>

<bundles_post_ra>
// kernel: tpu_custom_call.1
= control target key start
LH: loop header
LB: loop body
LE: loop exit
PB: predicated region body
PF: predicated region fallthrough
CT: control target
= control target key end

     0   :  { %s10000_s0 = inlined_call_operand.vmem [shape: s32[5], index: 0, kind: input, shape index: {}]   ;;  %s10001_s1 = inlined_call_operand.vmem [shape: f32[2,8,32], index: 1, kind: input, shape index: {}]   ;;  %s10002_s2 = inlined_call_operand.vmem [shape: f32[8,2,11], index: 2, kind: input, shape index: {}]   ;;  %s10003_s3 = inlined_call_operand.vmem [shape: f32[2,5,11], index: 3, kind: input, shape index: {}]   ;;  %s10004_s4 = inlined_call_operand.vmem [shape: f32[32,32], index: 4, kind: input, shape index: {}]   ;;  %s10005_s5 = inlined_call_operand.vmem [shape: f32[1,1,32], index: 5, kind: input, shape index: {}]   ;;  %s10006_s6 = inlined_call_operand.vmem [shape: f32[1,1,32], index: 6, kind: input, shape index: {}]   ;;  %s10007_s7 = inlined_call_operand.vmem [shape: f32[128,32], index: 7, kind: input, shape index: {}]   ;;  %s10008_s8 = inlined_call_operand.vmem [shape: f32[128,128], index: 8, kind: input, shape index: {}]   ;;  %s10009_s9 = inlined_call_operand.vmem [shape: f32[11,128], index: 9, kind: input, shape index: {}]   ;;  %s10010_s10 = inlined_call_operand.vmem [shape: f32[1,128], index: 10, kind: input, shape index: {}]   ;;  %s10011_s11 = inlined_call_operand.vmem [shape: f32[128,11], index: 11, kind: input, shape index: {}]   ;;  %s10012_s12 = inlined_call_operand.vmem [shape: f32[1,11], index: 12, kind: input, shape index: {}]   ;;  %s10013_s13 = inlined_call_operand.vmem [shape: f32[2,6,11], index: 13, kind: output, shape index: {}]  }
   0x1   :  { %s18_s27 = sshll.u32 %s10000_s0, 4  ;;  %s19_s27 = int_to_ptr.vmem [resolvable:$true] %s18_s27 }
   0x2   :  { %s8311_s28 = scalar_lea.vmem %s19_s27, 16  ;;  %p8316_p1 = scmp.lt.s32.totalorder %s19_s27, %s19_s27 }
   0x3   :  { %p8312_p0 = scmp.ne.s32.totalorder %s19_s27, %s8311_s28  ;;  %p8317_p2 = scmp.lt.s32.totalorder %s8311_s28, %s8311_s28 }
   0x5   :  { %p8318_p3 = por %p8317_p2, %p8316_p1 }
   0x7   :  { %p8319_p4 = pnand %p8318_p3, %p8312_p0 }
   0x9   :  { %8322 = shalt.err (!%p8319_p4)  }
   0xa   :  { %s8325_s29 = smov [#allocation4]  }
   0xb   :  { %21 = dma.vmem_to_smem %s19_s27, 16, %s8325_s29, [#allocation3] }
   0xc   :  { %8323 = dma.done.wait [#allocation3], 16 }
   0xd   :  { %8324 = vsyncadd [#allocation3], 4294967280 }
   0xe   :  { %23 = sfence }
   0xf   :  { %v50_v0 = vld [vmem:[%s10004_s4] sm:$0xff]  ;;  %v51_v1 = vld [vmem:[%s10004_s4 + $0x8] sm:$0xff]  ;;  %v52_v2 = vld [vmem:[%s10004_s4 + $0x10] sm:$0xff]  ;;  %vm108_vm0 = vcmask 261120   ;;  %v8326_v6 = vmov 0.0   ;;  %v8327_v7 = vmov 0.0|0.0   ;;  %v198_v37 = vlaneseq }
  0x10   :  { %v7228_v3 = vpack.c.bf16 %v51_v1, %v50_v0  ;;  %v53_v4 = vld [vmem:[%s10004_s4 + $0x18] sm:$0xff]  ;;  %v8421_v5 = vld [vmem:[%s10001_s1] sm:$0xff]  ;;  %203 = vst [vmem:[#allocation2] sm:$0x3] %v8326_v6  ;;  %7264 = vmatprep.subr.bf16.mxu0 %v8327_v7  ;;  %vm8328_vm1 = vmmov 0   ;;  %v55_v10 = vld [vmem:[%s10007_s7 + $0x8] sm:$0xff] }
  0x11   :  { %v7232_v8 = vpack.c.bf16 %v53_v4, %v52_v2  ;;  %6014 = vmatprep.mubr.msk.f32.mxu1 %vm108_vm0, %v8421_v5  ;;  %6091 = vmatprep.mubr.msk.f32.mxu0 %vm8328_vm1, %v8326_v6  ;;  %v54_v9 = vld [vmem:[%s10007_s7] sm:$0xff]  ;;  %v8438_v11 = vld [vmem:[%s10001_s1 + $0x8] sm:$0xff]  ;;  %v56_v13 = vld [vmem:[%s10007_s7 + $0x10] sm:$0xff]  ;;  %v8329_v38 = vmov 1966171168   ;;  %v281_v41 = vshrl.u32 %v198_v37, 7 }
  0x12   :  { %7229 = vmatprep.subr.bf16.mxu1 %v7228_v3  ;;  %v8440_v12 = vpack.c.bf16 %v55_v10, %v54_v9  ;;  %v57_v14 = vld [vmem:[%s10007_s7 + $0x18] sm:$0xff]  ;;  %v58_v16 = vld [vmem:[%s10007_s7 + $0x20] sm:$0xff]  ;;  %v59_v17 = vld [vmem:[%s10007_s7 + $0x28] sm:$0xff]  ;;  %v278_v39 = vunpack.c.l.s4 %v8329_v38  ;;  %v8548_v4 = vand.u32 127, %v198_v37  ;;  %vm357_vm2 = vcmask 1041409   ;;  %s8331_s0 = smov 64  }
  0x13   :  { %7231 = vmatpush3.bf16.msra.mxu1 %v7228_v3  ;;  %v8452_v15 = vpack.c.bf16 %v57_v14, %v56_v13  ;;  %v8464_v18 = vpack.c.bf16 %v59_v17, %v58_v16  ;;  %v60_v19 = vld [vmem:[%s10007_s7 + $0x30] sm:$0xff]  ;;  %v61_v20 = vld [vmem:[%s10007_s7 + $0x38] sm:$0xff]  ;;  %v62_v22 = vld [vmem:[%s10007_s7 + $0x40] sm:$0xff]  ;;  %v8524_v45 = vsub.s32 0, %v281_v41  ;;  %vm360_vm3 = vcmask 58368   ;;  %s8332_s18 = smov 32  }
  0x14   :  { %7233 = vmatprep.subr.bf16.mxu1 %v7232_v8  ;;  %v8474_v21 = vpack.c.bf16 %v61_v20, %v60_v19  ;;  %v63_v23 = vld [vmem:[%s10007_s7 + $0x48] sm:$0xff]  ;;  %v64_v25 = vld [vmem:[%s10007_s7 + $0x50] sm:$0xff]  ;;  %v65_v26 = vld [vmem:[%s10007_s7 + $0x58] sm:$0xff]  ;;  %v279_v40 = vunpack.c.0.s8 %v278_v39  ;;  %vm385_vm4 = vcmask 1042432   ;;  %vm8330_vm5 = vmmov 1   ;;  %s5401_s24 = sld [smem:[#allocation4 + $0x1]] }
  0x15   :  { %v8484_v24 = vpack.c.bf16 %v63_v23, %v62_v22  ;;  %v8494_v27 = vpack.c.bf16 %v65_v26, %v64_v25  ;;  %v66_v28 = vld [vmem:[%s10007_s7 + $0x60] sm:$0xff]  ;;  %v67_v29 = vld [vmem:[%s10007_s7 + $0x68] sm:$0xff]  ;;  %v68_v31 = vld [vmem:[%s10007_s7 + $0x70] sm:$0xff]  ;;  %vm381_vm7 = vcmask 89088   ;;  %vm378_vm8 = vcmask 779776   ;;  %s5405_s16 = sld [smem:[#allocation4 + $0x2]] }
  0x16   :  { %v8504_v30 = vpack.c.bf16 %v67_v29, %v66_v28  ;;  %v69_v32 = vld [vmem:[%s10007_s7 + $0x78] sm:$0xff]  ;;  %v8521_v42 = vsub.s32 %v279_v40, %v281_v41  ;;  %v5363_v47 = vld [vmem:[%s10005_s5] ss:$0 sm:$0xff]  ;;  %v71_v20 = vld [vmem:[%s10008_s8 + $0x8] sm:$0xff]  ;;  %vm200_vm9 = vcmp.ge.s32.totalorder %v8548_v4, 64  ;;  %vm201_vm10 = vcmp.lt.s32.totalorder %v8548_v4, 96 }
  0x17   :  { %7235 = vmatpush3.bf16.msra.mxu1 %v7232_v8  ;;  %v8514_v33 = vpack.c.bf16 %v69_v32, %v68_v31  ;;  %v205_v34 = vld [vmem:[#allocation2] sm:$0x3]  ;;  %v8551_v8 = vsub.s32 %v8548_v4, %v281_v41  ;;  %v72_v22 = vld [vmem:[%s10008_s8 + $0x10] sm:$0xff]  ;;  %v73_v25 = vld [vmem:[%s10008_s8 + $0x18] sm:$0xff]  ;;  %vm565_vm12 = vcmask 254976   ;;  %vm567_vm13 = vcmask 517376  }
  0x18   :  { %7236 = vmatprep.subr.bf16.mxu1 %v8327_v7  ;;  %v8542_v57 = vld [vmem:[%s10006_s6] ss:$0 sm:$0xff]  ;;  %v8572_v26 = vpack.c.bf16 %v73_v25, %v72_v22  ;;  %v75_v29 = vld [vmem:[%s10008_s8 + $0x28] sm:$0xff]  ;;  %v76_v32 = vld [vmem:[%s10008_s8 + $0x30] sm:$0xff]  ;;  %vm3079_vm14 = vcmask 81920  }
  0x19   :  { %v70_v19 = vld [vmem:[%s10008_s8] sm:$0xff]  ;;  %v79_v37 = vld [vmem:[%s10008_s8 + $0x48] sm:$0xff]  ;;  %v80_v39 = vld [vmem:[%s10008_s8 + $0x50] sm:$0xff] }
  0x1a   :  { %6015 = vmatmul.mubr.msk.f32.vlgmr.msra.gmra.mrb[0].mxu1 %vm108_vm0, %v8438_v11  ;;  %v8566_v23 = vpack.c.bf16 %v71_v20, %v70_v19  ;;  %v74_v28 = vld [vmem:[%s10008_s8 + $0x20] sm:$0xff]  ;;  %v81_v40 = vld [vmem:[%s10008_s8 + $0x58] sm:$0xff]  ;;  %vm8645_vm6 = vmpackc.low %vm385_vm4, %vm8330_vm5  ;;  %p3538_p6 = scmp.gt.s32.totalorder %s5401_s24, 0 }
  0x1b   :  { %7238 = vmatpush3.bf16.msra.mxu1 %v8440_v12  ;;  %6049 = vmatprep.mubr.msk.f32.mxu1 %vm8328_vm1, %v8326_v6  ;;  %v8582_v31 = vpack.c.bf16 %v75_v29, %v74_v28  ;;  %v8612_v41 = vpack.c.bf16 %v81_v40, %v80_v39  ;;  %v204_v20 = vld [vmem:[%s10002_s2] sm:$0x3]  ;;  %vm8696_vm11 = vmand %vm200_vm9, %vm201_vm10  ;;  %p3993_p7 = scmp.gt.s32.totalorder %s5405_s16, 0 }
  0x1c   :  { %7239 = vmatprep.subr.bf16.mxu1 %v8327_v7  ;;  %7266 = vmatpush3.bf16.msra.mxu0 %v8566_v23  ;;  %v8691_v40 = vld [vmem:[%s10010_s10] ss:$0 sm:$0xff]  ;;  %s3541_s25 = scalar_select %p3538_p6, 1, 0 }
  0x1d   :  { %7267 = vmatprep.subr.bf16.mxu0 %v8327_v7 }
  0x1f   :  { %7241 = vmatpush3.bf16.msra.mxu1 %v8452_v15 }
  0x20   :  { %7242 = vmatprep.subr.bf16.mxu1 %v8327_v7  ;;  %7269 = vmatpush3.bf16.msra.mxu0 %v8572_v26 }
  0x21   :  { %7270 = vmatprep.subr.bf16.mxu0 %v8327_v7 }
  0x23   :  { %7244 = vmatpush3.bf16.msra.mxu1 %v8464_v18 }
  0x24   :  { %7245 = vmatprep.subr.bf16.mxu1 %v8327_v7  ;;  %7272 = vmatpush3.bf16.msra.mxu0 %v8582_v31 }
  0x25   :  { %7273 = vmatprep.subr.bf16.mxu0 %v8327_v7 }
  0x27   :  { %7247 = vmatpush3.bf16.msra.mxu1 %v8474_v21 }
  0x28   :  { %7248 = vmatprep.subr.bf16.mxu1 %v8327_v7 }
  0x2b   :  { %7250 = vmatpush3.bf16.msra.mxu1 %v8484_v24 }
  0x2c   :  { %7251 = vmatprep.subr.bf16.mxu1 %v8327_v7 }
  0x2f   :  { %7253 = vmatpush3.bf16.msra.mxu1 %v8494_v27 }
  0x30   :  { %7254 = vmatprep.subr.bf16.mxu1 %v8327_v7 }
  0x33   :  { %7256 = vmatpush3.bf16.msra.mxu1 %v8504_v30 }
  0x34   :  { %7257 = vmatprep.subr.bf16.mxu1 %v8327_v7 }
  0x37   :  { %7259 = vmatpush3.bf16.msra.mxu1 %v8514_v33 }
  0x38   :  { %7260 = vmatprep.subr.bf16.mxu1 %v8327_v7 }
  0x3a   :  { %6050 = vmatmul.mubr.f32.vlgmr.msra.gmra.mrb[2].mxu1 %v205_v34  ;;  %v77_v34 = vld [vmem:[%s10008_s8 + $0x38] sm:$0xff] }
  0x3b   :  { %6056 = vmatprep.mubr.msk.f32.mxu1 %vm8328_vm1, %v8326_v6 }
  0xed   :  { %v6016_v35 = vpop.f32.mrb[0].mxu1 }
  0xee   :  { %v181_v36 = vpop.f32.mrb[1].mxu1  ;;  %v8534_v53 = vadd.f32 %v6016_v35, %v5363_v47  ;;  %v8592_v35 = vpack.c.bf16 %v77_v34, %v76_v32 }
  0xef   :  { %v8530_v50 = vadd.f32 %v5363_v47, %v181_v36  ;;  %v78_v36 = vld [vmem:[%s10008_s8 + $0x40] sm:$0xff] }
  0xf0   :  { %7275 = vmatpush3.bf16.msra.mxu0 %v8592_v35  ;;  %v8602_v38 = vpack.c.bf16 %v79_v37, %v78_v36 }
  0xf1   :  { %7276 = vmatprep.subr.bf16.mxu0 %v8327_v7 }
  0xf4   :  { %7278 = vmatpush3.bf16.msra.mxu0 %v8602_v38 }
  0xf5   :  { %7279 = vmatprep.subr.bf16.mxu0 %v8327_v7 }
  0xf8   :  { %7281 = vmatpush3.bf16.msra.mxu0 %v8612_v41 }
  0xf9   :  { %7282 = vmatprep.subr.bf16.mxu0 %v8327_v7 }
 0x10d   :  { %v272_v43 = vpop.f32.mrb[2].mxu1 }
 0x10e   :  { %v283_v44 = vrot.slane %v272_v43, %v8521_v42  ;;  %v6051_v46 = vpop.f32.mrb[3].mxu1 }
 0x110   :  { %v284_v48 = vcombine.high %v283_v44, %v283_v44  ;;  %v291_v49 = vrot.slane %v283_v44, %v8521_v42 }
 0x112   :  { %v298_v51 = vrot.slane %v284_v48, %v8521_v42  ;;  %v302_v52 = vrot.slane %v291_v49, %v8524_v45 }
 0x114   :  { %v306_v54 = vrot.slane %v298_v51, %v8524_v45  ;;  %v309_v55 = vadd.f32 %v302_v52, %v8530_v50 }
 0x116   :  { %v310_v56 = vadd.f32 %v306_v54, %v8534_v53  ;;  %8064 = vtanh.f32 %v309_v55 }
 0x118   :  { %8066 = vtanh.f32 %v310_v56 }
 0x120   :  { %v8065_v58 = vpop.eup %8064 }
 0x121   :  { %v319_v59 = vmul.f32 %v8065_v58, %v8542_v57 }
 0x122   :  { %v8067_v60 = vpop.eup %8066 }
 0x123   :  { %v321_v61 = vsel %vm108_vm0, %v319_v59, 0.0  ;;  %v320_v62 = vmul.f32 %v8067_v60, %v8542_v57  ;;  %v82_v59 = vld [vmem:[%s10008_s8 + $0x60] sm:$0xff]  ;;  %v83_v60 = vld [vmem:[%s10008_s8 + $0x68] sm:$0xff] }
 0x124   :  { %322 = vadd.xlane.f32.xlu0 %v321_v61  ;;  %v8627_v61 = vpack.c.bf16 %v83_v60, %v82_v59 }
 0x125   :  { %v324_v63 = vsel %vm108_vm0, %v320_v62, 0.0 }
 0x126   :  { %7284 = vmatpush3.bf16.msra.mxu0 %v8627_v61 }
 0x127   :  { %7285 = vmatprep.subr.bf16.mxu0 %v8327_v7 }
 0x128   :  { %325 = vadd.xlane.f32.xlu0 %v324_v63  ;;  %v86_v63 = vld [vmem:[%s10009_s9] sm:$0xff] }
 0x1b1   :  { %v323_v0 = vpop.xlane.xlu0 %322 }
 0x1b2   :  { %v327_v1 = vmul.f32 1.442695, %v323_v0  ;;  %v87_v0 = vld [vmem:[%s10009_s9 + $0x8] sm:$0x7] }
 0x1b4   :  { %8068 = vpow2.f32 %v327_v1 }
 0x1b5   :  { %v326_v2 = vpop.xlane.xlu0 %325 }
 0x1b6   :  { %v329_v3 = vmul.f32 1.442695, %v326_v2  ;;  %v8636_v2 = vpack.c.bf16 %v87_v0, %v86_v63 }
 0x1b8   :  { %8070 = vpow2.f32 %v329_v3  ;;  %v84_v3 = vld [vmem:[%s10008_s8 + $0x70] sm:$0xff]  ;;  %7263 = vmatpush3.bf16.msk.msra.mxu1 %vm8645_vm6, %v8636_v2 }
 0x1b9   :  { %7288 = vmatprep.subr.bf16.mxu1 %v8327_v7 }
 0x1bb   :  { %6057 = vmatmul.mubr.msk.f32.vlgmr.msra.gmra.mrb[4].mxu1 %vm381_vm7, %v204_v20 }
 0x1bc   :  { %7290 = vmatpush3.bf16.msra.mxu1 %v8440_v12  ;;  %6126 = vmatprep.mubr.msk.f32.mxu1 %vm8328_vm1, %v8326_v6 }
 0x1bd   :  { %7291 = vmatprep.subr.bf16.mxu1 %v8327_v7 }
 0x1be   :  { %v8069_v9 = vpop.eup %8068 }
 0x1bf   :  { %v352_v13 = vrot.slane %v8069_v9, %v8551_v8  ;;  %v331_v44 = vmul.f32 %v8069_v9, %v8421_v5  ;;  %v85_v9 = vld [vmem:[%s10008_s8 + $0x78] sm:$0xff]  ;;  %s3996_s8 = scalar_select %p3993_p7, 1, 0 }
 0x1c0   :  { %7293 = vmatpush3.bf16.msra.mxu1 %v8452_v15 }
 0x1c1   :  { %v333_v47 = vsel %vm108_vm0, %v331_v44, 0.0  ;;  %7294 = vmatprep.subr.bf16.mxu1 %v8327_v7 }
 0x1c2   :  { %v8071_v10 = vpop.eup %8070  ;;  %v334_v49 = vrot.slane %v333_v47, 4 }
 0x1c3   :  { %v356_v14 = vrot.slane %v8071_v10, %v8551_v8  ;;  %v332_v43 = vmul.f32 %v8071_v10, %v8438_v11 }
 0x1c4   :  { %v335_v52 = vadd.f32 %v334_v49, %v333_v47  ;;  %7296 = vmatpush3.bf16.msra.mxu1 %v8464_v18 }
 0x1c5   :  { %v358_v16 = vsel %vm357_vm2, %v356_v14, %v352_v13  ;;  %v340_v46 = vsel %vm108_vm0, %v332_v43, 0.0  ;;  %v8649_v13 = vpack.c.bf16 %v85_v9, %v84_v3  ;;  %7297 = vmatprep.subr.bf16.mxu1 %v8327_v7 }
 0x1c6   :  { %v361_v17 = vsel %vm360_vm3, %v358_v16, 0.0  ;;  %v341_v48 = vrot.slane %v340_v46, 4  ;;  %v336_v56 = vrot.slane %v335_v52, 2 }
 0x1c7   :  { %362 = vadd.xlane.f32.xlu1 %v361_v17  ;;  %7287 = vmatpush3.bf16.msra.mxu0 %v8649_v13 }
 0x1c8   :  { %v342_v51 = vadd.f32 %v341_v48, %v340_v46  ;;  %v337_v62 = vadd.f32 %v336_v56, %v335_v52  ;;  %7312 = vmatprep.subr.bf16.mxu0 %v8327_v7  ;;  %7299 = vmatpush3.bf16.msra.mxu1 %v8474_v21 }
 0x1c9   :  { %7300 = vmatprep.subr.bf16.mxu1 %v8327_v7 }
 0x1ca   :  { %v343_v55 = vrot.slane %v342_v51, 2  ;;  %v338_v14 = vrot.slane %v337_v62, 1 }
 0x1cc   :  { %v344_v58 = vadd.f32 %v343_v55, %v342_v51  ;;  %v339_v22 = vadd.f32 %v338_v14, %v337_v62  ;;  %7302 = vmatpush3.bf16.msra.mxu1 %v8484_v24 }
 0x1cd   :  { %7303 = vmatprep.subr.bf16.mxu1 %v8327_v7 }
 0x1ce   :  { %v345_v1 = vrot.slane %v344_v58, 1 }
 0x1d0   :  { %v346_v17 = vadd.f32 %v345_v1, %v344_v58  ;;  %7305 = vmatpush3.bf16.msra.mxu1 %v8494_v27 }
 0x1d1   :  { %7306 = vmatprep.subr.bf16.mxu1 %v8327_v7 }
 0x1d4   :  { %7308 = vmatpush3.bf16.msra.mxu1 %v8504_v30 }
 0x1d5   :  { %7309 = vmatprep.subr.bf16.mxu1 %v8327_v7 }
 0x1d8   :  { %7311 = vmatpush3.bf16.msra.mxu1 %v8514_v33 }
 0x1d9   :  { %7340 = vmatprep.subr.bf16.mxu1 %v8327_v7 }
 0x254   :  { %v363_v54 = vpop.xlane.xlu1 %362 }
 0x255   :  { %8072 = vrcp.f32 %v363_v54 }
 0x25f   :  { %v8073_v16 = vpop.eup %8072 }
 0x260   :  { %v366_v19 = vrot.slane %v8073_v16, 1  ;;  %v369_v28 = vmul.f32 %v8073_v16, %v339_v22 }
 0x262   :  { %v370_v25 = vmul.f32 %v366_v19, %v346_v17 }
 0x264   :  { %v373_v29 = vrot.slane %v370_v25, 7 }
 0x266   :  { %v374_v32 = vsel %vm357_vm2, %v373_v29, %v369_v28 }
 0x267   :  { %375 = vrot.lane.b32.xlu1 %v374_v32, %s8331_s0 }
 0x28e   :  { %v455_v37 = vpop.f32.mrb[4].mxu1 }
 0x28f   :  { %v6058_v39 = vpop.f32.mrb[5].mxu1 }
 0x2d9   :  { %v376_v34 = vpop.permute.xlu1 %375 }
 0x2da   :  { %379 = vst.msk [vmem:[#allocation2] sm:$0x3] %vm378_vm8, %v376_v34 }
 0x2e1   :  { %v380_v36 = vld [vmem:[#allocation2] sm:$0x3] }
 0x2e2   :  { %6092 = vmatmul.mubr.f32.vlgmr.msra.gmra.mrb[0].mxu0 %v380_v36 }
 0x2e3   :  { %7315 = vmatpush3.bf16.msk.msra.mxu0 %vm8645_vm6, %v8636_v2  ;;  %6133 = vmatprep.mubr.msk.f32.mxu0 %vm8328_vm1, %v8326_v6 }
 0x2e4   :  { %7316 = vmatprep.subr.bf16.mxu0 %v8327_v7 }
 0x3b5   :  { %v525_v43 = vpop.f32.mrb[0].mxu0 }
 0x3b6   :  { %v526_v44 = vadd.f32 %v525_v43, %v455_v37  ;;  %v6093_v46 = vpop.f32.mrb[1].mxu0 }
 0x3b8   :  { %v535_v47 = vadd.f32 %v8691_v40, %v526_v44 }
 0x3ba   :  { %v5368_v48 = vmul.f32 -1.442695, %v535_v47 }
 0x3bc   :  { %8074 = vpow2.f32 %v5368_v48 }
 0x3bd   :  { %8076 = vtanh.f32 %v535_v47 }
 0x3c6   :  { %v8075_v49 = vpop.eup %8074 }
 0x3c7   :  { %v540_v51 = vadd.f32 1.0, %v8075_v49  ;;  %v8077_v54 = vpop.eup %8076 }
 0x3c9   :  { %8078 = vrcp.f32 %v540_v51 }
 0x3d3   :  { %v8079_v55 = vpop.eup %8078 }
 0x3d4   :  { %v543_v56 = vsel %vm8696_vm11, %v8077_v54, %v8079_v55 }
 0x3d5   :  { %546 = vrot.lane.b32.xlu0 %v543_v56, %s8331_s0  ;;  %v544_v60 = vmul.f32 0.0, %v543_v56 }
 0x447   :  { %v547_v58 = vpop.permute.xlu0 %546 }
 0x448   :  { %v549_v59 = vmul.f32 %v547_v58, %v543_v56 }
 0x44a   :  { %551 = vrot.lane.b32.xlu1 %v549_v59, %s8332_s18 }
 0x4bc   :  { %v552_v62 = vpop.permute.xlu1 %551 }
 0x4bd   :  { %v8704_v63 = vadd.f32 %v552_v62, %v544_v60  ;;  %v5369_v60 = vld [vmem:[%s10002_s2 + $0x2] sm:$0x3] }
 0x4be   :  { %6134 = vmatmul.mubr.msk.f32.vlgmr.msra.gmra.mrb[2].mxu0 %vm381_vm7, %v5369_v60 }
 0x4bf   :  { %8080 = vtanh.f32 %v8704_v63  ;;  %7318 = vmatpush3.bf16.msra.mxu0 %v8566_v23  ;;  %6168 = vmatprep.mubr.msk.f32.mxu0 %vm8328_vm1, %v8326_v6 }
 0x4c0   :  { %7319 = vmatprep.subr.bf16.mxu0 %v8327_v7 }
 0x4c3   :  { %7321 = vmatpush3.bf16.msra.mxu0 %v8572_v26 }
 0x4c4   :  { %7322 = vmatprep.subr.bf16.mxu0 %v8327_v7 }
 0x4c7   :  { %7324 = vmatpush3.bf16.msra.mxu0 %v8582_v31 }
 0x4c8   :  { %7325 = vmatprep.subr.bf16.mxu0 %v8327_v7 }
 0x4c9   :  { %v8081_v4 = vpop.eup %8080 }
 0x4ca   :  { %557 = vrot.lane.b32.xlu1 %v8081_v4, %s8331_s0 }
 0x4cb   :  { %7327 = vmatpush3.bf16.msra.mxu0 %v8592_v35 }
 0x4cc   :  { %7328 = vmatprep.subr.bf16.mxu0 %v8327_v7 }
 0x4cf   :  { %7330 = vmatpush3.bf16.msra.mxu0 %v8602_v38 }
 0x4d0   :  { %7331 = vmatprep.subr.bf16.mxu0 %v8327_v7 }
 0x4d3   :  { %7333 = vmatpush3.bf16.msra.mxu0 %v8612_v41 }
 0x4d4   :  { %7334 = vmatprep.subr.bf16.mxu0 %v8327_v7 }
 0x4d7   :  { %7336 = vmatpush3.bf16.msra.mxu0 %v8627_v61 }
 0x4d8   :  { %7337 = vmatprep.subr.bf16.mxu0 %v8327_v7 }
 0x4db   :  { %7339 = vmatpush3.bf16.msra.mxu0 %v8649_v13 }
 0x4dc   :  { %7364 = vmatprep.subr.bf16.mxu0 %v8327_v7 }
 0x53c   :  { %v558_v0 = vpop.permute.xlu1 %557 }
 0x53d   :  { %v560_v1 = vmul.f32 %v558_v0, %v543_v56 }
 0x53f   :  { %562 = vrot.lane.b32.xlu1 %v560_v1, %s8332_s18 }
 0x5b1   :  { %v563_v3 = vpop.permute.xlu1 %562 }
 0x5b2   :  { %566 = vst.msk [vmem:[#allocation2] sm:$0x3] %vm565_vm12, %v563_v3 }
 0x5b3   :  { %568 = vst.msk [vmem:[#allocation2] sm:$0x3] %vm567_vm13, %v8704_v63 }
 0x5ba   :  { %v571_v9 = vld [vmem:[#allocation2] sm:$0x3] }
 0x5bb   :  { %6127 = vmatmul.mubr.f32.vlgmr.msra.gmra.mrb[6].mxu1 %v571_v9 }
 0x5bc   :  { %7342 = vmatpush3.bf16.msra.mxu1 %v8440_v12  ;;  %6203 = vmatprep.mubr.msk.f32.mxu1 %vm8328_vm1, %v8326_v6 }
 0x5bd   :  { %7343 = vmatprep.subr.bf16.mxu1 %v8327_v7 }
 0x5c0   :  { %7345 = vmatpush3.bf16.msra.mxu1 %v8452_v15 }
 0x5c1   :  { %7346 = vmatprep.subr.bf16.mxu1 %v8327_v7 }
 0x5c4   :  { %7348 = vmatpush3.bf16.msra.mxu1 %v8464_v18 }
 0x5c5   :  { %7349 = vmatprep.subr.bf16.mxu1 %v8327_v7 }
 0x5c8   :  { %7351 = vmatpush3.bf16.msra.mxu1 %v8474_v21 }
 0x5c9   :  { %7352 = vmatprep.subr.bf16.mxu1 %v8327_v7 }
 0x5cc   :  { %7354 = vmatpush3.bf16.msra.mxu1 %v8484_v24 }
 0x5cd   :  { %7355 = vmatprep.subr.bf16.mxu1 %v8327_v7 }
 0x5d0   :  { %7357 = vmatpush3.bf16.msra.mxu1 %v8494_v27 }
 0x5d1   :  { %7358 = vmatprep.subr.bf16.mxu1 %v8327_v7 }
 0x5d4   :  { %7360 = vmatpush3.bf16.msra.mxu1 %v8504_v30 }
 0x5d5   :  { %7361 = vmatprep.subr.bf16.mxu1 %v8327_v7 }
 0x5d8   :  { %7363 = vmatpush3.bf16.msra.mxu1 %v8514_v33 }
 0x5d9   :  { %7392 = vmatprep.subr.bf16.mxu1 %v8327_v7 }
 0x68e   :  { %v638_v14 = vpop.f32.mrb[6].mxu1 }
 0x68f   :  { %v649_v16 = vrot.slane %v638_v14, %v8521_v42  ;;  %v6128_v17 = vpop.f32.mrb[7].mxu1 }
 0x691   :  { %v650_v19 = vcombine.high %v649_v16, %v649_v16  ;;  %v657_v20 = vrot.slane %v649_v16, %v8521_v42 }
 0x693   :  { %v664_v22 = vrot.slane %v650_v19, %v8521_v42  ;;  %v668_v25 = vrot.slane %v657_v20, %v8524_v45 }
 0x695   :  { %v672_v28 = vrot.slane %v664_v22, %v8524_v45  ;;  %v675_v29 = vadd.f32 %v668_v25, %v8530_v50 }
 0x697   :  { %v676_v32 = vadd.f32 %v672_v28, %v8534_v53  ;;  %8082 = vtanh.f32 %v675_v29 }
 0x699   :  { %8084 = vtanh.f32 %v676_v32 }
 0x6a1   :  { %v8083_v34 = vpop.eup %8082 }
 0x6a2   :  { %v679_v36 = vmul.f32 %v8083_v34, %v8542_v57 }
 0x6a3   :  { %v8085_v37 = vpop.eup %8084 }
 0x6a4   :  { %v681_v39 = vsel %vm108_vm0, %v679_v36, 0.0  ;;  %v680_v43 = vmul.f32 %v8085_v37, %v8542_v57 }
 0x6a5   :  { %682 = vadd.xlane.f32.xlu0 %v681_v39 }
 0x6a6   :  { %v684_v44 = vsel %vm108_vm0, %v680_v43, 0.0 }
 0x6a7   :  { %685 = vadd.xlane.f32.xlu1 %v684_v44 }
 0x732   :  { %v683_v46 = vpop.xlane.xlu0 %682 }
 0x733   :  { %v687_v47 = vmul.f32 1.442695, %v683_v46 }
 0x734   :  { %v686_v48 = vpop.xlane.xlu1 %685 }
 0x735   :  { %8086 = vpow2.f32 %v687_v47  ;;  %v689_v49 = vmul.f32 1.442695, %v686_v48  ;;  %v807_v47 = vpop.f32.mrb[2].mxu0 }
 0x736   :  { %v6135_v48 = vpop.f32.mrb[3].mxu0 }
 0x737   :  { %8088 = vpow2.f32 %v689_v49 }
 0x73f   :  { %v8087_v51 = vpop.eup %8086 }
 0x740   :  { %v712_v55 = vrot.slane %v8087_v51, %v8551_v8  ;;  %v691_v4 = vmul.f32 %v8087_v51, %v8421_v5 }
 0x741   :  { %v8089_v54 = vpop.eup %8088 }
 0x742   :  { %v716_v56 = vrot.slane %v8089_v54, %v8551_v8  ;;  %v692_v62 = vmul.f32 %v8089_v54, %v8438_v11  ;;  %v693_v1 = vsel %vm108_vm0, %v691_v4, 0.0 }
 0x743   :  { %v694_v9 = vrot.slane %v693_v1, 4 }
 0x744   :  { %v717_v58 = vsel %vm357_vm2, %v716_v56, %v712_v55  ;;  %v700_v0 = vsel %vm108_vm0, %v692_v62, 0.0 }
 0x745   :  { %v719_v59 = vsel %vm360_vm3, %v717_v58, 0.0  ;;  %v701_v3 = vrot.slane %v700_v0, 4  ;;  %v695_v16 = vadd.f32 %v694_v9, %v693_v1 }
 0x746   :  { %720 = vadd.xlane.f32.xlu0 %v719_v59 }
 0x747   :  { %v702_v14 = vadd.f32 %v701_v3, %v700_v0  ;;  %v696_v20 = vrot.slane %v695_v16, 2 }
 0x749   :  { %v703_v19 = vrot.slane %v702_v14, 2  ;;  %v697_v25 = vadd.f32 %v696_v20, %v695_v16 }
 0x74b   :  { %v704_v22 = vadd.f32 %v703_v19, %v702_v14  ;;  %v698_v29 = vrot.slane %v697_v25, 1 }
 0x74d   :  { %v705_v28 = vrot.slane %v704_v22, 1  ;;  %v699_v37 = vadd.f32 %v698_v29, %v697_v25 }
 0x74f   :  { %v706_v34 = vadd.f32 %v705_v28, %v704_v22 }
 0x7d3   :  { %v721_v17 = vpop.xlane.xlu0 %720 }
 0x7d4   :  { %8090 = vrcp.f32 %v721_v17 }
 0x7de   :  { %v8091_v32 = vpop.eup %8090 }
 0x7df   :  { %v724_v36 = vrot.slane %v8091_v32, 1  ;;  %v727_v43 = vmul.f32 %v8091_v32, %v699_v37 }
 0x7e1   :  { %v728_v39 = vmul.f32 %v724_v36, %v706_v34 }
 0x7e3   :  { %v731_v44 = vrot.slane %v728_v39, 7 }
 0x7e5   :  { %v732_v46 = vsel %vm357_vm2, %v731_v44, %v727_v43 }
 0x7e6   :  { %733 = vrot.lane.b32.xlu0 %v732_v46, %s8331_s0 }
 0x858   :  { %v734_v49 = vpop.permute.xlu0 %733 }
 0x859   :  { %736 = vst.msk [vmem:[#allocation2] sm:$0x3] %vm378_vm8, %v734_v49 }
 0x860   :  { %v737_v51 = vld [vmem:[#allocation2] sm:$0x3] }
 0x861   :  { %6169 = vmatmul.mubr.f32.vlgmr.msra.gmra.mrb[4].mxu0 %v737_v51 }
 0x862   :  { %7367 = vmatpush3.bf16.msk.msra.mxu0 %vm8645_vm6, %v8636_v2  ;;  %6210 = vmatprep.mubr.msk.f32.mxu0 %vm8328_vm1, %v8326_v6 }
 0x863   :  { %7368 = vmatprep.subr.bf16.mxu0 %v8327_v7 }
 0x934   :  { %v877_v54 = vpop.f32.mrb[4].mxu0 }
 0x935   :  { %v878_v55 = vadd.f32 %v877_v54, %v807_v47  ;;  %v6170_v56 = vpop.f32.mrb[5].mxu0 }
 0x937   :  { %v881_v58 = vadd.f32 %v8691_v40, %v878_v55 }
 0x939   :  { %v5372_v59 = vmul.f32 -1.442695, %v881_v58 }
 0x93b   :  { %8092 = vpow2.f32 %v5372_v59 }
 0x93c   :  { %8094 = vtanh.f32 %v881_v58 }
 0x945   :  { %v8093_v60 = vpop.eup %8092 }
 0x946   :  { %v886_v62 = vadd.f32 1.0, %v8093_v60  ;;  %v8095_v4 = vpop.eup %8094 }
 0x948   :  { %8096 = vrcp.f32 %v886_v62 }
 0x952   :  { %v8097_v0 = vpop.eup %8096 }
 0x953   :  { %v889_v1 = vsel %vm8696_vm11, %v8095_v4, %v8097_v0 }
 0x954   :  { %892 = vrot.lane.b32.xlu1 %v889_v1, %s8331_s0  ;;  %v890_v14 = vmul.f32 %v889_v1, %v8704_v63 }
 0x9c6   :  { %v893_v3 = vpop.permute.xlu1 %892 }
 0x9c7   :  { %v895_v9 = vmul.f32 %v893_v3, %v889_v1 }
 0x9c9   :  { %897 = vrot.lane.b32.xlu1 %v895_v9, %s8332_s18 }
 0xa3b   :  { %v898_v16 = vpop.permute.xlu1 %897 }
 0xa3c   :  { %v8786_v17 = vadd.f32 %v898_v16, %v890_v14  ;;  %v5373_v14 = vld [vmem:[%s10002_s2 + $0x4] sm:$0x3] }
 0xa3d   :  { %6211 = vmatmul.mubr.msk.f32.vlgmr.msra.gmra.mrb[6].mxu0 %vm381_vm7, %v5373_v14 }
 0xa3e   :  { %8098 = vtanh.f32 %v8786_v17  ;;  %7370 = vmatpush3.bf16.msra.mxu0 %v8566_v23  ;;  %6245 = vmatprep.mubr.msk.f32.mxu0 %vm8328_vm1, %v8326_v6 }
 0xa3f   :  { %7371 = vmatprep.subr.bf16.mxu0 %v8327_v7 }
 0xa42   :  { %7373 = vmatpush3.bf16.msra.mxu0 %v8572_v26 }
 0xa43   :  { %7374 = vmatprep.subr.bf16.mxu0 %v8327_v7 }
 0xa46   :  { %7376 = vmatpush3.bf16.msra.mxu0 %v8582_v31 }
 0xa47   :  { %7377 = vmatprep.subr.bf16.mxu0 %v8327_v7 }
 0xa48   :  { %v8099_v19 = vpop.eup %8098 }
 0xa49   :  { %903 = vrot.lane.b32.xlu0 %v8099_v19, %s8331_s0 }
 0xa4a   :  { %7379 = vmatpush3.bf16.msra.mxu0 %v8592_v35 }
 0xa4b   :  { %7380 = vmatprep.subr.bf16.mxu0 %v8327_v7 }
 0xa4e   :  { %7382 = vmatpush3.bf16.msra.mxu0 %v8602_v38 }
 0xa4f   :  { %7383 = vmatprep.subr.bf16.mxu0 %v8327_v7 }
 0xa52   :  { %7385 = vmatpush3.bf16.msra.mxu0 %v8612_v41 }
 0xa53   :  { %7386 = vmatprep.subr.bf16.mxu0 %v8327_v7 }
 0xa56   :  { %7388 = vmatpush3.bf16.msra.mxu0 %v8627_v61 }
 0xa57   :  { %7389 = vmatprep.subr.bf16.mxu0 %v8327_v7 }
 0xa5a   :  { %7391 = vmatpush3.bf16.msra.mxu0 %v8649_v13 }
 0xa5b   :  { %7416 = vmatprep.subr.bf16.mxu0 %v8327_v7 }
 0xabb   :  { %v904_v20 = vpop.permute.xlu0 %903 }
 0xabc   :  { %v906_v22 = vmul.f32 %v904_v20, %v889_v1 }
 0xabe   :  { %908 = vrot.lane.b32.xlu1 %v906_v22, %s8332_s18 }
 0xb30   :  { %v909_v25 = vpop.permute.xlu1 %908 }
 0xb31   :  { %911 = vst.msk [vmem:[#allocation2] sm:$0x3] %vm565_vm12, %v909_v25 }
 0xb32   :  { %912 = vst.msk [vmem:[#allocation2] sm:$0x3] %vm567_vm13, %v8786_v17 }
 0xb39   :  { %v915_v28 = vld [vmem:[#allocation2] sm:$0x3] }
 0xb3a   :  { %6204 = vmatmul.mubr.f32.vlgmr.msra.gmra.mrb[8].mxu1 %v915_v28 }
 0xb3b   :  { %7394 = vmatpush3.bf16.msra.mxu1 %v8440_v12  ;;  %6280 = vmatprep.mubr.msk.f32.mxu1 %vm8328_vm1, %v8326_v6 }
 0xb3c   :  { %7395 = vmatprep.subr.bf16.mxu1 %v8327_v7 }
 0xb3f   :  { %7397 = vmatpush3.bf16.msra.mxu1 %v8452_v15 }
 0xb40   :  { %7398 = vmatprep.subr.bf16.mxu1 %v8327_v7 }
 0xb43   :  { %7400 = vmatpush3.bf16.msra.mxu1 %v8464_v18 }
 0xb44   :  { %7401 = vmatprep.subr.bf16.mxu1 %v8327_v7 }
 0xb47   :  { %7403 = vmatpush3.bf16.msra.mxu1 %v8474_v21 }
 0xb48   :  { %7404 = vmatprep.subr.bf16.mxu1 %v8327_v7 }
 0xb4b   :  { %7406 = vmatpush3.bf16.msra.mxu1 %v8484_v24 }
 0xb4c   :  { %7407 = vmatprep.subr.bf16.mxu1 %v8327_v7 }
 0xb4f   :  { %7409 = vmatpush3.bf16.msra.mxu1 %v8494_v27 }
 0xb50   :  { %7410 = vmatprep.subr.bf16.mxu1 %v8327_v7 }
 0xb53   :  { %7412 = vmatpush3.bf16.msra.mxu1 %v8504_v30 }
 0xb54   :  { %7413 = vmatprep.subr.bf16.mxu1 %v8327_v7 }
 0xb57   :  { %7415 = vmatpush3.bf16.msra.mxu1 %v8514_v33 }
 0xb58   :  { %7444 = vmatprep.subr.bf16.mxu1 %v8327_v7 }
 0xc0d   :  { %v982_v63 = vpop.f32.mrb[8].mxu1 }
 0xc0e   :  { %v993_v29 = vrot.slane %v982_v63, %v8521_v42  ;;  %v6205_v32 = vpop.f32.mrb[9].mxu1 }
 0xc10   :  { %v994_v34 = vcombine.high %v993_v29, %v993_v29  ;;  %v1001_v36 = vrot.slane %v993_v29, %v8521_v42 }
 0xc12   :  { %v1008_v37 = vrot.slane %v994_v34, %v8521_v42  ;;  %v1012_v39 = vrot.slane %v1001_v36, %v8524_v45 }
 0xc14   :  { %v1016_v43 = vrot.slane %v1008_v37, %v8524_v45  ;;  %v1019_v44 = vadd.f32 %v1012_v39, %v8530_v50 }
 0xc16   :  { %v1020_v46 = vadd.f32 %v1016_v43, %v8534_v53  ;;  %8100 = vtanh.f32 %v1019_v44 }
 0xc18   :  { %8102 = vtanh.f32 %v1020_v46 }
 0xc20   :  { %v8101_v47 = vpop.eup %8100 }
 0xc21   :  { %v1023_v48 = vmul.f32 %v8101_v47, %v8542_v57 }
 0xc22   :  { %v8103_v49 = vpop.eup %8102 }
 0xc23   :  { %v1025_v51 = vsel %vm108_vm0, %v1023_v48, 0.0  ;;  %v1024_v54 = vmul.f32 %v8103_v49, %v8542_v57 }
 0xc24   :  { %1026 = vadd.xlane.f32.xlu0 %v1025_v51 }
 0xc25   :  { %v1028_v55 = vsel %vm108_vm0, %v1024_v54, 0.0 }
 0xc26   :  { %1029 = vadd.xlane.f32.xlu1 %v1028_v55  ;;  %v1151_v55 = vpop.f32.mrb[6].mxu0 }
 0xcb1   :  { %v1027_v56 = vpop.xlane.xlu0 %1026 }
 0xcb2   :  { %v1031_v58 = vmul.f32 1.442695, %v1027_v56  ;;  %v6212_v56 = vpop.f32.mrb[7].mxu0 }
 0xcb3   :  { %v1030_v59 = vpop.xlane.xlu1 %1029 }
 0xcb4   :  { %8104 = vpow2.f32 %v1031_v58  ;;  %v1033_v60 = vmul.f32 1.442695, %v1030_v59 }
 0xcb6   :  { %8106 = vpow2.f32 %v1033_v60 }
 0xcbe   :  { %v8105_v62 = vpop.eup %8104 }
 0xcbf   :  { %v1056_v0 = vrot.slane %v8105_v62, %v8551_v8  ;;  %v1035_v19 = vmul.f32 %v8105_v62, %v8421_v5 }
 0xcc0   :  { %v8107_v4 = vpop.eup %8106 }
 0xcc1   :  { %v1060_v1 = vrot.slane %v8107_v4, %v8551_v8  ;;  %v1036_v16 = vmul.f32 %v8107_v4, %v8438_v11  ;;  %v1037_v22 = vsel %vm108_vm0, %v1035_v19, 0.0 }
 0xcc2   :  { %v1038_v28 = vrot.slane %v1037_v22, 4 }
 0xcc3   :  { %v1061_v3 = vsel %vm357_vm2, %v1060_v1, %v1056_v0  ;;  %v1044_v20 = vsel %vm108_vm0, %v1036_v16, 0.0 }
 0xcc4   :  { %v1063_v9 = vsel %vm360_vm3, %v1061_v3, 0.0  ;;  %v1045_v25 = vrot.slane %v1044_v20, 4  ;;  %v1039_v29 = vadd.f32 %v1038_v28, %v1037_v22 }
 0xcc5   :  { %1064 = vadd.xlane.f32.xlu0 %v1063_v9 }
 0xcc6   :  { %v1046_v63 = vadd.f32 %v1045_v25, %v1044_v20  ;;  %v1040_v36 = vrot.slane %v1039_v29, 2 }
 0xcc8   :  { %v1047_v34 = vrot.slane %v1046_v63, 2  ;;  %v1041_v39 = vadd.f32 %v1040_v36, %v1039_v29 }
 0xcca   :  { %v1048_v37 = vadd.f32 %v1047_v34, %v1046_v63  ;;  %v1042_v44 = vrot.slane %v1041_v39, 1 }
 0xccc   :  { %v1049_v43 = vrot.slane %v1048_v37, 1  ;;  %v1043_v5 = vadd.f32 %v1042_v44, %v1041_v39 }
 0xcce   :  { %v1050_v11 = vadd.f32 %v1049_v43, %v1048_v37 }
 0xd52   :  { %v1065_v32 = vpop.xlane.xlu0 %1064 }
 0xd53   :  { %8108 = vrcp.f32 %v1065_v32 }
 0xd5d   :  { %v8109_v46 = vpop.eup %8108 }
 0xd5e   :  { %v1068_v47 = vrot.slane %v8109_v46, 1  ;;  %v1071_v49 = vmul.f32 %v8109_v46, %v1043_v5 }
 0xd60   :  { %v1072_v48 = vmul.f32 %v1068_v47, %v1050_v11 }
 0xd62   :  { %v1075_v51 = vrot.slane %v1072_v48, 7 }
 0xd64   :  { %v1076_v54 = vsel %vm357_vm2, %v1075_v51, %v1071_v49 }
 0xd65   :  { %1077 = vrot.lane.b32.xlu0 %v1076_v54, %s8331_s0 }
 0xdd7   :  { %v1078_v58 = vpop.permute.xlu0 %1077 }
 0xdd8   :  { %1080 = vst.msk [vmem:[#allocation2] sm:$0x3] %vm378_vm8, %v1078_v58 }
 0xddf   :  { %v1081_v59 = vld [vmem:[#allocation2] sm:$0x3] }
 0xde0   :  { %6246 = vmatmul.mubr.f32.vlgmr.msra.gmra.mrb[8].mxu0 %v1081_v59 }
 0xde1   :  { %7419 = vmatpush3.bf16.msk.msra.mxu0 %vm8645_vm6, %v8636_v2  ;;  %6287 = vmatprep.mubr.msk.f32.mxu0 %vm8328_vm1, %v8326_v6 }
 0xde2   :  { %7420 = vmatprep.subr.bf16.mxu0 %v8327_v7 }
 0xeb3   :  { %v1221_v60 = vpop.f32.mrb[8].mxu0 }
 0xeb4   :  { %v1222_v62 = vadd.f32 %v1221_v60, %v1151_v55  ;;  %v6247_v4 = vpop.f32.mrb[9].mxu0 }
 0xeb6   :  { %v1225_v0 = vadd.f32 %v8691_v40, %v1222_v62 }
 0xeb8   :  { %v5376_v1 = vmul.f32 -1.442695, %v1225_v0 }
 0xeba   :  { %8110 = vpow2.f32 %v5376_v1 }
 0xebb   :  { %8112 = vtanh.f32 %v1225_v0 }
 0xec4   :  { %v8111_v3 = vpop.eup %8110 }
 0xec5   :  { %v1230_v9 = vadd.f32 1.0, %v8111_v3  ;;  %v8113_v14 = vpop.eup %8112 }
 0xec7   :  { %8114 = vrcp.f32 %v1230_v9 }
 0xed1   :  { %v8115_v16 = vpop.eup %8114 }
 0xed2   :  { %v1233_v19 = vsel %vm8696_vm11, %v8113_v14, %v8115_v16 }
 0xed3   :  { %1236 = vrot.lane.b32.xlu1 %v1233_v19, %s8331_s0  ;;  %v1234_v25 = vmul.f32 %v1233_v19, %v8786_v17 }
 0xf45   :  { %v1237_v20 = vpop.permute.xlu1 %1236 }
 0xf46   :  { %v1239_v22 = vmul.f32 %v1237_v20, %v1233_v19  ;;  %v8934_v20 = vld [vmem:[%s10001_s1 + $0x8] sm:$0xff] }
 0xf48   :  { %1241 = vrot.lane.b32.xlu1 %v1239_v22, %s8332_s18 }
 0xfba   :  { %v1242_v28 = vpop.permute.xlu1 %1241 }
 0xfbb   :  { %v8868_v63 = vadd.f32 %v1242_v28, %v1234_v25  ;;  %v8940_v25 = vld [vmem:[%s10001_s1] sm:$0xff] }
 0xfbd   :  { %8116 = vtanh.f32 %v8868_v63 }
 0xfc7   :  { %v8117_v29 = vpop.eup %8116 }
 0xfc8   :  { %1247 = vrot.lane.b32.xlu0 %v8117_v29, %s8331_s0 }
0x103a   :  { %v1248_v32 = vpop.permute.xlu0 %1247 }
0x103b   :  { %v1250_v34 = vmul.f32 %v1248_v32, %v1233_v19  ;;  %v5377_v19 = vld [vmem:[%s10002_s2 + $0x6] sm:$0x3] }
0x103c   :  { %6288 = vmatmul.mubr.msk.f32.vlgmr.msra.gmra.mrb[10].mxu0 %vm381_vm7, %v5377_v19 }
0x103d   :  { %1252 = vrot.lane.b32.xlu1 %v1250_v34, %s8332_s18  ;;  %7422 = vmatpush3.bf16.msra.mxu0 %v8566_v23 }
0x103e   :  { %6322 = vmatprep.mubr.msk.f32.mxu0 %vm8328_vm1, %v8326_v6  ;;  %7423 = vmatprep.subr.bf16.mxu0 %v8327_v7 }
0x1041   :  { %7425 = vmatpush3.bf16.msra.mxu0 %v8572_v26 }
0x1042   :  { %7426 = vmatprep.subr.bf16.mxu0 %v8327_v7 }
0x1045   :  { %7428 = vmatpush3.bf16.msra.mxu0 %v8582_v31 }
0x1046   :  { %7429 = vmatprep.subr.bf16.mxu0 %v8327_v7 }
0x1049   :  { %7431 = vmatpush3.bf16.msra.mxu0 %v8592_v35 }
0x104a   :  { %7432 = vmatprep.subr.bf16.mxu0 %v8327_v7 }
0x104d   :  { %7434 = vmatpush3.bf16.msra.mxu0 %v8602_v38 }
0x104e   :  { %7435 = vmatprep.subr.bf16.mxu0 %v8327_v7 }
0x1051   :  { %7437 = vmatpush3.bf16.msra.mxu0 %v8612_v41 }
0x1052   :  { %7438 = vmatprep.subr.bf16.mxu0 %v8327_v7 }
0x1055   :  { %7440 = vmatpush3.bf16.msra.mxu0 %v8627_v61 }
0x1056   :  { %7441 = vmatprep.subr.bf16.mxu0 %v8327_v7 }
0x1059   :  { %7443 = vmatpush3.bf16.msra.mxu0 %v8649_v13 }
0x105a   :  { %7468 = vmatprep.subr.bf16.mxu0 %v8327_v7 }
0x10af   :  { %v1253_v36 = vpop.permute.xlu1 %1252 }
0x10b0   :  { %1255 = vst.msk [vmem:[#allocation2] sm:$0x3] %vm565_vm12, %v1253_v36 }
0x10b1   :  { %1256 = vst.msk [vmem:[#allocation2] sm:$0x3] %vm567_vm13, %v8868_v63 }
0x10b8   :  { %v1259_v37 = vld [vmem:[#allocation2] sm:$0x3] }
0x10b9   :  { %6281 = vmatmul.mubr.f32.vlgmr.msra.gmra.mrb[10].mxu1 %v1259_v37 }
0x10ba   :  { %7446 = vmatpush3.bf16.msra.mxu1 %v8440_v12  ;;  %6357 = vmatprep.mubr.msk.f32.mxu1 %vm8328_vm1, %v8326_v6 }
0x10bb   :  { %7447 = vmatprep.subr.bf16.mxu1 %v8327_v7 }
0x10be   :  { %7449 = vmatpush3.bf16.msra.mxu1 %v8452_v15 }
0x10bf   :  { %7450 = vmatprep.subr.bf16.mxu1 %v8327_v7 }
0x10c2   :  { %7452 = vmatpush3.bf16.msra.mxu1 %v8464_v18 }
0x10c3   :  { %7453 = vmatprep.subr.bf16.mxu1 %v8327_v7 }
0x10c6   :  { %7455 = vmatpush3.bf16.msra.mxu1 %v8474_v21 }
0x10c7   :  { %7456 = vmatprep.subr.bf16.mxu1 %v8327_v7 }
0x10ca   :  { %7458 = vmatpush3.bf16.msra.mxu1 %v8484_v24 }
0x10cb   :  { %7459 = vmatprep.subr.bf16.mxu1 %v8327_v7 }
0x10ce   :  { %7461 = vmatpush3.bf16.msra.mxu1 %v8494_v27 }
0x10cf   :  { %7462 = vmatprep.subr.bf16.mxu1 %v8327_v7 }
0x10d2   :  { %7464 = vmatpush3.bf16.msra.mxu1 %v8504_v30 }
0x10d3   :  { %7465 = vmatprep.subr.bf16.mxu1 %v8327_v7 }
0x10d6   :  { %7467 = vmatpush3.bf16.msra.mxu1 %v8514_v33 }
0x10d7   :  { %7496 = vmatprep.subr.bf16.mxu1 %v8327_v7 }
0x118c   :  { %v1326_v17 = vpop.f32.mrb[10].mxu1 }
0x118d   :  { %v1337_v39 = vrot.slane %v1326_v17, %v8521_v42  ;;  %v6282_v43 = vpop.f32.mrb[11].mxu1 }
0x118f   :  { %v1338_v44 = vcombine.high %v1337_v39, %v1337_v39  ;;  %v1345_v46 = vrot.slane %v1337_v39, %v8521_v42 }
0x1191   :  { %v1352_v11 = vrot.slane %v1338_v44, %v8521_v42  ;;  %v1356_v47 = vrot.slane %v1345_v46, %v8524_v45 }
0x1193   :  { %v1360_v5 = vrot.slane %v1352_v11, %v8524_v45  ;;  %v1363_v48 = vadd.f32 %v1356_v47, %v8530_v50 }
0x1195   :  { %v1364_v49 = vadd.f32 %v1360_v5, %v8534_v53  ;;  %8118 = vtanh.f32 %v1363_v48 }
0x1197   :  { %8120 = vtanh.f32 %v1364_v49 }
0x119f   :  { %v8119_v51 = vpop.eup %8118 }
0x11a0   :  { %v1367_v54 = vmul.f32 %v8119_v51, %v8542_v57 }
0x11a1   :  { %v8121_v55 = vpop.eup %8120 }
0x11a2   :  { %v1369_v56 = vsel %vm108_vm0, %v1367_v54, 0.0  ;;  %v1368_v58 = vmul.f32 %v8121_v55, %v8542_v57 }
0x11a3   :  { %1370 = vadd.xlane.f32.xlu0 %v1369_v56 }
0x11a4   :  { %v1372_v59 = vsel %vm108_vm0, %v1368_v58, 0.0 }
0x11a5   :  { %1373 = vadd.xlane.f32.xlu1 %v1372_v59 }
0x1230   :  { %v1371_v60 = vpop.xlane.xlu0 %1370 }
0x1231   :  { %v1375_v62 = vmul.f32 1.442695, %v1371_v60  ;;  %v1495_v60 = vpop.f32.mrb[10].mxu0 }
0x1232   :  { %v1374_v4 = vpop.xlane.xlu1 %1373 }
0x1233   :  { %8122 = vpow2.f32 %v1375_v62  ;;  %v1377_v0 = vmul.f32 1.442695, %v1374_v4  ;;  %v6289_v62 = vpop.f32.mrb[11].mxu0 }
0x1235   :  { %8124 = vpow2.f32 %v1377_v0 }
0x123d   :  { %v8123_v1 = vpop.eup %8122 }
0x123e   :  { %v1400_v9 = vrot.slane %v8123_v1, %v8551_v8  ;;  %v1379_v28 = vmul.f32 %v8940_v25, %v8123_v1 }
0x123f   :  { %v8125_v3 = vpop.eup %8124 }
0x1240   :  { %v1404_v14 = vrot.slane %v8125_v3, %v8551_v8  ;;  %v1380_v22 = vmul.f32 %v8934_v20, %v8125_v3  ;;  %v1381_v32 = vsel %vm108_vm0, %v1379_v28, 0.0 }
0x1241   :  { %v1382_v36 = vrot.slane %v1381_v32, 4 }
0x1242   :  { %v1405_v16 = vsel %vm357_vm2, %v1404_v14, %v1400_v9  ;;  %v1388_v29 = vsel %vm108_vm0, %v1380_v22, 0.0 }
0x1243   :  { %v1407_v57 = vsel %vm360_vm3, %v1405_v16, 0.0  ;;  %v1389_v34 = vrot.slane %v1388_v29, 4  ;;  %v1383_v17 = vadd.f32 %v1382_v36, %v1381_v32 }
0x1244   :  { %1408 = vadd.xlane.f32.xlu0 %v1407_v57 }
0x1245   :  { %v1390_v37 = vadd.f32 %v1389_v34, %v1388_v29  ;;  %v1384_v44 = vrot.slane %v1383_v17, 2 }
0x1247   :  { %v1391_v43 = vrot.slane %v1390_v37, 2  ;;  %v1385_v11 = vadd.f32 %v1384_v44, %v1383_v17 }
0x1249   :  { %v1392_v46 = vadd.f32 %v1391_v43, %v1390_v37  ;;  %v1386_v5 = vrot.slane %v1385_v11, 1 }
0x124b   :  { %v1393_v47 = vrot.slane %v1392_v46, 1  ;;  %v1387_v54 = vadd.f32 %v1386_v5, %v1385_v11 }
0x124d   :  { %v1394_v49 = vadd.f32 %v1393_v47, %v1392_v46 }
0x12d1   :  { %v1409_v39 = vpop.xlane.xlu0 %1408 }
0x12d2   :  { %8126 = vrcp.f32 %v1409_v39 }
0x12dc   :  { %v8127_v48 = vpop.eup %8126 }
0x12dd   :  { %v1412_v51 = vrot.slane %v8127_v48, 1  ;;  %v1415_v56 = vmul.f32 %v8127_v48, %v1387_v54 }
0x12df   :  { %v1416_v55 = vmul.f32 %v1412_v51, %v1394_v49 }
0x12e1   :  { %v1419_v58 = vrot.slane %v1416_v55, 7 }
0x12e3   :  { %v1420_v59 = vsel %vm357_vm2, %v1419_v58, %v1415_v56 }
0x12e4   :  { %1421 = vrot.lane.b32.xlu0 %v1420_v59, %s8331_s0  ;;  %v8996_v59 = vld [vmem:[%s10006_s6] ss:$0 sm:$0xff] }
0x1356   :  { %v1422_v4 = vpop.permute.xlu0 %1421 }
0x1357   :  { %1424 = vst.msk [vmem:[#allocation2] sm:$0x3] %vm378_vm8, %v1422_v4 }
0x135e   :  { %v1425_v0 = vld [vmem:[#allocation2] sm:$0x3] }
0x135f   :  { %6323 = vmatmul.mubr.f32.vlgmr.msra.gmra.mrb[12].mxu0 %v1425_v0 }
0x1360   :  { %7471 = vmatpush3.bf16.msk.msra.mxu0 %vm8645_vm6, %v8636_v2  ;;  %6364 = vmatprep.mubr.msk.f32.mxu0 %vm8328_vm1, %v8326_v6 }
0x1361   :  { %7472 = vmatprep.subr.bf16.mxu0 %v8327_v7 }
0x1432   :  { %v1565_v1 = vpop.f32.mrb[12].mxu0 }
0x1433   :  { %v1566_v3 = vadd.f32 %v1565_v1, %v1495_v60  ;;  %v6324_v9 = vpop.f32.mrb[13].mxu0 }
0x1435   :  { %v1569_v14 = vadd.f32 %v8691_v40, %v1566_v3 }
0x1437   :  { %v5380_v16 = vmul.f32 -1.442695, %v1569_v14 }
0x1439   :  { %8128 = vpow2.f32 %v5380_v16 }
0x143a   :  { %8130 = vtanh.f32 %v1569_v14 }
0x1443   :  { %v8129_v57 = vpop.eup %8128 }
0x1444   :  { %v1574_v19 = vadd.f32 1.0, %v8129_v57  ;;  %v8131_v22 = vpop.eup %8130 }
0x1446   :  { %8132 = vrcp.f32 %v1574_v19 }
0x1450   :  { %v8133_v28 = vpop.eup %8132 }
0x1451   :  { %v1577_v29 = vsel %vm8696_vm11, %v8131_v22, %v8133_v28 }
0x1452   :  { %1580 = vrot.lane.b32.xlu1 %v1577_v29, %s8331_s0  ;;  %v1578_v36 = vmul.f32 %v1577_v29, %v8868_v63 }
0x14c4   :  { %v1581_v32 = vpop.permute.xlu1 %1580 }
0x14c5   :  { %v1583_v34 = vmul.f32 %v1581_v32, %v1577_v29 }
0x14c7   :  { %1585 = vrot.lane.b32.xlu1 %v1583_v34, %s8332_s18  ;;  %v5381_v34 = vld [vmem:[%s10002_s2 + $0x8] sm:$0x3] }
0x14c8   :  { %6365 = vmatmul.mubr.msk.f32.vlgmr.msra.gmra.mrb[14].mxu0 %vm381_vm7, %v5381_v34 }
0x14c9   :  { %7474 = vmatpush3.bf16.msra.mxu0 %v8566_v23  ;;  %6399 = vmatprep.mubr.msk.f32.mxu0 %vm8328_vm1, %v8326_v6 }
0x14ca   :  { %7475 = vmatprep.subr.bf16.mxu0 %v8327_v7 }
0x14cd   :  { %7477 = vmatpush3.bf16.msra.mxu0 %v8572_v26 }
0x14ce   :  { %7478 = vmatprep.subr.bf16.mxu0 %v8327_v7 }
0x14d1   :  { %7480 = vmatpush3.bf16.msra.mxu0 %v8582_v31 }
0x14d2   :  { %7481 = vmatprep.subr.bf16.mxu0 %v8327_v7 }
0x14d5   :  { %7483 = vmatpush3.bf16.msra.mxu0 %v8592_v35 }
0x14d6   :  { %7484 = vmatprep.subr.bf16.mxu0 %v8327_v7 }
0x14d9   :  { %7486 = vmatpush3.bf16.msra.mxu0 %v8602_v38 }
0x14da   :  { %7487 = vmatprep.subr.bf16.mxu0 %v8327_v7 }
0x14dd   :  { %7489 = vmatpush3.bf16.msra.mxu0 %v8612_v41 }
0x14de   :  { %7490 = vmatprep.subr.bf16.mxu0 %v8327_v7 }
0x14e1   :  { %7492 = vmatpush3.bf16.msra.mxu0 %v8627_v61 }
0x14e2   :  { %7493 = vmatprep.subr.bf16.mxu0 %v8327_v7 }
0x14e5   :  { %7495 = vmatpush3.bf16.msra.mxu0 %v8649_v13 }
0x14e6   :  { %7520 = vmatprep.subr.bf16.mxu0 %v8327_v7 }
0x1539   :  { %v1586_v40 = vpop.permute.xlu1 %1585 }
0x153a   :  { %v8960_v37 = vadd.f32 %v1586_v40, %v1578_v36 }
0x153c   :  { %8134 = vtanh.f32 %v8960_v37 }
0x1546   :  { %v8135_v17 = vpop.eup %8134 }
0x1547   :  { %1591 = vrot.lane.b32.xlu0 %v8135_v17, %s8331_s0 }
0x15b9   :  { %v1592_v39 = vpop.permute.xlu0 %1591 }
0x15ba   :  { %v1594_v43 = vmul.f32 %v1592_v39, %v1577_v29 }
0x15bc   :  { %1596 = vrot.lane.b32.xlu1 %v1594_v43, %s8332_s18 }
0x162e   :  { %v1597_v44 = vpop.permute.xlu1 %1596 }
0x162f   :  { %1599 = vst.msk [vmem:[#allocation2] sm:$0x3] %vm565_vm12, %v1597_v44 }
0x1630   :  { %1600 = vst.msk [vmem:[#allocation2] sm:$0x3] %vm567_vm13, %v8960_v37 }
0x1637   :  { %v1603_v46 = vld [vmem:[#allocation2] sm:$0x3] }
0x1638   :  { %6358 = vmatmul.mubr.f32.vlgmr.msra.gmra.mrb[12].mxu1 %v1603_v46 }
0x1639   :  { %7498 = vmatpush3.bf16.msra.mxu1 %v8440_v12  ;;  %6434 = vmatprep.mubr.msk.f32.mxu1 %vm8328_vm1, %v8326_v6 }
0x163a   :  { %7499 = vmatprep.subr.bf16.mxu1 %v8327_v7 }
0x163d   :  { %7501 = vmatpush3.bf16.msra.mxu1 %v8452_v15 }
0x163e   :  { %7502 = vmatprep.subr.bf16.mxu1 %v8327_v7 }
0x1641   :  { %7504 = vmatpush3.bf16.msra.mxu1 %v8464_v18 }
0x1642   :  { %7505 = vmatprep.subr.bf16.mxu1 %v8327_v7 }
0x1645   :  { %7507 = vmatpush3.bf16.msra.mxu1 %v8474_v21 }
0x1646   :  { %7508 = vmatprep.subr.bf16.mxu1 %v8327_v7 }
0x1649   :  { %7510 = vmatpush3.bf16.msra.mxu1 %v8484_v24 }
0x164a   :  { %7511 = vmatprep.subr.bf16.mxu1 %v8327_v7 }
0x164d   :  { %7513 = vmatpush3.bf16.msra.mxu1 %v8494_v27 }
0x164e   :  { %7514 = vmatprep.subr.bf16.mxu1 %v8327_v7 }
0x1651   :  { %7516 = vmatpush3.bf16.msra.mxu1 %v8504_v30 }
0x1652   :  { %7517 = vmatprep.subr.bf16.mxu1 %v8327_v7 }
0x1655   :  { %7519 = vmatpush3.bf16.msra.mxu1 %v8514_v33 }
0x1656   :  { %7548 = vmatprep.subr.bf16.mxu1 %v8327_v7 }
0x170b   :  { %v1670_v63 = vpop.f32.mrb[12].mxu1 }
0x170c   :  { %v1681_v11 = vrot.slane %v1670_v63, %v8521_v42  ;;  %v6359_v47 = vpop.f32.mrb[13].mxu1 }
0x170e   :  { %v1682_v5 = vcombine.high %v1681_v11, %v1681_v11  ;;  %v1689_v48 = vrot.slane %v1681_v11, %v8521_v42 }
0x1710   :  { %v1696_v49 = vrot.slane %v1682_v5, %v8521_v42  ;;  %v1700_v51 = vrot.slane %v1689_v48, %v8524_v45 }
0x1712   :  { %v1704_v54 = vrot.slane %v1696_v49, %v8524_v45  ;;  %v1707_v55 = vadd.f32 %v1700_v51, %v8530_v50 }
0x1714   :  { %v1708_v56 = vadd.f32 %v1704_v54, %v8534_v53  ;;  %8136 = vtanh.f32 %v1707_v55 }
0x1716   :  { %8138 = vtanh.f32 %v1708_v56 }
0x171e   :  { %v8137_v58 = vpop.eup %8136 }
0x171f   :  { %v1711_v60 = vmul.f32 %v8996_v59, %v8137_v58 }
0x1720   :  { %v8139_v62 = vpop.eup %8138 }
0x1721   :  { %v1713_v4 = vsel %vm108_vm0, %v1711_v60, 0.0  ;;  %v1712_v0 = vmul.f32 %v8996_v59, %v8139_v62 }
0x1722   :  { %1714 = vadd.xlane.f32.xlu0 %v1713_v4 }
0x1723   :  { %v1716_v1 = vsel %vm108_vm0, %v1712_v0, 0.0 }
0x1724   :  { %1717 = vadd.xlane.f32.xlu1 %v1716_v1 }
0x17af   :  { %v1715_v3 = vpop.xlane.xlu0 %1714 }
0x17b0   :  { %v1719_v9 = vmul.f32 1.442695, %v1715_v3  ;;  %v1839_v3 = vpop.f32.mrb[14].mxu0 }
0x17b1   :  { %v1718_v14 = vpop.xlane.xlu1 %1717 }
0x17b2   :  { %8140 = vpow2.f32 %v1719_v9  ;;  %v1721_v16 = vmul.f32 1.442695, %v1718_v14  ;;  %v6366_v9 = vpop.f32.mrb[15].mxu0 }
0x17b4   :  { %8142 = vpow2.f32 %v1721_v16 }
0x17bc   :  { %v8141_v57 = vpop.eup %8140 }
0x17bd   :  { %v1744_v22 = vrot.slane %v8141_v57, %v8551_v8  ;;  %v1723_v40 = vmul.f32 %v8940_v25, %v8141_v57 }
0x17be   :  { %v8143_v19 = vpop.eup %8142 }
0x17bf   :  { %v1748_v28 = vrot.slane %v8143_v19, %v8551_v8  ;;  %v1724_v36 = vmul.f32 %v8934_v20, %v8143_v19  ;;  %v1725_v39 = vsel %vm108_vm0, %v1723_v40, 0.0 }
0x17c0   :  { %v1726_v44 = vrot.slane %v1725_v39, 4 }
0x17c1   :  { %v1749_v29 = vsel %vm357_vm2, %v1748_v28, %v1744_v22  ;;  %v1732_v17 = vsel %vm108_vm0, %v1724_v36, 0.0  ;;  %v9044_v28 = vld [vmem:[%s10010_s10] ss:$0 sm:$0xff] }
0x17c2   :  { %v1751_v32 = vsel %vm360_vm3, %v1749_v29, 0.0  ;;  %v1733_v43 = vrot.slane %v1732_v17, 4  ;;  %v1727_v63 = vadd.f32 %v1726_v44, %v1725_v39 }
0x17c3   :  { %1752 = vadd.xlane.f32.xlu0 %v1751_v32 }
0x17c4   :  { %v1734_v46 = vadd.f32 %v1733_v43, %v1732_v17  ;;  %v1728_v5 = vrot.slane %v1727_v63, 2 }
0x17c6   :  { %v1735_v47 = vrot.slane %v1734_v46, 2  ;;  %v1729_v49 = vadd.f32 %v1728_v5, %v1727_v63 }
0x17c8   :  { %v1736_v48 = vadd.f32 %v1735_v47, %v1734_v46  ;;  %v1730_v54 = vrot.slane %v1729_v49, 1 }
0x17ca   :  { %v1737_v51 = vrot.slane %v1736_v48, 1  ;;  %v1731_v60 = vadd.f32 %v1730_v54, %v1729_v49 }
0x17cc   :  { %v1738_v56 = vadd.f32 %v1737_v51, %v1736_v48 }
0x1850   :  { %v1753_v11 = vpop.xlane.xlu0 %1752 }
0x1851   :  { %8144 = vrcp.f32 %v1753_v11 }
0x185b   :  { %v8145_v55 = vpop.eup %8144 }
0x185c   :  { %v1756_v58 = vrot.slane %v8145_v55, 1  ;;  %v1759_v4 = vmul.f32 %v8145_v55, %v1731_v60 }
0x185e   :  { %v1760_v62 = vmul.f32 %v1756_v58, %v1738_v56 }
0x1860   :  { %v1763_v0 = vrot.slane %v1760_v62, 7 }
0x1862   :  { %v1764_v1 = vsel %vm357_vm2, %v1763_v0, %v1759_v4 }
0x1863   :  { %1765 = vrot.lane.b32.xlu0 %v1764_v1, %s8331_s0 }
0x18d5   :  { %v1766_v14 = vpop.permute.xlu0 %1765 }
0x18d6   :  { %1768 = vst.msk [vmem:[#allocation2] sm:$0x3] %vm378_vm8, %v1766_v14 }
0x18dd   :  { %v1769_v16 = vld [vmem:[#allocation2] sm:$0x3] }
0x18de   :  { %6400 = vmatmul.mubr.f32.vlgmr.msra.gmra.mrb[16].mxu0 %v1769_v16 }
0x18df   :  { %7523 = vmatpush3.bf16.msk.msra.mxu0 %vm8645_vm6, %v8636_v2  ;;  %6441 = vmatprep.mubr.msk.f32.mxu0 %vm8328_vm1, %v8326_v6 }
0x18e0   :  { %7524 = vmatprep.subr.bf16.mxu0 %v8327_v7 }
0x19b1   :  { %v1909_v57 = vpop.f32.mrb[16].mxu0 }
0x19b2   :  { %v1910_v19 = vadd.f32 %v1909_v57, %v1839_v3  ;;  %v6401_v22 = vpop.f32.mrb[17].mxu0 }
0x19b4   :  { %v1913_v29 = vadd.f32 %v9044_v28, %v1910_v19 }
0x19b6   :  { %v5384_v32 = vmul.f32 -1.442695, %v1913_v29 }
0x19b8   :  { %8146 = vpow2.f32 %v5384_v32 }
0x19b9   :  { %8148 = vtanh.f32 %v1913_v29 }
0x19c2   :  { %v8147_v34 = vpop.eup %8146 }
0x19c3   :  { %v1918_v36 = vadd.f32 1.0, %v8147_v34  ;;  %v8149_v40 = vpop.eup %8148 }
0x19c5   :  { %8150 = vrcp.f32 %v1918_v36 }
0x19cf   :  { %v8151_v17 = vpop.eup %8150 }
0x19d0   :  { %v1921_v39 = vsel %vm8696_vm11, %v8149_v40, %v8151_v17 }
0x19d1   :  { %1924 = vrot.lane.b32.xlu1 %v1921_v39, %s8331_s0  ;;  %v1922_v46 = vmul.f32 %v1921_v39, %v8960_v37 }
0x1a43   :  { %v1925_v43 = vpop.permute.xlu1 %1924 }
0x1a44   :  { %v1927_v44 = vmul.f32 %v1925_v43, %v1921_v39 }
0x1a46   :  { %1929 = vrot.lane.b32.xlu1 %v1927_v44, %s8332_s18 }
0x1ab8   :  { %v1930_v63 = vpop.permute.xlu1 %1929 }
0x1ab9   :  { %v9052_v11 = vadd.f32 %v1930_v63, %v1922_v46  ;;  %v5385_v46 = vld [vmem:[%s10002_s2 + $0xa] sm:$0x3] }
0x1aba   :  { %6442 = vmatmul.mubr.msk.f32.vlgmr.msra.gmra.mrb[18].mxu0 %vm381_vm7, %v5385_v46 }
0x1abb   :  { %8152 = vtanh.f32 %v9052_v11  ;;  %7526 = vmatpush3.bf16.msra.mxu0 %v8566_v23  ;;  %6476 = vmatprep.mubr.msk.f32.mxu0 %vm8328_vm1, %v8326_v6 }
0x1abc   :  { %7527 = vmatprep.subr.bf16.mxu0 %v8327_v7 }
0x1abf   :  { %7529 = vmatpush3.bf16.msra.mxu0 %v8572_v26 }
0x1ac0   :  { %7530 = vmatprep.subr.bf16.mxu0 %v8327_v7 }
0x1ac3   :  { %7532 = vmatpush3.bf16.msra.mxu0 %v8582_v31 }
0x1ac4   :  { %7533 = vmatprep.subr.bf16.mxu0 %v8327_v7 }
0x1ac5   :  { %v8153_v47 = vpop.eup %8152 }
0x1ac6   :  { %1935 = vrot.lane.b32.xlu0 %v8153_v47, %s8331_s0 }
0x1ac7   :  { %7535 = vmatpush3.bf16.msra.mxu0 %v8592_v35 }
0x1ac8   :  { %7536 = vmatprep.subr.bf16.mxu0 %v8327_v7 }
0x1acb   :  { %7538 = vmatpush3.bf16.msra.mxu0 %v8602_v38 }
0x1acc   :  { %7539 = vmatprep.subr.bf16.mxu0 %v8327_v7 }
0x1acf   :  { %7541 = vmatpush3.bf16.msra.mxu0 %v8612_v41 }
0x1ad0   :  { %7542 = vmatprep.subr.bf16.mxu0 %v8327_v7 }
0x1ad3   :  { %7544 = vmatpush3.bf16.msra.mxu0 %v8627_v61 }
0x1ad4   :  { %7545 = vmatprep.subr.bf16.mxu0 %v8327_v7 }
0x1ad7   :  { %7547 = vmatpush3.bf16.msra.mxu0 %v8649_v13 }
0x1ad8   :  { %7572 = vmatprep.subr.bf16.mxu0 %v8327_v7 }
0x1b38   :  { %v1936_v5 = vpop.permute.xlu0 %1935 }
0x1b39   :  { %v1938_v48 = vmul.f32 %v1936_v5, %v1921_v39 }
0x1b3b   :  { %1940 = vrot.lane.b32.xlu1 %v1938_v48, %s8332_s18 }
0x1bad   :  { %v1941_v49 = vpop.permute.xlu1 %1940 }
0x1bae   :  { %1943 = vst.msk [vmem:[#allocation2] sm:$0x3] %vm565_vm12, %v1941_v49 }
0x1baf   :  { %1944 = vst.msk [vmem:[#allocation2] sm:$0x3] %vm567_vm13, %v9052_v11 }
0x1bb6   :  { %v1947_v51 = vld [vmem:[#allocation2] sm:$0x3] }
0x1bb7   :  { %6435 = vmatmul.mubr.f32.vlgmr.msra.gmra.mrb[14].mxu1 %v1947_v51 }
0x1bb8   :  { %7550 = vmatpush3.bf16.msra.mxu1 %v8440_v12  ;;  %6511 = vmatprep.mubr.msk.f32.mxu1 %vm8328_vm1, %v8326_v6 }
0x1bb9   :  { %7551 = vmatprep.subr.bf16.mxu1 %v8327_v7 }
0x1bbc   :  { %7553 = vmatpush3.bf16.msra.mxu1 %v8452_v15 }
0x1bbd   :  { %7554 = vmatprep.subr.bf16.mxu1 %v8327_v7 }
0x1bc0   :  { %7556 = vmatpush3.bf16.msra.mxu1 %v8464_v18 }
0x1bc1   :  { %7557 = vmatprep.subr.bf16.mxu1 %v8327_v7 }
0x1bc4   :  { %7559 = vmatpush3.bf16.msra.mxu1 %v8474_v21 }
0x1bc5   :  { %7560 = vmatprep.subr.bf16.mxu1 %v8327_v7 }
0x1bc8   :  { %7562 = vmatpush3.bf16.msra.mxu1 %v8484_v24 }
0x1bc9   :  { %7563 = vmatprep.subr.bf16.mxu1 %v8327_v7 }
0x1bcc   :  { %7565 = vmatpush3.bf16.msra.mxu1 %v8494_v27 }
0x1bcd   :  { %7566 = vmatprep.subr.bf16.mxu1 %v8327_v7 }
0x1bd0   :  { %7568 = vmatpush3.bf16.msra.mxu1 %v8504_v30 }
0x1bd1   :  { %7569 = vmatprep.subr.bf16.mxu1 %v8327_v7 }
0x1bd4   :  { %7571 = vmatpush3.bf16.msra.mxu1 %v8514_v33 }
0x1bd5   :  { %7576 = vmatprep.subr.bf16.mxu1 %v8327_v7 }
0x1c8a   :  { %v2014_v37 = vpop.f32.mrb[14].mxu1 }
0x1c8b   :  { %v2025_v54 = vrot.slane %v2014_v37, %v8521_v42  ;;  %v6436_v55 = vpop.f32.mrb[15].mxu1 }
0x1c8d   :  { %v2026_v56 = vcombine.high %v2025_v54, %v2025_v54  ;;  %v2033_v58 = vrot.slane %v2025_v54, %v8521_v42 }
0x1c8f   :  { %v2040_v60 = vrot.slane %v2026_v56, %v8521_v42  ;;  %v2044_v62 = vrot.slane %v2033_v58, %v8524_v45 }
0x1c91   :  { %v2048_v4 = vrot.slane %v2040_v60, %v8524_v45  ;;  %v2051_v0 = vadd.f32 %v2044_v62, %v8530_v50 }
0x1c93   :  { %v2052_v1 = vadd.f32 %v2048_v4, %v8534_v53  ;;  %8154 = vtanh.f32 %v2051_v0 }
0x1c95   :  { %8156 = vtanh.f32 %v2052_v1 }
0x1c9d   :  { %v8155_v3 = vpop.eup %8154 }
0x1c9e   :  { %v2055_v9 = vmul.f32 %v8996_v59, %v8155_v3 }
0x1c9f   :  { %v8157_v14 = vpop.eup %8156 }
0x1ca0   :  { %v2057_v16 = vsel %vm108_vm0, %v2055_v9, 0.0  ;;  %v2056_v57 = vmul.f32 %v8996_v59, %v8157_v14 }
0x1ca1   :  { %2058 = vadd.xlane.f32.xlu0 %v2057_v16 }
0x1ca2   :  { %v2060_v19 = vsel %vm108_vm0, %v2056_v57, 0.0 }
0x1ca3   :  { %2061 = vadd.xlane.f32.xlu1 %v2060_v19 }
0x1d2e   :  { %v2059_v22 = vpop.xlane.xlu0 %2058 }
0x1d2f   :  { %v2063_v29 = vmul.f32 1.442695, %v2059_v22 }
0x1d30   :  { %v2062_v32 = vpop.xlane.xlu1 %2061 }
0x1d31   :  { %8158 = vpow2.f32 %v2063_v29  ;;  %v2065_v34 = vmul.f32 1.442695, %v2062_v32  ;;  %v2183_v29 = vpop.f32.mrb[18].mxu0 }
0x1d32   :  { %v6443_v32 = vpop.f32.mrb[19].mxu0 }
0x1d33   :  { %8160 = vpow2.f32 %v2065_v34 }
0x1d3b   :  { %v8159_v36 = vpop.eup %8158 }
0x1d3c   :  { %v2088_v17 = vrot.slane %v8159_v36, %v8551_v8  ;;  %v2067_v47 = vmul.f32 %v8940_v25, %v8159_v36 }
0x1d3d   :  { %v8161_v40 = vpop.eup %8160 }
0x1d3e   :  { %v2092_v39 = vrot.slane %v8161_v40, %v8551_v8  ;;  %v2068_v63 = vmul.f32 %v8934_v20, %v8161_v40  ;;  %v2069_v48 = vsel %vm108_vm0, %v2067_v47, 0.0 }
0x1d3f   :  { %v2070_v51 = vrot.slane %v2069_v48, 4 }
0x1d40   :  { %v2093_v43 = vsel %vm357_vm2, %v2092_v39, %v2088_v17  ;;  %v2076_v5 = vsel %vm108_vm0, %v2068_v63, 0.0 }
0x1d41   :  { %v2095_v44 = vsel %vm360_vm3, %v2093_v43, 0.0  ;;  %v2077_v49 = vrot.slane %v2076_v5, 4  ;;  %v2071_v54 = vadd.f32 %v2070_v51, %v2069_v48 }
0x1d42   :  { %2096 = vadd.xlane.f32.xlu0 %v2095_v44 }
0x1d43   :  { %v2078_v37 = vadd.f32 %v2077_v49, %v2076_v5  ;;  %v2072_v58 = vrot.slane %v2071_v54, 2 }
0x1d45   :  { %v2079_v56 = vrot.slane %v2078_v37, 2  ;;  %v2073_v62 = vadd.f32 %v2072_v58, %v2071_v54 }
0x1d47   :  { %v2080_v60 = vadd.f32 %v2079_v56, %v2078_v37  ;;  %v2074_v0 = vrot.slane %v2073_v62, 1 }
0x1d49   :  { %v2081_v4 = vrot.slane %v2080_v60, 1  ;;  %v2075_v14 = vadd.f32 %v2074_v0, %v2073_v62 }
0x1d4b   :  { %v2082_v3 = vadd.f32 %v2081_v4, %v2080_v60 }
0x1dcf   :  { %v2097_v55 = vpop.xlane.xlu0 %2096 }
0x1dd0   :  { %8162 = vrcp.f32 %v2097_v55 }
0x1dda   :  { %v8163_v1 = vpop.eup %8162 }
0x1ddb   :  { %v2100_v9 = vrot.slane %v8163_v1, 1  ;;  %v2103_v57 = vmul.f32 %v8163_v1, %v2075_v14 }
0x1ddd   :  { %v2104_v16 = vmul.f32 %v2100_v9, %v2082_v3 }
0x1ddf   :  { %v2107_v19 = vrot.slane %v2104_v16, 7 }
0x1de1   :  { %v2108_v22 = vsel %vm357_vm2, %v2107_v19, %v2103_v57 }
0x1de2   :  { %2109 = vrot.lane.b32.xlu0 %v2108_v22, %s8331_s0 }
0x1e54   :  { %v2110_v34 = vpop.permute.xlu0 %2109 }
0x1e55   :  { %2112 = vst.msk [vmem:[#allocation2] sm:$0x3] %vm378_vm8, %v2110_v34 }
0x1e5c   :  { %v2113_v36 = vld [vmem:[#allocation2] sm:$0x3] }
0x1e5d   :  { %6477 = vmatmul.mubr.f32.vlgmr.msra.gmra.mrb[20].mxu0 %v2113_v36 }
0x1e5e   :  { %7575 = vmatpush3.bf16.msk.msra.mxu0 %vm8645_vm6, %v8636_v2  ;;  %6518 = vmatprep.mubr.msk.f32.mxu0 %vm8328_vm1, %v8326_v6 }
0x1e5f   :  { %7600 = vmatprep.subr.bf16.mxu0 %v8327_v7 }
0x1f30   :  { %v2253_v40 = vpop.f32.mrb[20].mxu0 }
0x1f31   :  { %v2254_v17 = vadd.f32 %v2253_v40, %v2183_v29  ;;  %v6478_v39 = vpop.f32.mrb[21].mxu0 }
0x1f33   :  { %v2257_v43 = vadd.f32 %v9044_v28, %v2254_v17 }
0x1f35   :  { %v5388_v44 = vmul.f32 -1.442695, %v2257_v43 }
0x1f37   :  { %8164 = vpow2.f32 %v5388_v44 }
0x1f38   :  { %8166 = vtanh.f32 %v2257_v43 }
0x1f41   :  { %v8165_v46 = vpop.eup %8164 }
0x1f42   :  { %v2262_v63 = vadd.f32 1.0, %v8165_v46  ;;  %v8167_v47 = vpop.eup %8166 }
0x1f44   :  { %8168 = vrcp.f32 %v2262_v63 }
0x1f4e   :  { %v8169_v5 = vpop.eup %8168 }
0x1f4f   :  { %v2265_v48 = vsel %vm8696_vm11, %v8167_v47, %v8169_v5 }
0x1f50   :  { %2268 = vrot.lane.b32.xlu1 %v2265_v48, %s8331_s0  ;;  %v2266_v37 = vmul.f32 %v2265_v48, %v9052_v11 }
0x1fc2   :  { %v2269_v49 = vpop.permute.xlu1 %2268 }
0x1fc3   :  { %v2271_v51 = vmul.f32 %v2269_v49, %v2265_v48 }
0x1fc5   :  { %2273 = vrot.lane.b32.xlu1 %v2271_v51, %s8332_s18 }
0x2037   :  { %v2274_v54 = vpop.permute.xlu1 %2273 }
0x2038   :  { %v9134_v55 = vadd.f32 %v2274_v54, %v2266_v37 }
0x203a   :  { %8170 = vtanh.f32 %v9134_v55 }
0x2044   :  { %v8171_v56 = vpop.eup %8170 }
0x2045   :  { %2279 = vrot.lane.b32.xlu0 %v8171_v56, %s8331_s0 }
0x20b7   :  { %v2280_v58 = vpop.permute.xlu0 %2279 }
0x20b8   :  { %v2282_v60 = vmul.f32 %v2280_v58, %v2265_v48 }
0x20ba   :  { %2284 = vrot.lane.b32.xlu1 %v2282_v60, %s8332_s18 }
0x212c   :  { %v2285_v62 = vpop.permute.xlu1 %2284 }
0x212d   :  { %2287 = vst.msk [vmem:[#allocation2] sm:$0x3] %vm565_vm12, %v2285_v62 }
0x212e   :  { %2288 = vst.msk [vmem:[#allocation2] sm:$0x3] %vm567_vm13, %v9134_v55 }
0x2135   :  { %v2291_v4 = vld [vmem:[#allocation2] sm:$0x3] }
0x2136   :  { %6512 = vmatmul.mubr.f32.vlgmr.msra.gmra.mrb[16].mxu1 %v2291_v4 }
0x2137   :  { %7578 = vmatpush3.bf16.msra.mxu1 %v8566_v23  ;;  %6553 = vmatprep.mubr.msk.f32.mxu1 %vm8328_vm1, %v8326_v6 }
0x2138   :  { %7579 = vmatprep.subr.bf16.mxu1 %v8327_v7 }
0x213b   :  { %7581 = vmatpush3.bf16.msra.mxu1 %v8572_v26 }
0x213c   :  { %7582 = vmatprep.subr.bf16.mxu1 %v8327_v7 }
0x213f   :  { %7584 = vmatpush3.bf16.msra.mxu1 %v8582_v31 }
0x2140   :  { %7585 = vmatprep.subr.bf16.mxu1 %v8327_v7 }
0x2143   :  { %7587 = vmatpush3.bf16.msra.mxu1 %v8592_v35 }
0x2144   :  { %7588 = vmatprep.subr.bf16.mxu1 %v8327_v7 }
0x2147   :  { %7590 = vmatpush3.bf16.msra.mxu1 %v8602_v38 }
0x2148   :  { %7591 = vmatprep.subr.bf16.mxu1 %v8327_v7 }
0x214b   :  { %7593 = vmatpush3.bf16.msra.mxu1 %v8612_v41 }
0x214c   :  { %7594 = vmatprep.subr.bf16.mxu1 %v8327_v7 }
0x214f   :  { %7596 = vmatpush3.bf16.msra.mxu1 %v8627_v61 }
0x2150   :  { %7597 = vmatprep.subr.bf16.mxu1 %v8327_v7 }
0x2153   :  { %7599 = vmatpush3.bf16.msra.mxu1 %v8649_v13 }
0x2154   :  { %7624 = vmatprep.subr.bf16.mxu1 %v8327_v7 }
0x2209   :  { %v2358_v11 = vpop.f32.mrb[16].mxu1 }
0x220a   :  { %v2369_v0 = vrot.slane %v2358_v11, %v8521_v42  ;;  %v6513_v1 = vpop.f32.mrb[17].mxu1 }
0x220c   :  { %v2370_v3 = vcombine.high %v2369_v0, %v2369_v0  ;;  %v2377_v9 = vrot.slane %v2369_v0, %v8521_v42 }
0x220e   :  { %v2384_v14 = vrot.slane %v2370_v3, %v8521_v42  ;;  %v2388_v16 = vrot.slane %v2377_v9, %v8524_v45 }
0x2210   :  { %v2392_v57 = vrot.slane %v2384_v14, %v8524_v45  ;;  %v2395_v19 = vadd.f32 %v2388_v16, %v8530_v50 }
0x2212   :  { %v2396_v22 = vadd.f32 %v2392_v57, %v8534_v53  ;;  %8172 = vtanh.f32 %v2395_v19 }
0x2214   :  { %8174 = vtanh.f32 %v2396_v22 }
0x221c   :  { %v8173_v29 = vpop.eup %8172 }
0x221d   :  { %v2399_v32 = vmul.f32 %v8996_v59, %v8173_v29 }
0x221e   :  { %v8175_v34 = vpop.eup %8174 }
0x221f   :  { %v2401_v36 = vsel %vm108_vm0, %v2399_v32, 0.0  ;;  %v2400_v40 = vmul.f32 %v8996_v59, %v8175_v34 }
0x2220   :  { %2402 = vadd.xlane.f32.xlu0 %v2401_v36 }
0x2221   :  { %v2404_v17 = vsel %vm108_vm0, %v2400_v40, 0.0 }
0x2222   :  { %2405 = vadd.xlane.f32.xlu1 %v2404_v17 }
0x22ad   :  { %v2403_v39 = vpop.xlane.xlu0 %2402 }
0x22ae   :  { %v2407_v43 = vmul.f32 1.442695, %v2403_v39 }
0x22af   :  { %v2406_v44 = vpop.xlane.xlu1 %2405 }
0x22b0   :  { %8176 = vpow2.f32 %v2407_v43  ;;  %v2409_v46 = vmul.f32 1.442695, %v2406_v44 }
0x22b2   :  { %8178 = vpow2.f32 %v2409_v46 }
0x22ba   :  { %v8177_v63 = vpop.eup %8176 }
0x22bb   :  { %v2432_v5 = vrot.slane %v8177_v63, %v8551_v8  ;;  %v2411_v54 = vmul.f32 %v8940_v25, %v8177_v63  ;;  %v5389_v25 = vld [vmem:[%s10002_s2 + $0xc] sm:$0x3] }
0x22bc   :  { %v8179_v47 = vpop.eup %8178  ;;  %6519 = vmatmul.mubr.msk.f32.vlgmr.msra.gmra.mrb[22].mxu0 %vm381_vm7, %v5389_v25 }
0x22bd   :  { %v2436_v48 = vrot.slane %v8179_v47, %v8551_v8  ;;  %v2412_v37 = vmul.f32 %v8934_v20, %v8179_v47  ;;  %v2413_v58 = vsel %vm108_vm0, %v2411_v54, 0.0  ;;  %7602 = vmatpush3.bf16.msra.mxu0 %v8440_v12  ;;  %6588 = vmatprep.mubr.msk.f32.mxu0 %vm8328_vm1, %v8326_v6 }
0x22be   :  { %v2414_v62 = vrot.slane %v2413_v58, 4  ;;  %7603 = vmatprep.subr.bf16.mxu0 %v8327_v7 }
0x22bf   :  { %v2437_v49 = vsel %vm357_vm2, %v2436_v48, %v2432_v5  ;;  %v2420_v56 = vsel %vm108_vm0, %v2412_v37, 0.0 }
0x22c0   :  { %v2439_v51 = vsel %vm360_vm3, %v2437_v49, 0.0  ;;  %v2421_v60 = vrot.slane %v2420_v56, 4  ;;  %v2415_v11 = vadd.f32 %v2414_v62, %v2413_v58 }
0x22c1   :  { %2440 = vadd.xlane.f32.xlu0 %v2439_v51  ;;  %7605 = vmatpush3.bf16.msra.mxu0 %v8452_v15 }
0x22c2   :  { %v2422_v4 = vadd.f32 %v2421_v60, %v2420_v56  ;;  %v2416_v3 = vrot.slane %v2415_v11, 2  ;;  %7606 = vmatprep.subr.bf16.mxu0 %v8327_v7 }
0x22c4   :  { %v2423_v1 = vrot.slane %v2422_v4, 2  ;;  %v2417_v14 = vadd.f32 %v2416_v3, %v2415_v11 }
0x22c5   :  { %7608 = vmatpush3.bf16.msra.mxu0 %v8464_v18 }
0x22c6   :  { %v2424_v9 = vadd.f32 %v2423_v1, %v2422_v4  ;;  %v2418_v57 = vrot.slane %v2417_v14, 1  ;;  %7609 = vmatprep.subr.bf16.mxu0 %v8327_v7 }
0x22c8   :  { %v2425_v16 = vrot.slane %v2424_v9, 1  ;;  %v2419_v29 = vadd.f32 %v2418_v57, %v2417_v14 }
0x22c9   :  { %7611 = vmatpush3.bf16.msra.mxu0 %v8474_v21 }
0x22ca   :  { %v2426_v20 = vadd.f32 %v2425_v16, %v2424_v9  ;;  %7612 = vmatprep.subr.bf16.mxu0 %v8327_v7 }
0x22cd   :  { %7614 = vmatpush3.bf16.msra.mxu0 %v8484_v24 }
0x22ce   :  { %7615 = vmatprep.subr.bf16.mxu0 %v8327_v7 }
0x22d1   :  { %7617 = vmatpush3.bf16.msra.mxu0 %v8494_v27 }
0x22d2   :  { %7618 = vmatprep.subr.bf16.mxu0 %v8327_v7 }
0x22d5   :  { %7620 = vmatpush3.bf16.msra.mxu0 %v8504_v30 }
0x22d6   :  { %7621 = vmatprep.subr.bf16.mxu0 %v8327_v7 }
0x22d9   :  { %7623 = vmatpush3.bf16.msra.mxu0 %v8514_v33 }
0x22da   :  { %7628 = vmatprep.subr.bf16.mxu0 %v8327_v7 }
0x234e   :  { %v2441_v0 = vpop.xlane.xlu0 %2440 }
0x234f   :  { %8180 = vrcp.f32 %v2441_v0 }
0x2359   :  { %v8181_v19 = vpop.eup %8180 }
0x235a   :  { %v2444_v22 = vrot.slane %v8181_v19, 1  ;;  %v2447_v34 = vmul.f32 %v8181_v19, %v2419_v29 }
0x235c   :  { %v2448_v32 = vmul.f32 %v2444_v22, %v2426_v20 }
0x235e   :  { %v2451_v36 = vrot.slane %v2448_v32, 7 }
0x2360   :  { %v2452_v40 = vsel %vm357_vm2, %v2451_v36, %v2447_v34 }
0x2361   :  { %2453 = vrot.lane.b32.xlu0 %v2452_v40, %s8331_s0 }
0x238f   :  { %v2527_v43 = vpop.f32.mrb[22].mxu0 }
0x2390   :  { %v6520_v44 = vpop.f32.mrb[23].mxu0 }
0x23d3   :  { %v2454_v17 = vpop.permute.xlu0 %2453 }
0x23d4   :  { %2456 = vst.msk [vmem:[#allocation2] sm:$0x3] %vm378_vm8, %v2454_v17 }
0x23db   :  { %v2457_v39 = vld [vmem:[#allocation2] sm:$0x3] }
0x23dc   :  { %6554 = vmatmul.mubr.f32.vlgmr.msra.gmra.mrb[18].mxu1 %v2457_v39 }
0x23dd   :  { %7627 = vmatpush3.bf16.msk.msra.mxu1 %vm8645_vm6, %v8636_v2  ;;  %6595 = vmatprep.mubr.msk.f32.mxu1 %vm8328_vm1, %v8326_v6 }
0x23de   :  { %7652 = vmatprep.subr.bf16.mxu1 %v8327_v7 }
0x24af   :  { %v2597_v46 = vpop.f32.mrb[18].mxu1 }
0x24b0   :  { %v2598_v63 = vadd.f32 %v2597_v46, %v2527_v43  ;;  %v6555_v47 = vpop.f32.mrb[19].mxu1 }
0x24b2   :  { %v2601_v5 = vadd.f32 %v9044_v28, %v2598_v63 }
0x24b4   :  { %v5392_v48 = vmul.f32 -1.442695, %v2601_v5 }
0x24b6   :  { %8182 = vpow2.f32 %v5392_v48 }
0x24b7   :  { %8184 = vtanh.f32 %v2601_v5 }
0x24c0   :  { %v8183_v49 = vpop.eup %8182 }
0x24c1   :  { %v2606_v51 = vadd.f32 1.0, %v8183_v49  ;;  %v8185_v37 = vpop.eup %8184 }
0x24c3   :  { %8186 = vrcp.f32 %v2606_v51 }
0x24cd   :  { %v8187_v54 = vpop.eup %8186 }
0x24ce   :  { %v2609_v56 = vsel %vm8696_vm11, %v8185_v37, %v8187_v54 }
0x24cf   :  { %2612 = vrot.lane.b32.xlu1 %v2609_v56, %s8331_s0  ;;  %v2610_v62 = vmul.f32 %v2609_v56, %v9134_v55 }
0x2541   :  { %v2613_v58 = vpop.permute.xlu1 %2612 }
0x2542   :  { %v2615_v60 = vmul.f32 %v2613_v58, %v2609_v56 }
0x2544   :  { %2617 = vrot.lane.b32.xlu1 %v2615_v60, %s8332_s18  ;;  %v9266_v60 = vld [vmem:[%s10001_s1] sm:$0xff] }
0x25b6   :  { %v2618_v4 = vpop.permute.xlu1 %2617 }
0x25b7   :  { %v9216_v11 = vadd.f32 %v2618_v4, %v2610_v62 }
0x25b9   :  { %8188 = vtanh.f32 %v9216_v11 }
0x25c3   :  { %v8189_v0 = vpop.eup %8188 }
0x25c4   :  { %2623 = vrot.lane.b32.xlu0 %v8189_v0, %s8331_s0 }
0x2636   :  { %v2624_v1 = vpop.permute.xlu0 %2623 }
0x2637   :  { %v2626_v3 = vmul.f32 %v2624_v1, %v2609_v56  ;;  %v9260_v56 = vld [vmem:[%s10001_s1 + $0x8] sm:$0xff] }
0x2639   :  { %2628 = vrot.lane.b32.xlu1 %v2626_v3, %s8332_s18 }
0x26ab   :  { %v2629_v9 = vpop.permute.xlu1 %2628 }
0x26ac   :  { %2631 = vst.msk [vmem:[#allocation2] sm:$0x3] %vm565_vm12, %v2629_v9 }
0x26ad   :  { %2632 = vst.msk [vmem:[#allocation2] sm:$0x3] %vm567_vm13, %v9216_v11 }
0x26b4   :  { %v2635_v14 = vld [vmem:[#allocation2] sm:$0x3] }
0x26b5   :  { %6589 = vmatmul.mubr.f32.vlgmr.msra.gmra.mrb[24].mxu0 %v2635_v14 }
0x26b6   :  { %7630 = vmatpush3.bf16.msra.mxu0 %v8566_v23  ;;  %6630 = vmatprep.mubr.msk.f32.mxu0 %vm8328_vm1, %v8326_v6 }
0x26b7   :  { %7631 = vmatprep.subr.bf16.mxu0 %v8327_v7 }
0x26ba   :  { %7633 = vmatpush3.bf16.msra.mxu0 %v8572_v26 }
0x26bb   :  { %7634 = vmatprep.subr.bf16.mxu0 %v8327_v7 }
0x26be   :  { %7636 = vmatpush3.bf16.msra.mxu0 %v8582_v31 }
0x26bf   :  { %7637 = vmatprep.subr.bf16.mxu0 %v8327_v7 }
0x26c2   :  { %7639 = vmatpush3.bf16.msra.mxu0 %v8592_v35 }
0x26c3   :  { %7640 = vmatprep.subr.bf16.mxu0 %v8327_v7 }
0x26c6   :  { %7642 = vmatpush3.bf16.msra.mxu0 %v8602_v38 }
0x26c7   :  { %7643 = vmatprep.subr.bf16.mxu0 %v8327_v7 }
0x26ca   :  { %7645 = vmatpush3.bf16.msra.mxu0 %v8612_v41 }
0x26cb   :  { %7646 = vmatprep.subr.bf16.mxu0 %v8327_v7 }
0x26ce   :  { %7648 = vmatpush3.bf16.msra.mxu0 %v8627_v61 }
0x26cf   :  { %7649 = vmatprep.subr.bf16.mxu0 %v8327_v7 }
0x26d2   :  { %7651 = vmatpush3.bf16.msra.mxu0 %v8649_v13 }
0x26d3   :  { %7676 = vmatprep.subr.bf16.mxu0 %v8327_v7 }
0x2788   :  { %v2702_v55 = vpop.f32.mrb[24].mxu0 }
0x2789   :  { %v2713_v16 = vrot.slane %v2702_v55, %v8521_v42  ;;  %v6590_v57 = vpop.f32.mrb[25].mxu0 }
0x278b   :  { %v2714_v19 = vcombine.high %v2713_v16, %v2713_v16  ;;  %v2721_v20 = vrot.slane %v2713_v16, %v8521_v42 }
0x278d   :  { %v2728_v22 = vrot.slane %v2714_v19, %v8521_v42  ;;  %v2732_v25 = vrot.slane %v2721_v20, %v8524_v45 }
0x278f   :  { %v2736_v29 = vrot.slane %v2728_v22, %v8524_v45  ;;  %v2739_v32 = vadd.f32 %v2732_v25, %v8530_v50  ;;  %v5393_v22 = vld [vmem:[%s10002_s2 + $0xe] sm:$0x3] }
0x2790   :  { %6596 = vmatmul.mubr.msk.f32.vlgmr.msra.gmra.mrb[20].mxu1 %vm381_vm7, %v5393_v22  ;;  %v92_v22 = vld [vmem:[%s10011_s11 + $0x20] sm:$0xff] }
0x2791   :  { %v2740_v34 = vadd.f32 %v2736_v29, %v8534_v53  ;;  %8190 = vtanh.f32 %v2739_v32  ;;  %6665 = vmatprep.mubr.msk.f32.mxu1 %vm8328_vm1, %v8326_v6 }
0x2793   :  { %8192 = vtanh.f32 %v2740_v34 }
0x279b   :  { %v8191_v36 = vpop.eup %8190 }
0x279c   :  { %v2743_v40 = vmul.f32 %v8996_v59, %v8191_v36 }
0x279d   :  { %v8193_v17 = vpop.eup %8192 }
0x279e   :  { %v2745_v39 = vsel %vm108_vm0, %v2743_v40, 0.0  ;;  %v2744_v43 = vmul.f32 %v8996_v59, %v8193_v17 }
0x279f   :  { %2746 = vadd.xlane.f32.xlu0 %v2745_v39 }
0x27a0   :  { %v2748_v44 = vsel %vm108_vm0, %v2744_v43, 0.0 }
0x27a1   :  { %2749 = vadd.xlane.f32.xlu1 %v2748_v44 }
0x282c   :  { %v2747_v46 = vpop.xlane.xlu0 %2746 }
0x282d   :  { %v2751_v63 = vmul.f32 1.442695, %v2747_v46 }
0x282e   :  { %v2750_v47 = vpop.xlane.xlu1 %2749 }
0x282f   :  { %8194 = vpow2.f32 %v2751_v63  ;;  %v2753_v5 = vmul.f32 1.442695, %v2750_v47 }
0x2831   :  { %8196 = vpow2.f32 %v2753_v5 }
0x2839   :  { %v8195_v48 = vpop.eup %8194 }
0x283a   :  { %v2776_v51 = vrot.slane %v8195_v48, %v8551_v8  ;;  %v2755_v62 = vmul.f32 %v9266_v60, %v8195_v48 }
0x283b   :  { %v8197_v49 = vpop.eup %8196 }
0x283c   :  { %v2780_v37 = vrot.slane %v8197_v49, %v8551_v8  ;;  %v2756_v58 = vmul.f32 %v9260_v56, %v8197_v49  ;;  %v2757_v0 = vsel %vm108_vm0, %v2755_v62, 0.0 }
0x283d   :  { %v2758_v3 = vrot.slane %v2757_v0, 4 }
0x283e   :  { %v2781_v54 = vsel %vm357_vm2, %v2780_v37, %v2776_v51  ;;  %v2764_v4 = vsel %vm108_vm0, %v2756_v58, 0.0 }
0x283f   :  { %v2783_v59 = vsel %vm360_vm3, %v2781_v54, 0.0  ;;  %v2765_v1 = vrot.slane %v2764_v4, 4  ;;  %v2759_v14 = vadd.f32 %v2758_v3, %v2757_v0 }
0x2840   :  { %2784 = vadd.xlane.f32.xlu0 %v2783_v59 }
0x2841   :  { %v2766_v9 = vadd.f32 %v2765_v1, %v2764_v4  ;;  %v2760_v57 = vrot.slane %v2759_v14, 2 }
0x2843   :  { %v2767_v16 = vrot.slane %v2766_v9, 2  ;;  %v2761_v20 = vadd.f32 %v2760_v57, %v2759_v14  ;;  %v90_v57 = vld [vmem:[%s10011_s11 + $0x10] sm:$0xff] }
0x2845   :  { %v2768_v19 = vadd.f32 %v2767_v16, %v2766_v9  ;;  %v2762_v29 = vrot.slane %v2761_v20, 1  ;;  %v89_v16 = vld [vmem:[%s10011_s11 + $0x8] sm:$0xff] }
0x2847   :  { %v2769_v25 = vrot.slane %v2768_v19, 1  ;;  %v2763_v40 = vadd.f32 %v2762_v29, %v2761_v20 }
0x2849   :  { %v2770_v34 = vadd.f32 %v2769_v25, %v2768_v19  ;;  %v93_v25 = vld [vmem:[%s10011_s11 + $0x28] sm:$0xff] }
0x284a   :  { %v9332_v29 = vpack.c.bf16 %v93_v25, %v92_v22 }
0x2863   :  { %v2871_v47 = vpop.f32.mrb[20].mxu1 }
0x2864   :  { %v6597_v5 = vpop.f32.mrb[21].mxu1 }
0x2865   :  { %v101_v5 = vld [vmem:[%s10011_s11 + $0x68] sm:$0xff] }
0x28cd   :  { %v2785_v55 = vpop.xlane.xlu0 %2784 }
0x28ce   :  { %8198 = vrcp.f32 %v2785_v55  ;;  %v88_v55 = vld [vmem:[%s10011_s11] sm:$0xff] }
0x28cf   :  { %v9316_v19 = vpack.c.bf16 %v89_v16, %v88_v55 }
0x28d1   :  { %7654 = vmatpush3.bf16.msra.mxu1 %v9316_v19 }
0x28d2   :  { %7655 = vmatprep.subr.bf16.mxu1 %v8327_v7 }
0x28d8   :  { %v8199_v32 = vpop.eup %8198 }
0x28d9   :  { %v2788_v36 = vrot.slane %v8199_v32, 1  ;;  %v2791_v39 = vmul.f32 %v8199_v32, %v2763_v40  ;;  %v94_v32 = vld [vmem:[%s10011_s11 + $0x30] sm:$0xff] }
0x28db   :  { %v2792_v17 = vmul.f32 %v2788_v36, %v2770_v34  ;;  %v95_v34 = vld [vmem:[%s10011_s11 + $0x38] sm:$0xff] }
0x28dc   :  { %v9343_v40 = vpack.c.bf16 %v95_v34, %v94_v32  ;;  %v3084_v34 = vld [vmem:[%s10003_s3] sm:$0x1] }
0x28dd   :  { %v2795_v43 = vrot.slane %v2792_v17, 7  ;;  %v96_v17 = vld [vmem:[%s10011_s11 + $0x40] sm:$0xff] }
0x28df   :  { %v2796_v44 = vsel %vm357_vm2, %v2795_v43, %v2791_v39  ;;  %v97_v39 = vld [vmem:[%s10011_s11 + $0x48] sm:$0xff] }
0x28e0   :  { %2797 = vrot.lane.b32.xlu0 %v2796_v44, %s8331_s0  ;;  %v9353_v43 = vpack.c.bf16 %v97_v39, %v96_v17  ;;  %v98_v44 = vld [vmem:[%s10011_s11 + $0x50] sm:$0xff] }
0x2952   :  { %v2798_v46 = vpop.permute.xlu0 %2797 }
0x2953   :  { %2800 = vst.msk [vmem:[#allocation2] sm:$0x3] %vm378_vm8, %v2798_v46  ;;  %v99_v46 = vld [vmem:[%s10011_s11 + $0x58] sm:$0xff] }
0x295a   :  { %v2801_v63 = vld [vmem:[#allocation2] sm:$0x3] }
0x295b   :  { %6631 = vmatmul.mubr.f32.vlgmr.msra.gmra.mrb[26].mxu0 %v2801_v63  ;;  %v9363_v63 = vpack.c.bf16 %v99_v46, %v98_v44 }
0x295c   :  { %7678 = vmatpush3.bf16.msra.mxu0 %v8440_v12  ;;  %6700 = vmatprep.mubr.msk.f32.mxu0 %vm8328_vm1, %v8326_v6 }
0x295d   :  { %7679 = vmatprep.subr.bf16.mxu0 %v8327_v7 }
0x2960   :  { %7681 = vmatpush3.bf16.msra.mxu0 %v8452_v15 }
0x2961   :  { %7682 = vmatprep.subr.bf16.mxu0 %v8327_v7 }
0x2964   :  { %7684 = vmatpush3.bf16.msra.mxu0 %v8464_v18 }
0x2965   :  { %7685 = vmatprep.subr.bf16.mxu0 %v8327_v7 }
0x2968   :  { %7687 = vmatpush3.bf16.msra.mxu0 %v8474_v21 }
0x2969   :  { %7688 = vmatprep.subr.bf16.mxu0 %v8327_v7 }
0x296c   :  { %7690 = vmatpush3.bf16.msra.mxu0 %v8484_v24 }
0x296d   :  { %7691 = vmatprep.subr.bf16.mxu0 %v8327_v7 }
0x2970   :  { %7693 = vmatpush3.bf16.msra.mxu0 %v8494_v27 }
0x2971   :  { %7694 = vmatprep.subr.bf16.mxu0 %v8327_v7 }
0x2974   :  { %7696 = vmatpush3.bf16.msra.mxu0 %v8504_v30 }
0x2975   :  { %7697 = vmatprep.subr.bf16.mxu0 %v8327_v7 }
0x2978   :  { %7699 = vmatpush3.bf16.msra.mxu0 %v8514_v33 }
0x2979   :  { %7728 = vmatprep.subr.bf16.mxu0 %v8327_v7 }
0x2a2e   :  { %v2941_v48 = vpop.f32.mrb[26].mxu0 }
0x2a2f   :  { %v2942_v49 = vadd.f32 %v2941_v48, %v2871_v47  ;;  %v6632_v51 = vpop.f32.mrb[27].mxu0  ;;  %v100_v47 = vld [vmem:[%s10011_s11 + $0x60] sm:$0xff] }
0x2a30   :  { %v9374_v48 = vpack.c.bf16 %v101_v5, %v100_v47  ;;  %v103_v51 = vld [vmem:[%s10011_s11 + $0x78] sm:$0xff] }
0x2a31   :  { %v2945_v37 = vadd.f32 %v9044_v28, %v2942_v49  ;;  %v102_v49 = vld [vmem:[%s10011_s11 + $0x70] sm:$0xff] }
0x2a33   :  { %v5396_v54 = vmul.f32 -1.442695, %v2945_v37 }
0x2a35   :  { %8200 = vpow2.f32 %v5396_v54 }
0x2a36   :  { %8202 = vtanh.f32 %v2945_v37  ;;  %v9383_v37 = vpack.c.bf16 %v103_v51, %v102_v49 }
0x2a3f   :  { %v8201_v59 = vpop.eup %8200 }
0x2a40   :  { %v2950_v58 = vadd.f32 1.0, %v8201_v59  ;;  %v8203_v62 = vpop.eup %8202 }
0x2a42   :  { %8204 = vrcp.f32 %v2950_v58 }
0x2a4c   :  { %v8205_v4 = vpop.eup %8204 }
0x2a4d   :  { %v2953_v0 = vsel %vm8696_vm11, %v8203_v62, %v8205_v4 }
0x2a4e   :  { %2956 = vrot.lane.b32.xlu1 %v2953_v0, %s8331_s0  ;;  %v2954_v9 = vmul.f32 %v2953_v0, %v9216_v11  ;;  %v91_v11 = vld [vmem:[%s10011_s11 + $0x18] sm:$0xff]  ;;  %s3082_s11 = sld [smem:[#allocation4]] }
0x2a4f   :  { %v9322_v20 = vpack.c.bf16 %v91_v11, %v90_v57  ;;  %v3085_v11 = vld [vmem:[%s10003_s3 + $0x8] sm:$0x1] }
0x2a51   :  { %7657 = vmatpush3.bf16.msra.mxu1 %v9322_v20 }
0x2a52   :  { %7658 = vmatprep.subr.bf16.mxu1 %v8327_v7 }
0x2a54   :  { %p3083_p5 = scmp.gt.s32.totalorder %s3082_s11, 0 }
0x2a55   :  { %7660 = vmatpush3.bf16.msra.mxu1 %v9332_v29 }
0x2a56   :  { %7661 = vmatprep.subr.bf16.mxu1 %v8327_v7  ;;  %s3086_s14 = scalar_select %p3083_p5, 1, 0 }
0x2a59   :  { %7663 = vmatpush3.bf16.msra.mxu1 %v9343_v40 }
0x2a5a   :  { %7664 = vmatprep.subr.bf16.mxu1 %v8327_v7 }
0x2a5d   :  { %7666 = vmatpush3.bf16.msra.mxu1 %v9353_v43 }
0x2a5e   :  { %7667 = vmatprep.subr.bf16.mxu1 %v8327_v7 }
0x2a61   :  { %7669 = vmatpush3.bf16.msra.mxu1 %v9363_v63 }
0x2a62   :  { %7670 = vmatprep.subr.bf16.mxu1 %v8327_v7 }
0x2a65   :  { %7672 = vmatpush3.bf16.msra.mxu1 %v9374_v48 }
0x2a66   :  { %7673 = vmatprep.subr.bf16.mxu1 %v8327_v7 }
0x2a69   :  { %7675 = vmatpush3.bf16.msra.mxu1 %v9383_v37 }
0x2a6a   :  { %7700 = vmatprep.subr.bf16.mxu1 %v8327_v7 }
0x2ac0   :  { %v2957_v1 = vpop.permute.xlu1 %2956 }
0x2ac1   :  { %v2959_v3 = vmul.f32 %v2957_v1, %v2953_v0 }
0x2ac3   :  { %2961 = vrot.lane.b32.xlu1 %v2959_v3, %s8332_s18 }
0x2b35   :  { %v2962_v28 = vpop.permute.xlu1 %2961 }
0x2b36   :  { %v9304_v14 = vadd.f32 %v2962_v28, %v2954_v9  ;;  %v3087_v28 = vstv %s3086_s14 }
0x2b37   :  { %vm3088_vm15 = vcmp.eq.s32.totalorder %v3087_v28, 1 }
0x2b38   :  { %8206 = vtanh.f32 %v9304_v14 }
0x2b42   :  { %v8207_v36 = vpop.eup %8206 }
0x2b43   :  { %2967 = vrot.lane.b32.xlu0 %v8207_v36, %s8331_s0 }
0x2bb5   :  { %v2968_v54 = vpop.permute.xlu0 %2967 }
0x2bb6   :  { %v2970_v59 = vmul.f32 %v2968_v54, %v2953_v0  ;;  %v9419_v0 = vld [vmem:[%s10012_s12] ss:$0 sm:$0xff] }
0x2bb8   :  { %2972 = vrot.lane.b32.xlu1 %v2970_v59, %s8332_s18 }
0x2c2a   :  { %v2973_v58 = vpop.permute.xlu1 %2972 }
0x2c2b   :  { %2975 = vst.msk [vmem:[#allocation2] sm:$0x3] %vm565_vm12, %v2973_v58 }
0x2c2c   :  { %2976 = vst.msk [vmem:[#allocation2] sm:$0x3] %vm567_vm13, %v9304_v14 }
0x2c33   :  { %v2977_v62 = vld [vmem:[#allocation2] sm:$0x3] }
0x2c34   :  { %v3094_v4 = vld [vmem:[#allocation2] sm:$0x3]  ;;  %6666 = vmatmul.mubr.f32.vlgmr.msra.gmra.mrb[22].mxu1 %v2977_v62 }
0x2c35   :  { %6701 = vmatmul.mubr.f32.vlgmr.msra.gmra.mrb[28].mxu0 %v3094_v4  ;;  %7703 = vmatpush3.bf16.msk.msra.mxu1 %vm8645_vm6, %v8636_v2 }
0x2c36   :  { %6707 = vmatprep.mubr.msk.f32.mxu1 %vm8328_vm1, %v8326_v6  ;;  %7704 = vmatprep.subr.bf16.mxu1 %v8327_v7 }
0x2c37   :  { %7730 = vmatpush3.bf16.msra.mxu0 %v9316_v19  ;;  %6777 = vmatprep.mubr.msk.f32.mxu0 %vm8328_vm1, %v8326_v6 }
0x2c38   :  { %7731 = vmatprep.subr.bf16.mxu0 %v8327_v7 }
0x2c3b   :  { %7733 = vmatpush3.bf16.msra.mxu0 %v9322_v20 }
0x2c3c   :  { %7734 = vmatprep.subr.bf16.mxu0 %v8327_v7 }
0x2c3f   :  { %7736 = vmatpush3.bf16.msra.mxu0 %v9332_v29 }
0x2c40   :  { %7737 = vmatprep.subr.bf16.mxu0 %v8327_v7 }
0x2c43   :  { %7739 = vmatpush3.bf16.msra.mxu0 %v9343_v40 }
0x2c44   :  { %7740 = vmatprep.subr.bf16.mxu0 %v8327_v7 }
0x2c47   :  { %7742 = vmatpush3.bf16.msra.mxu0 %v9353_v43 }
0x2c48   :  { %7743 = vmatprep.subr.bf16.mxu0 %v8327_v7 }
0x2c4b   :  { %7745 = vmatpush3.bf16.msra.mxu0 %v9363_v63 }
0x2c4c   :  { %7746 = vmatprep.subr.bf16.mxu0 %v8327_v7 }
0x2c4f   :  { %7748 = vmatpush3.bf16.msra.mxu0 %v9374_v48 }
0x2c50   :  { %7749 = vmatprep.subr.bf16.mxu0 %v8327_v7 }
0x2c53   :  { %7751 = vmatpush3.bf16.msra.mxu0 %v9383_v37 }
0x2c54   :  { %7776 = vmatprep.subr.bf16.mxu0 %v8327_v7 }
0x2d07   :  { %v3050_v1 = vpop.f32.mrb[22].mxu1 }
0x2d08   :  { %v3161_v3 = vpop.f32.mrb[28].mxu0  ;;  %v3051_v9 = vadd.f32 %v9419_v0, %v3050_v1  ;;  %v6667_v16 = vpop.f32.mrb[23].mxu1 }
0x2d09   :  { %v3172_v55 = vrot.slane %v3161_v3, %v8521_v42  ;;  %v6702_v57 = vpop.f32.mrb[29].mxu0  ;;  %v9459_v3 = vld [vmem:[%s10006_s6] ss:$0 sm:$0xff] }
0x2d0a   :  { %v3061_v22 = vrot.slane %v3051_v9, %v8521_v42  ;;  %v3089_v25 = vrot.slane %v3051_v9, 1  ;;  %v3092_v51 = vsel %vm3088_vm15, %v3084_v34, %v3051_v9 }
0x2d0b   :  { %v3173_v32 = vcombine.high %v3172_v55, %v3172_v55  ;;  %v3180_v36 = vrot.slane %v3172_v55, %v8521_v42 }
0x2d0c   :  { %v3062_v17 = vcombine.high %v3061_v22, %v3061_v22  ;;  %v3069_v39 = vrot.slane %v3061_v22, %v8521_v42  ;;  %v3093_v44 = vsel %vm3088_vm15, %v3085_v11, %v3089_v25 }
0x2d0d   :  { %v3187_v46 = vrot.slane %v3173_v32, %v8521_v42  ;;  %v3263_v47 = vrot.slane %v3093_v44, 7  ;;  %v3191_v5 = vrot.slane %v3180_v36, %v8524_v45 }
0x2d0e   :  { %v3076_v49 = vrot.slane %v3062_v17, %v8521_v42  ;;  %3080 = vst.msk [vmem:[%s10013_s13] sm:$0x1] %vm3079_vm14, %v3069_v39 }
0x2d0f   :  { %v3195_v54 = vrot.slane %v3187_v46, %v8524_v45  ;;  %v3198_v59 = vadd.f32 %v3191_v5, %v8530_v50  ;;  %v3264_v58 = vsel %vm357_vm2, %v3263_v47, %v3092_v51 }
0x2d10   :  { %3081 = vst.msk [vmem:[%s10013_s13 + $0x8] sm:$0x1] %vm3079_vm14, %v3076_v49  ;;  %6708 = vmatmul.mubr.msk.f32.vlgmr.msra.gmra.mrb[24].mxu1 %vm381_vm7, %v3264_v58 }
0x2d11   :  { %v3199_v62 = vadd.f32 %v3195_v54, %v8534_v53  ;;  %8208 = vtanh.f32 %v3198_v59  ;;  %7706 = vmatpush3.bf16.msra.mxu1 %v8566_v23  ;;  %6742 = vmatprep.mubr.msk.f32.mxu1 %vm8328_vm1, %v8326_v6 }
0x2d12   :  { %7707 = vmatprep.subr.bf16.mxu1 %v8327_v7 }
0x2d13   :  { %8210 = vtanh.f32 %v3199_v62 }
0x2d15   :  { %7709 = vmatpush3.bf16.msra.mxu1 %v8572_v26 }
0x2d16   :  { %7710 = vmatprep.subr.bf16.mxu1 %v8327_v7 }
0x2d19   :  { %7712 = vmatpush3.bf16.msra.mxu1 %v8582_v31 }
0x2d1a   :  { %7713 = vmatprep.subr.bf16.mxu1 %v8327_v7 }
0x2d1b   :  { %v8209_v4 = vpop.eup %8208 }
0x2d1c   :  { %v3202_v9 = vmul.f32 %v9459_v3, %v8209_v4 }
0x2d1d   :  { %v8211_v1 = vpop.eup %8210  ;;  %7715 = vmatpush3.bf16.msra.mxu1 %v8592_v35 }
0x2d1e   :  { %v3203_v28 = vmul.f32 %v9459_v3, %v8211_v1  ;;  %v3204_v55 = vsel %vm108_vm0, %v3202_v9, 0.0  ;;  %7716 = vmatprep.subr.bf16.mxu1 %v8327_v7 }
0x2d1f   :  { %3205 = vadd.xlane.f32.xlu0 %v3204_v55 }
0x2d20   :  { %v3207_v16 = vsel %vm108_vm0, %v3203_v28, 0.0 }
0x2d21   :  { %3208 = vadd.xlane.f32.xlu1 %v3207_v16  ;;  %7718 = vmatpush3.bf16.msra.mxu1 %v8602_v38 }
0x2d22   :  { %7719 = vmatprep.subr.bf16.mxu1 %v8327_v7 }
0x2d25   :  { %7721 = vmatpush3.bf16.msra.mxu1 %v8612_v41 }
0x2d26   :  { %7722 = vmatprep.subr.bf16.mxu1 %v8327_v7 }
0x2d29   :  { %7724 = vmatpush3.bf16.msra.mxu1 %v8627_v61 }
0x2d2a   :  { %7725 = vmatprep.subr.bf16.mxu1 %v8327_v7 }
0x2d2d   :  { %7727 = vmatpush3.bf16.msra.mxu1 %v8649_v13 }
0x2d2e   :  { %7752 = vmatprep.subr.bf16.mxu1 %v8327_v7 }
0x2dac   :  { %v3206_v57 = vpop.xlane.xlu0 %3205 }
0x2dad   :  { %v3210_v11 = vmul.f32 1.442695, %v3206_v57 }
0x2dae   :  { %v3209_v22 = vpop.xlane.xlu1 %3208 }
0x2daf   :  { %v3212_v25 = vmul.f32 1.442695, %v3209_v22  ;;  %8212 = vpow2.f32 %v3210_v11 }
0x2db1   :  { %8214 = vpow2.f32 %v3212_v25 }
0x2db9   :  { %v8213_v32 = vpop.eup %8212 }
0x2dba   :  { %v3235_v36 = vrot.slane %v8213_v32, %v8551_v8  ;;  %v3214_v49 = vmul.f32 %v9266_v60, %v8213_v32 }
0x2dbb   :  { %v8215_v34 = vpop.eup %8214 }
0x2dbc   :  { %v3239_v17 = vrot.slane %v8215_v34, %v8551_v8  ;;  %v3215_v5 = vmul.f32 %v9260_v56, %v8215_v34  ;;  %v3216_v54 = vsel %vm108_vm0, %v3214_v49, 0.0 }
0x2dbd   :  { %v3217_v58 = vrot.slane %v3216_v54, 4 }
0x2dbe   :  { %v3240_v39 = vsel %vm357_vm2, %v3239_v17, %v3235_v36  ;;  %v3223_v51 = vsel %vm108_vm0, %v3215_v5, 0.0 }
0x2dbf   :  { %v3242_v44 = vsel %vm360_vm3, %v3240_v39, 0.0  ;;  %v3224_v59 = vrot.slane %v3223_v51, 4  ;;  %v3218_v4 = vadd.f32 %v3217_v58, %v3216_v54 }
0x2dc0   :  { %3243 = vadd.xlane.f32.xlu0 %v3242_v44 }
0x2dc1   :  { %v3225_v62 = vadd.f32 %v3224_v59, %v3223_v51  ;;  %v3219_v28 = vrot.slane %v3218_v4, 2  ;;  %v9507_v59 = vld [vmem:[%s10010_s10] ss:$0 sm:$0xff] }
0x2dc3   :  { %v3226_v9 = vrot.slane %v3225_v62, 2  ;;  %v3220_v16 = vadd.f32 %v3219_v28, %v3218_v4 }
0x2dc5   :  { %v3227_v55 = vadd.f32 %v3226_v9, %v3225_v62  ;;  %v3221_v11 = vrot.slane %v3220_v16, 1 }
0x2dc7   :  { %v3228_v57 = vrot.slane %v3227_v55, 1  ;;  %v3222_v32 = vadd.f32 %v3221_v11, %v3220_v16 }
0x2dc9   :  { %v3229_v25 = vadd.f32 %v3228_v57, %v3227_v55 }
0x2de3   :  { %v3333_v46 = vpop.f32.mrb[24].mxu1 }
0x2de4   :  { %v6709_v47 = vpop.f32.mrb[25].mxu1 }
0x2e4d   :  { %v3244_v1 = vpop.xlane.xlu0 %3243 }
0x2e4e   :  { %8216 = vrcp.f32 %v3244_v1 }
0x2e58   :  { %v8217_v22 = vpop.eup %8216 }
0x2e59   :  { %v3247_v34 = vrot.slane %v8217_v22, 1  ;;  %v3250_v17 = vmul.f32 %v8217_v22, %v3222_v32 }
0x2e5b   :  { %v3251_v36 = vmul.f32 %v3247_v34, %v3229_v25 }
0x2e5d   :  { %v3254_v39 = vrot.slane %v3251_v36, 7 }
0x2e5f   :  { %v3255_v44 = vsel %vm357_vm2, %v3254_v39, %v3250_v17 }
0x2e60   :  { %3256 = vrot.lane.b32.xlu0 %v3255_v44, %s8331_s0 }
0x2ed2   :  { %v3257_v47 = vpop.permute.xlu0 %3256 }
0x2ed3   :  { %3259 = vst.msk [vmem:[#allocation2] sm:$0x3] %vm378_vm8, %v3257_v47 }
0x2eda   :  { %v3260_v5 = vld [vmem:[#allocation2] sm:$0x3] }
0x2edb   :  { %6743 = vmatmul.mubr.f32.vlgmr.msra.gmra.mrb[26].mxu1 %v3260_v5  ;;  %v3542_v5 = vstv %s3541_s25 }
0x2edc   :  { %7754 = vmatpush3.bf16.msra.mxu1 %v8440_v12  ;;  %6812 = vmatprep.mubr.msk.f32.mxu1 %vm8328_vm1, %v8326_v6  ;;  %vm3543_vm4 = vcmp.eq.s32.totalorder %v3542_v5, 1 }
0x2edd   :  { %7755 = vmatprep.subr.bf16.mxu1 %v8327_v7 }
0x2ee0   :  { %7757 = vmatpush3.bf16.msra.mxu1 %v8452_v15 }
0x2ee1   :  { %7758 = vmatprep.subr.bf16.mxu1 %v8327_v7 }
0x2ee4   :  { %7760 = vmatpush3.bf16.msra.mxu1 %v8464_v18 }
0x2ee5   :  { %7761 = vmatprep.subr.bf16.mxu1 %v8327_v7 }
0x2ee8   :  { %7763 = vmatpush3.bf16.msra.mxu1 %v8474_v21 }
0x2ee9   :  { %7764 = vmatprep.subr.bf16.mxu1 %v8327_v7 }
0x2eec   :  { %7766 = vmatpush3.bf16.msra.mxu1 %v8484_v24 }
0x2eed   :  { %7767 = vmatprep.subr.bf16.mxu1 %v8327_v7 }
0x2ef0   :  { %7769 = vmatpush3.bf16.msra.mxu1 %v8494_v27 }
0x2ef1   :  { %7770 = vmatprep.subr.bf16.mxu1 %v8327_v7 }
0x2ef4   :  { %7772 = vmatpush3.bf16.msra.mxu1 %v8504_v30 }
0x2ef5   :  { %7773 = vmatprep.subr.bf16.mxu1 %v8327_v7 }
0x2ef8   :  { %7775 = vmatpush3.bf16.msra.mxu1 %v8514_v33 }
0x2ef9   :  { %7804 = vmatprep.subr.bf16.mxu1 %v8327_v7 }
0x2fae   :  { %v3403_v49 = vpop.f32.mrb[26].mxu1 }
0x2faf   :  { %v3404_v51 = vadd.f32 %v3403_v49, %v3333_v46  ;;  %v6744_v54 = vpop.f32.mrb[27].mxu1 }
0x2fb1   :  { %v3407_v58 = vadd.f32 %v9507_v59, %v3404_v51 }
0x2fb3   :  { %v5400_v62 = vmul.f32 -1.442695, %v3407_v58 }
0x2fb5   :  { %8218 = vpow2.f32 %v5400_v62 }
0x2fb6   :  { %8220 = vtanh.f32 %v3407_v58  ;;  %v3540_v58 = vld [vmem:[%s10003_s3 + $0x9] sm:$0x1] }
0x2fbf   :  { %v8219_v4 = vpop.eup %8218 }
0x2fc0   :  { %v3412_v1 = vadd.f32 1.0, %v8219_v4  ;;  %v8221_v9 = vpop.eup %8220 }
0x2fc2   :  { %8222 = vrcp.f32 %v3412_v1 }
0x2fcc   :  { %v8223_v28 = vpop.eup %8222 }
0x2fcd   :  { %v3415_v55 = vsel %vm8696_vm11, %v8221_v9, %v8223_v28  ;;  %v3539_v9 = vld [vmem:[%s10003_s3 + $0x1] sm:$0x1] }
0x2fce   :  { %3418 = vrot.lane.b32.xlu1 %v3415_v55, %s8331_s0  ;;  %v3416_v57 = vmul.f32 %v3415_v55, %v9304_v14 }
0x3040   :  { %v3419_v46 = vpop.permute.xlu1 %3418 }
0x3041   :  { %v3421_v16 = vmul.f32 %v3419_v46, %v3415_v55 }
0x3043   :  { %3423 = vrot.lane.b32.xlu1 %v3421_v16, %s8332_s18 }
0x30b5   :  { %v3424_v11 = vpop.permute.xlu1 %3423 }
0x30b6   :  { %v9515_v22 = vadd.f32 %v3424_v11, %v3416_v57 }
0x30b8   :  { %8224 = vtanh.f32 %v9515_v22 }
0x30c2   :  { %v8225_v25 = vpop.eup %8224 }
0x30c3   :  { %3429 = vrot.lane.b32.xlu0 %v8225_v25, %s8331_s0 }
0x3135   :  { %v3430_v34 = vpop.permute.xlu0 %3429 }
0x3136   :  { %v3432_v32 = vmul.f32 %v3430_v34, %v3415_v55 }
0x3138   :  { %3434 = vrot.lane.b32.xlu1 %v3432_v32, %s8332_s18 }
0x31aa   :  { %v3435_v36 = vpop.permute.xlu1 %3434 }
0x31ab   :  { %3437 = vst.msk [vmem:[#allocation2] sm:$0x3] %vm565_vm12, %v3435_v36 }
0x31ac   :  { %3438 = vst.msk [vmem:[#allocation2] sm:$0x3] %vm567_vm13, %v9515_v22 }
0x31b3   :  { %v3439_v17 = vld [vmem:[#allocation2] sm:$0x3] }
0x31b4   :  { %v3549_v14 = vld [vmem:[#allocation2] sm:$0x3]  ;;  %6778 = vmatmul.mubr.f32.vlgmr.msra.gmra.mrb[30].mxu0 %v3439_v17 }
0x31b5   :  { %6813 = vmatmul.mubr.f32.vlgmr.msra.gmra.mrb[28].mxu1 %v3549_v14  ;;  %7779 = vmatpush3.bf16.msk.msra.mxu0 %vm8645_vm6, %v8636_v2 }
0x31b6   :  { %6819 = vmatprep.mubr.msk.f32.mxu0 %vm8328_vm1, %v8326_v6  ;;  %7780 = vmatprep.subr.bf16.mxu0 %v8327_v7 }
0x31b7   :  { %7806 = vmatpush3.bf16.msra.mxu1 %v9316_v19  ;;  %6889 = vmatprep.mubr.msk.f32.mxu1 %vm8328_vm1, %v8326_v6 }
0x31b8   :  { %7807 = vmatprep.subr.bf16.mxu1 %v8327_v7 }
0x31bb   :  { %7809 = vmatpush3.bf16.msra.mxu1 %v9322_v20 }
0x31bc   :  { %7810 = vmatprep.subr.bf16.mxu1 %v8327_v7 }
0x31bf   :  { %7812 = vmatpush3.bf16.msra.mxu1 %v9332_v29 }
0x31c0   :  { %7813 = vmatprep.subr.bf16.mxu1 %v8327_v7 }
0x31c3   :  { %7815 = vmatpush3.bf16.msra.mxu1 %v9343_v40 }
0x31c4   :  { %7816 = vmatprep.subr.bf16.mxu1 %v8327_v7 }
0x31c7   :  { %7818 = vmatpush3.bf16.msra.mxu1 %v9353_v43 }
0x31c8   :  { %7819 = vmatprep.subr.bf16.mxu1 %v8327_v7 }
0x31cb   :  { %7821 = vmatpush3.bf16.msra.mxu1 %v9363_v63 }
0x31cc   :  { %7822 = vmatprep.subr.bf16.mxu1 %v8327_v7 }
0x31cf   :  { %7824 = vmatpush3.bf16.msra.mxu1 %v9374_v48 }
0x31d0   :  { %7825 = vmatprep.subr.bf16.mxu1 %v8327_v7 }
0x31d3   :  { %7827 = vmatpush3.bf16.msra.mxu1 %v9383_v37 }
0x31d4   :  { %7852 = vmatprep.subr.bf16.mxu1 %v8327_v7 }
0x3287   :  { %v3506_v39 = vpop.f32.mrb[30].mxu0 }
0x3288   :  { %v3616_v44 = vpop.f32.mrb[28].mxu1  ;;  %v3507_v47 = vadd.f32 %v9419_v0, %v3506_v39  ;;  %v6779_v51 = vpop.f32.mrb[31].mxu0 }
0x3289   :  { %v3627_v49 = vrot.slane %v3616_v44, %v8521_v42  ;;  %v6814_v54 = vpop.f32.mrb[29].mxu1 }
0x328a   :  { %v3517_v62 = vrot.slane %v3507_v47, %v8521_v42  ;;  %v3544_v4 = vrot.slane %v3507_v47, 1  ;;  %v3547_v32 = vsel %vm3543_vm4, %v3539_v9, %v3507_v47 }
0x328b   :  { %v3628_v1 = vcombine.high %v3627_v49, %v3627_v49  ;;  %v3635_v28 = vrot.slane %v3627_v49, %v8521_v42 }
0x328c   :  { %v3518_v55 = vcombine.high %v3517_v62, %v3517_v62  ;;  %v3525_v46 = vrot.slane %v3517_v62, %v8521_v42  ;;  %v3548_v16 = vsel %vm3543_vm4, %v3540_v58, %v3544_v4 }
0x328d   :  { %v3642_v57 = vrot.slane %v3628_v1, %v8521_v42  ;;  %v3718_v11 = vrot.slane %v3548_v16, 7  ;;  %v3646_v25 = vrot.slane %v3635_v28, %v8524_v45 }
0x328e   :  { %v3532_v34 = vrot.slane %v3518_v55, %v8521_v42  ;;  %3535 = vst.msk [vmem:[%s10013_s13 + $0x1] sm:$0x1] %vm3079_vm14, %v3525_v46 }
0x328f   :  { %v3650_v36 = vrot.slane %v3642_v57, %v8524_v45  ;;  %v3653_v17 = vadd.f32 %v3646_v25, %v8530_v50  ;;  %v3719_v14 = vsel %vm357_vm2, %v3718_v11, %v3547_v32 }
0x3290   :  { %3536 = vst.msk [vmem:[%s10013_s13 + $0x9] sm:$0x1] %vm3079_vm14, %v3532_v34  ;;  %6820 = vmatmul.mubr.msk.f32.vlgmr.msra.gmra.mrb[32].mxu0 %vm381_vm7, %v3719_v14 }
0x3291   :  { %v3654_v39 = vadd.f32 %v3650_v36, %v8534_v53  ;;  %8226 = vtanh.f32 %v3653_v17  ;;  %7782 = vmatpush3.bf16.msra.mxu0 %v8566_v23  ;;  %6854 = vmatprep.mubr.msk.f32.mxu0 %vm8328_vm1, %v8326_v6 }
0x3292   :  { %7783 = vmatprep.subr.bf16.mxu0 %v8327_v7 }
0x3293   :  { %8228 = vtanh.f32 %v3654_v39 }
0x3295   :  { %7785 = vmatpush3.bf16.msra.mxu0 %v8572_v26 }
0x3296   :  { %7786 = vmatprep.subr.bf16.mxu0 %v8327_v7 }
0x3299   :  { %7788 = vmatpush3.bf16.msra.mxu0 %v8582_v31 }
0x329a   :  { %7789 = vmatprep.subr.bf16.mxu0 %v8327_v7 }
0x329b   :  { %v8227_v44 = vpop.eup %8226 }
0x329c   :  { %v3657_v5 = vmul.f32 %v9459_v3, %v8227_v44 }
0x329d   :  { %v8229_v47 = vpop.eup %8228  ;;  %7791 = vmatpush3.bf16.msra.mxu0 %v8592_v35 }
0x329e   :  { %v3658_v49 = vmul.f32 %v9459_v3, %v8229_v47  ;;  %v3659_v51 = vsel %vm108_vm0, %v3657_v5, 0.0  ;;  %7792 = vmatprep.subr.bf16.mxu0 %v8327_v7 }
0x329f   :  { %3660 = vadd.xlane.f32.xlu0 %v3659_v51 }
0x32a0   :  { %v3662_v54 = vsel %vm108_vm0, %v3658_v49, 0.0 }
0x32a1   :  { %3663 = vadd.xlane.f32.xlu1 %v3662_v54  ;;  %7794 = vmatpush3.bf16.msra.mxu0 %v8602_v38 }
0x32a2   :  { %7795 = vmatprep.subr.bf16.mxu0 %v8327_v7 }
0x32a5   :  { %7797 = vmatpush3.bf16.msra.mxu0 %v8612_v41 }
0x32a6   :  { %7798 = vmatprep.subr.bf16.mxu0 %v8327_v7 }
0x32a9   :  { %7800 = vmatpush3.bf16.msra.mxu0 %v8627_v61 }
0x32aa   :  { %7801 = vmatprep.subr.bf16.mxu0 %v8327_v7 }
0x32ad   :  { %7803 = vmatpush3.bf16.msra.mxu0 %v8649_v13 }
0x32ae   :  { %7828 = vmatprep.subr.bf16.mxu0 %v8327_v7 }
0x332c   :  { %v3661_v58 = vpop.xlane.xlu0 %3660 }
0x332d   :  { %v3665_v62 = vmul.f32 1.442695, %v3661_v58 }
0x332e   :  { %v3664_v4 = vpop.xlane.xlu1 %3663 }
0x332f   :  { %v3667_v1 = vmul.f32 1.442695, %v3664_v4  ;;  %8230 = vpow2.f32 %v3665_v62 }
0x3331   :  { %8232 = vpow2.f32 %v3667_v1 }
0x3339   :  { %v8231_v9 = vpop.eup %8230 }
0x333a   :  { %v3690_v55 = vrot.slane %v8231_v9, %v8551_v8  ;;  %v3669_v32 = vmul.f32 %v9266_v60, %v8231_v9 }
0x333b   :  { %v8233_v28 = vpop.eup %8232 }
0x333c   :  { %v3694_v46 = vrot.slane %v8233_v28, %v8551_v8  ;;  %v3670_v34 = vmul.f32 %v9260_v56, %v8233_v28  ;;  %v3671_v17 = vsel %vm108_vm0, %v3669_v32, 0.0 }
0x333d   :  { %v3672_v39 = vrot.slane %v3671_v17, 4 }
0x333e   :  { %v3695_v16 = vsel %vm357_vm2, %v3694_v46, %v3690_v55  ;;  %v3678_v36 = vsel %vm108_vm0, %v3670_v34, 0.0 }
0x333f   :  { %v3697_v57 = vsel %vm360_vm3, %v3695_v16, 0.0  ;;  %v3679_v14 = vrot.slane %v3678_v36, 4  ;;  %v3673_v47 = vadd.f32 %v3672_v39, %v3671_v17 }
0x3340   :  { %3698 = vadd.xlane.f32.xlu0 %v3697_v57 }
0x3341   :  { %v3680_v44 = vadd.f32 %v3679_v14, %v3678_v36  ;;  %v3674_v51 = vrot.slane %v3673_v47, 2 }
0x3343   :  { %v3681_v49 = vrot.slane %v3680_v44, 2  ;;  %v3675_v58 = vadd.f32 %v3674_v51, %v3673_v47 }
0x3345   :  { %v3682_v54 = vadd.f32 %v3681_v49, %v3680_v44  ;;  %v3676_v4 = vrot.slane %v3675_v58, 1 }
0x3347   :  { %v3683_v62 = vrot.slane %v3682_v54, 1  ;;  %v3677_v60 = vadd.f32 %v3676_v4, %v3675_v58 }
0x3349   :  { %v3684_v56 = vadd.f32 %v3683_v62, %v3682_v54 }
0x3363   :  { %v3788_v11 = vpop.f32.mrb[32].mxu0 }
0x3364   :  { %v6821_v25 = vpop.f32.mrb[33].mxu0 }
0x33cd   :  { %v3699_v5 = vpop.xlane.xlu0 %3698 }
0x33ce   :  { %8234 = vrcp.f32 %v3699_v5 }
0x33d8   :  { %v8235_v1 = vpop.eup %8234 }
0x33d9   :  { %v3702_v28 = vrot.slane %v8235_v1, 1  ;;  %v3705_v55 = vmul.f32 %v8235_v1, %v3677_v60 }
0x33db   :  { %v3706_v9 = vmul.f32 %v3702_v28, %v3684_v56 }
0x33dd   :  { %v3709_v46 = vrot.slane %v3706_v9, 7 }
0x33df   :  { %v3710_v16 = vsel %vm357_vm2, %v3709_v46, %v3705_v55 }
0x33e0   :  { %3711 = vrot.lane.b32.xlu0 %v3710_v16, %s8331_s0  ;;  %v3997_v16 = vstv %s3996_s8 }
0x33e1   :  { %vm3998_vm5 = vcmp.eq.s32.totalorder %v3997_v16, 1 }
0x3452   :  { %v3712_v57 = vpop.permute.xlu0 %3711 }
0x3453   :  { %3714 = vst.msk [vmem:[#allocation2] sm:$0x3] %vm378_vm8, %v3712_v57 }
0x345a   :  { %v3715_v25 = vld [vmem:[#allocation2] sm:$0x3] }
0x345b   :  { %6855 = vmatmul.mubr.f32.vlgmr.msra.gmra.mrb[34].mxu0 %v3715_v25 }
0x345c   :  { %7830 = vmatpush3.bf16.msra.mxu0 %v8440_v12  ;;  %6924 = vmatprep.mubr.msk.f32.mxu0 %vm8328_vm1, %v8326_v6 }
0x345d   :  { %7831 = vmatprep.subr.bf16.mxu0 %v8327_v7 }
0x3460   :  { %7833 = vmatpush3.bf16.msra.mxu0 %v8452_v15 }
0x3461   :  { %7834 = vmatprep.subr.bf16.mxu0 %v8327_v7 }
0x3464   :  { %7836 = vmatpush3.bf16.msra.mxu0 %v8464_v18 }
0x3465   :  { %7837 = vmatprep.subr.bf16.mxu0 %v8327_v7 }
0x3468   :  { %7839 = vmatpush3.bf16.msra.mxu0 %v8474_v21 }
0x3469   :  { %7840 = vmatprep.subr.bf16.mxu0 %v8327_v7 }
0x346c   :  { %7842 = vmatpush3.bf16.msra.mxu0 %v8484_v24 }
0x346d   :  { %7843 = vmatprep.subr.bf16.mxu0 %v8327_v7 }
0x3470   :  { %7845 = vmatpush3.bf16.msra.mxu0 %v8494_v27 }
0x3471   :  { %7846 = vmatprep.subr.bf16.mxu0 %v8327_v7 }
0x3474   :  { %7848 = vmatpush3.bf16.msra.mxu0 %v8504_v30 }
0x3475   :  { %7849 = vmatprep.subr.bf16.mxu0 %v8327_v7 }
0x3478   :  { %7851 = vmatpush3.bf16.msra.mxu0 %v8514_v33 }
0x3479   :  { %7880 = vmatprep.subr.bf16.mxu0 %v8327_v7 }
0x352e   :  { %v3858_v34 = vpop.f32.mrb[34].mxu0 }
0x352f   :  { %v3859_v32 = vadd.f32 %v3858_v34, %v3788_v11  ;;  %v6856_v36 = vpop.f32.mrb[35].mxu0 }
0x3531   :  { %v3862_v17 = vadd.f32 %v9507_v59, %v3859_v32  ;;  %v3995_v32 = vld [vmem:[%s10003_s3 + $0xa] sm:$0x1] }
0x3533   :  { %v5404_v14 = vmul.f32 -1.442695, %v3862_v17 }
0x3535   :  { %8236 = vpow2.f32 %v5404_v14 }
0x3536   :  { %8238 = vtanh.f32 %v3862_v17 }
0x353f   :  { %v8237_v39 = vpop.eup %8236 }
0x3540   :  { %v3867_v44 = vadd.f32 1.0, %v8237_v39  ;;  %v8239_v47 = vpop.eup %8238  ;;  %v3994_v39 = vld [vmem:[%s10003_s3 + $0x2] sm:$0x1] }
0x3542   :  { %8240 = vrcp.f32 %v3867_v44 }
0x354c   :  { %v8241_v5 = vpop.eup %8240 }
0x354d   :  { %v3870_v49 = vsel %vm8696_vm11, %v8239_v47, %v8241_v5 }
0x354e   :  { %3873 = vrot.lane.b32.xlu1 %v3870_v49, %s8331_s0  ;;  %v3871_v11 = vmul.f32 %v3870_v49, %v9515_v22 }
0x35c0   :  { %v3874_v51 = vpop.permute.xlu1 %3873 }
0x35c1   :  { %v3876_v54 = vmul.f32 %v3874_v51, %v3870_v49 }
0x35c3   :  { %3878 = vrot.lane.b32.xlu1 %v3876_v54, %s8332_s18 }
0x3635   :  { %v3879_v58 = vpop.permute.xlu1 %3878 }
0x3636   :  { %v9631_v62 = vadd.f32 %v3879_v58, %v3871_v11 }
0x3638   :  { %8242 = vtanh.f32 %v9631_v62 }
0x3642   :  { %v8243_v4 = vpop.eup %8242 }
0x3643   :  { %3884 = vrot.lane.b32.xlu0 %v8243_v4, %s8331_s0 }
0x36b5   :  { %v3885_v1 = vpop.permute.xlu0 %3884 }
0x36b6   :  { %v3887_v56 = vmul.f32 %v3885_v1, %v3870_v49 }
0x36b8   :  { %3889 = vrot.lane.b32.xlu1 %v3887_v56, %s8332_s18 }
0x372a   :  { %v3890_v28 = vpop.permute.xlu1 %3889 }
0x372b   :  { %3892 = vst.msk [vmem:[#allocation2] sm:$0x3] %vm565_vm12, %v3890_v28 }
0x372c   :  { %3893 = vst.msk [vmem:[#allocation2] sm:$0x3] %vm567_vm13, %v9631_v62 }
0x3733   :  { %v3894_v60 = vld [vmem:[#allocation2] sm:$0x3] }
0x3734   :  { %v4004_v22 = vld [vmem:[#allocation2] sm:$0x3]  ;;  %6890 = vmatmul.mubr.f32.vlgmr.msra.gmra.mrb[30].mxu1 %v3894_v60 }
0x3735   :  { %6925 = vmatmul.mubr.f32.vlgmr.msra.gmra.mrb[36].mxu0 %v4004_v22  ;;  %7855 = vmatpush3.bf16.msk.msra.mxu1 %vm8645_vm6, %v8636_v2 }
0x3736   :  { %6931 = vmatprep.mubr.msk.f32.mxu1 %vm8328_vm1, %v8326_v6  ;;  %7856 = vmatprep.subr.bf16.mxu1 %v8327_v7 }
0x3737   :  { %7882 = vmatpush3.bf16.msra.mxu0 %v9316_v19  ;;  %7001 = vmatprep.mubr.msk.f32.mxu0 %vm8328_vm1, %v8326_v6 }
0x3738   :  { %7883 = vmatprep.subr.bf16.mxu0 %v8327_v7 }
0x373b   :  { %7885 = vmatpush3.bf16.msra.mxu0 %v9322_v20 }
0x373c   :  { %7886 = vmatprep.subr.bf16.mxu0 %v8327_v7 }
0x373f   :  { %7888 = vmatpush3.bf16.msra.mxu0 %v9332_v29 }
0x3740   :  { %7889 = vmatprep.subr.bf16.mxu0 %v8327_v7 }
0x3743   :  { %7891 = vmatpush3.bf16.msra.mxu0 %v9343_v40 }
0x3744   :  { %7892 = vmatprep.subr.bf16.mxu0 %v8327_v7 }
0x3747   :  { %7894 = vmatpush3.bf16.msra.mxu0 %v9353_v43 }
0x3748   :  { %7895 = vmatprep.subr.bf16.mxu0 %v8327_v7 }
0x374b   :  { %7897 = vmatpush3.bf16.msra.mxu0 %v9363_v63 }
0x374c   :  { %7898 = vmatprep.subr.bf16.mxu0 %v8327_v7 }
0x374f   :  { %7900 = vmatpush3.bf16.msra.mxu0 %v9374_v48 }
0x3750   :  { %7901 = vmatprep.subr.bf16.mxu0 %v8327_v7 }
0x3753   :  { %7903 = vmatpush3.bf16.msra.mxu0 %v9383_v37 }
0x3754   :  { %7928 = vmatprep.subr.bf16.mxu0 %v8327_v7 }
0x3807   :  { %v3961_v9 = vpop.f32.mrb[30].mxu1 }
0x3808   :  { %v4071_v55 = vpop.f32.mrb[36].mxu0  ;;  %v3962_v46 = vadd.f32 %v9419_v0, %v3961_v9  ;;  %v6891_v25 = vpop.f32.mrb[31].mxu1 }
0x3809   :  { %v4082_v57 = vrot.slane %v4071_v55, %v8521_v42  ;;  %v6926_v34 = vpop.f32.mrb[37].mxu0 }
0x380a   :  { %v3972_v36 = vrot.slane %v3962_v46, %v8521_v42  ;;  %v3999_v17 = vrot.slane %v3962_v46, 1  ;;  %v4002_v58 = vsel %vm3998_vm5, %v3994_v39, %v3962_v46 }
0x380b   :  { %v4083_v14 = vcombine.high %v4082_v57, %v4082_v57  ;;  %v4090_v0 = vrot.slane %v4082_v57, %v8521_v42 }
0x380c   :  { %v3973_v44 = vcombine.high %v3972_v36, %v3972_v36  ;;  %v3980_v47 = vrot.slane %v3972_v36, %v8521_v42  ;;  %v4003_v5 = vsel %vm3998_vm5, %v3995_v32, %v3999_v17 }
0x380d   :  { %v4097_v49 = vrot.slane %v4083_v14, %v8521_v42  ;;  %v4173_v51 = vrot.slane %v4003_v5, 7  ;;  %v4101_v54 = vrot.slane %v4090_v0, %v8524_v45  ;;  %v9719_v5 = vld [vmem:[%s10001_s1 + $0x8] sm:$0xff] }
0x380e   :  { %v3987_v11 = vrot.slane %v3973_v44, %v8521_v42  ;;  %3990 = vst.msk [vmem:[%s10013_s13 + $0x2] sm:$0x1] %vm3079_vm14, %v3980_v47 }
0x380f   :  { %v4105_v4 = vrot.slane %v4097_v49, %v8524_v45  ;;  %v4108_v1 = vadd.f32 %v4101_v54, %v8530_v50  ;;  %v4174_v56 = vsel %vm357_vm2, %v4173_v51, %v4002_v58  ;;  %v9725_v51 = vld [vmem:[%s10001_s1] sm:$0xff]  ;;  %s5409_s1 = sld [smem:[#allocation4 + $0x3]] }
0x3810   :  { %3991 = vst.msk [vmem:[%s10013_s13 + $0xa] sm:$0x1] %vm3079_vm14, %v3987_v11  ;;  %6932 = vmatmul.mubr.msk.f32.vlgmr.msra.gmra.mrb[32].mxu1 %vm381_vm7, %v4174_v56 }
0x3811   :  { %v4109_v28 = vadd.f32 %v4105_v4, %v8534_v53  ;;  %8244 = vtanh.f32 %v4108_v1  ;;  %7858 = vmatpush3.bf16.msra.mxu1 %v8566_v23  ;;  %6966 = vmatprep.mubr.msk.f32.mxu1 %vm8328_vm1, %v8326_v6 }
0x3812   :  { %7859 = vmatprep.subr.bf16.mxu1 %v8327_v7 }
0x3813   :  { %8246 = vtanh.f32 %v4109_v28 }
0x3815   :  { %7861 = vmatpush3.bf16.msra.mxu1 %v8572_v26  ;;  %p4448_p8 = scmp.gt.s32.totalorder %s5409_s1, 0 }
0x3816   :  { %7862 = vmatprep.subr.bf16.mxu1 %v8327_v7 }
0x3817   :  { %s4451_s25 = scalar_select %p4448_p8, 1, 0 }
0x3819   :  { %7864 = vmatpush3.bf16.msra.mxu1 %v8582_v31 }
0x381a   :  { %7865 = vmatprep.subr.bf16.mxu1 %v8327_v7 }
0x381b   :  { %v8245_v60 = vpop.eup %8244 }
0x381c   :  { %v4112_v9 = vmul.f32 %v9459_v3, %v8245_v60 }
0x381d   :  { %v8247_v22 = vpop.eup %8246  ;;  %7867 = vmatpush3.bf16.msra.mxu1 %v8592_v35 }
0x381e   :  { %v4113_v55 = vmul.f32 %v9459_v3, %v8247_v22  ;;  %v4114_v46 = vsel %vm108_vm0, %v4112_v9, 0.0  ;;  %7868 = vmatprep.subr.bf16.mxu1 %v8327_v7 }
0x381f   :  { %4115 = vadd.xlane.f32.xlu0 %v4114_v46 }
0x3820   :  { %v4117_v16 = vsel %vm108_vm0, %v4113_v55, 0.0 }
0x3821   :  { %4118 = vadd.xlane.f32.xlu1 %v4117_v16  ;;  %7870 = vmatpush3.bf16.msra.mxu1 %v8602_v38 }
0x3822   :  { %7871 = vmatprep.subr.bf16.mxu1 %v8327_v7 }
0x3825   :  { %7873 = vmatpush3.bf16.msra.mxu1 %v8612_v41 }
0x3826   :  { %7874 = vmatprep.subr.bf16.mxu1 %v8327_v7 }
0x3829   :  { %7876 = vmatpush3.bf16.msra.mxu1 %v8627_v61 }
0x382a   :  { %7877 = vmatprep.subr.bf16.mxu1 %v8327_v7 }
0x382d   :  { %7879 = vmatpush3.bf16.msra.mxu1 %v8649_v13 }
0x382e   :  { %7904 = vmatprep.subr.bf16.mxu1 %v8327_v7 }
0x38ac   :  { %v4116_v3 = vpop.xlane.xlu0 %4115 }
0x38ad   :  { %v4120_v57 = vmul.f32 1.442695, %v4116_v3 }
0x38ae   :  { %v4119_v25 = vpop.xlane.xlu1 %4118 }
0x38af   :  { %v4122_v34 = vmul.f32 1.442695, %v4119_v25  ;;  %8248 = vpow2.f32 %v4120_v57 }
0x38b1   :  { %8250 = vpow2.f32 %v4122_v34 }
0x38b9   :  { %v8249_v32 = vpop.eup %8248 }
0x38ba   :  { %v4145_v17 = vrot.slane %v8249_v32, %v8551_v8  ;;  %v4124_v54 = vmul.f32 %v9725_v51, %v8249_v32 }
0x38bb   :  { %v8251_v36 = vpop.eup %8250 }
0x38bc   :  { %v4149_v14 = vrot.slane %v8251_v36, %v8551_v8  ;;  %v4125_v49 = vmul.f32 %v9719_v5, %v8251_v36  ;;  %v4126_v58 = vsel %vm108_vm0, %v4124_v54, 0.0 }
0x38bd   :  { %v4127_v1 = vrot.slane %v4126_v58, 4 }
0x38be   :  { %v4150_v39 = vsel %vm357_vm2, %v4149_v14, %v4145_v17  ;;  %v4133_v11 = vsel %vm108_vm0, %v4125_v49, 0.0 }
0x38bf   :  { %v4152_v0 = vsel %vm360_vm3, %v4150_v39, 0.0  ;;  %v4134_v4 = vrot.slane %v4133_v11, 4  ;;  %v4128_v28 = vadd.f32 %v4127_v1, %v4126_v58 }
0x38c0   :  { %4153 = vadd.xlane.f32.xlu0 %v4152_v0 }
0x38c1   :  { %v4135_v56 = vadd.f32 %v4134_v4, %v4133_v11  ;;  %v4129_v9 = vrot.slane %v4128_v28, 2 }
0x38c3   :  { %v4136_v22 = vrot.slane %v4135_v56, 2  ;;  %v4130_v46 = vadd.f32 %v4129_v9, %v4128_v28 }
0x38c5   :  { %v4137_v55 = vadd.f32 %v4136_v22, %v4135_v56  ;;  %v4131_v3 = vrot.slane %v4130_v46, 1 }
0x38c7   :  { %v4138_v16 = vrot.slane %v4137_v55, 1  ;;  %v4132_v32 = vadd.f32 %v4131_v3, %v4130_v46 }
0x38c9   :  { %v4139_v25 = vadd.f32 %v4138_v16, %v4137_v55 }
0x38e3   :  { %v4243_v44 = vpop.f32.mrb[32].mxu1 }
0x38e4   :  { %v6933_v47 = vpop.f32.mrb[33].mxu1 }
0x394d   :  { %v4154_v60 = vpop.xlane.xlu0 %4153 }
0x394e   :  { %8252 = vrcp.f32 %v4154_v60 }
0x3958   :  { %v8253_v57 = vpop.eup %8252 }
0x3959   :  { %v4157_v34 = vrot.slane %v8253_v57, 1  ;;  %v4160_v17 = vmul.f32 %v8253_v57, %v4132_v32 }
0x395b   :  { %v4161_v36 = vmul.f32 %v4157_v34, %v4139_v25 }
0x395d   :  { %v4164_v14 = vrot.slane %v4161_v36, 7 }
0x395f   :  { %v4165_v39 = vsel %vm357_vm2, %v4164_v14, %v4160_v17  ;;  %v9792_v17 = vld [vmem:[%s10012_s12] ss:$0 sm:$0xff] }
0x3960   :  { %4166 = vrot.lane.b32.xlu0 %v4165_v39, %s8331_s0  ;;  %v4452_v39 = vstv %s4451_s25 }
0x3961   :  { %vm4453_vm9 = vcmp.eq.s32.totalorder %v4452_v39, 1 }
0x39d2   :  { %v4167_v0 = vpop.permute.xlu0 %4166 }
0x39d3   :  { %4169 = vst.msk [vmem:[#allocation2] sm:$0x3] %vm378_vm8, %v4167_v0 }
0x39da   :  { %v4170_v47 = vld [vmem:[#allocation2] sm:$0x3] }
0x39db   :  { %6967 = vmatmul.mubr.f32.vlgmr.msra.gmra.mrb[34].mxu1 %v4170_v47 }
0x39dc   :  { %7906 = vmatpush3.bf16.msra.mxu1 %v8440_v12  ;;  %7036 = vmatprep.mubr.msk.f32.mxu1 %vm8328_vm1, %v8326_v6 }
0x39dd   :  { %7907 = vmatprep.subr.bf16.mxu1 %v8327_v7 }
0x39e0   :  { %7909 = vmatpush3.bf16.msra.mxu1 %v8452_v15 }
0x39e1   :  { %7910 = vmatprep.subr.bf16.mxu1 %v8327_v7 }
0x39e4   :  { %7912 = vmatpush3.bf16.msra.mxu1 %v8464_v18 }
0x39e5   :  { %7913 = vmatprep.subr.bf16.mxu1 %v8327_v7 }
0x39e8   :  { %7915 = vmatpush3.bf16.msra.mxu1 %v8474_v21 }
0x39e9   :  { %7916 = vmatprep.subr.bf16.mxu1 %v8327_v7 }
0x39ec   :  { %7918 = vmatpush3.bf16.msra.mxu1 %v8484_v24 }
0x39ed   :  { %7919 = vmatprep.subr.bf16.mxu1 %v8327_v7 }
0x39f0   :  { %7921 = vmatpush3.bf16.msra.mxu1 %v8494_v27 }
0x39f1   :  { %7922 = vmatprep.subr.bf16.mxu1 %v8327_v7 }
0x39f4   :  { %7924 = vmatpush3.bf16.msra.mxu1 %v8504_v30 }
0x39f5   :  { %7925 = vmatprep.subr.bf16.mxu1 %v8327_v7 }
0x39f8   :  { %7927 = vmatpush3.bf16.msra.mxu1 %v8514_v33 }
0x39f9   :  { %7956 = vmatprep.subr.bf16.mxu1 %v8327_v7 }
0x3aae   :  { %v4313_v49 = vpop.f32.mrb[34].mxu1 }
0x3aaf   :  { %v4314_v54 = vadd.f32 %v4313_v49, %v4243_v44  ;;  %v6968_v11 = vpop.f32.mrb[35].mxu1 }
0x3ab1   :  { %v4317_v58 = vadd.f32 %v9507_v59, %v4314_v54  ;;  %v4450_v54 = vld [vmem:[%s10003_s3 + $0xb] sm:$0x1] }
0x3ab3   :  { %v5408_v4 = vmul.f32 -1.442695, %v4317_v58 }
0x3ab5   :  { %8254 = vpow2.f32 %v5408_v4 }
0x3ab6   :  { %8256 = vtanh.f32 %v4317_v58 }
0x3abf   :  { %v8255_v1 = vpop.eup %8254 }
0x3ac0   :  { %v4322_v56 = vadd.f32 1.0, %v8255_v1  ;;  %v8257_v28 = vpop.eup %8256  ;;  %v4449_v1 = vld [vmem:[%s10003_s3 + $0x3] sm:$0x1] }
0x3ac2   :  { %8258 = vrcp.f32 %v4322_v56 }
0x3acc   :  { %v8259_v60 = vpop.eup %8258 }
0x3acd   :  { %v4325_v22 = vsel %vm8696_vm11, %v8257_v28, %v8259_v60 }
0x3ace   :  { %4328 = vrot.lane.b32.xlu1 %v4325_v22, %s8331_s0  ;;  %v4326_v44 = vmul.f32 %v4325_v22, %v9631_v62 }
0x3b40   :  { %v4329_v9 = vpop.permute.xlu1 %4328 }
0x3b41   :  { %v4331_v55 = vmul.f32 %v4329_v9, %v4325_v22 }
0x3b43   :  { %4333 = vrot.lane.b32.xlu1 %v4331_v55, %s8332_s18 }
0x3bb5   :  { %v4334_v59 = vpop.permute.xlu1 %4333 }
0x3bb6   :  { %v9757_v46 = vadd.f32 %v4334_v59, %v4326_v44 }
0x3bb8   :  { %8260 = vtanh.f32 %v9757_v46 }
0x3bc2   :  { %v8261_v16 = vpop.eup %8260 }
0x3bc3   :  { %4339 = vrot.lane.b32.xlu0 %v8261_v16, %s8331_s0 }
0x3c35   :  { %v4340_v3 = vpop.permute.xlu0 %4339 }
0x3c36   :  { %v4342_v57 = vmul.f32 %v4340_v3, %v4325_v22 }
0x3c38   :  { %4344 = vrot.lane.b32.xlu1 %v4342_v57, %s8332_s18 }
0x3caa   :  { %v4345_v25 = vpop.permute.xlu1 %4344 }
0x3cab   :  { %4347 = vst.msk [vmem:[#allocation2] sm:$0x3] %vm565_vm12, %v4345_v25 }
0x3cac   :  { %4348 = vst.msk [vmem:[#allocation2] sm:$0x3] %vm567_vm13, %v9757_v46 }
0x3cb3   :  { %v4349_v34 = vld [vmem:[#allocation2] sm:$0x3] }
0x3cb4   :  { %v4459_v62 = vld [vmem:[#allocation2] sm:$0x3]  ;;  %7002 = vmatmul.mubr.f32.vlgmr.msra.gmra.mrb[38].mxu0 %v4349_v34 }
0x3cb5   :  { %7037 = vmatmul.mubr.f32.vlgmr.msra.gmra.mrb[36].mxu1 %v4459_v62  ;;  %7931 = vmatpush3.bf16.msk.msra.mxu0 %vm8645_vm6, %v8636_v2 }
0x3cb6   :  { %7043 = vmatprep.mubr.msk.f32.mxu0 %vm8328_vm1, %v8326_v6  ;;  %7932 = vmatprep.subr.bf16.mxu0 %v8327_v7 }
0x3cb7   :  { %7958 = vmatpush3.bf16.msra.mxu1 %v9316_v19  ;;  %7113 = vmatprep.mubr.msk.f32.mxu1 %vm8328_vm1, %v8326_v6 }
0x3cb8   :  { %7959 = vmatprep.subr.bf16.mxu1 %v8327_v7 }
0x3cbb   :  { %7961 = vmatpush3.bf16.msra.mxu1 %v9322_v20 }
0x3cbc   :  { %7962 = vmatprep.subr.bf16.mxu1 %v8327_v7 }
0x3cbf   :  { %7964 = vmatpush3.bf16.msra.mxu1 %v9332_v29 }
0x3cc0   :  { %7965 = vmatprep.subr.bf16.mxu1 %v8327_v7 }
0x3cc3   :  { %7967 = vmatpush3.bf16.msra.mxu1 %v9343_v40 }
0x3cc4   :  { %7968 = vmatprep.subr.bf16.mxu1 %v8327_v7 }
0x3cc7   :  { %7970 = vmatpush3.bf16.msra.mxu1 %v9353_v43 }
0x3cc8   :  { %7971 = vmatprep.subr.bf16.mxu1 %v8327_v7 }
0x3ccb   :  { %7973 = vmatpush3.bf16.msra.mxu1 %v9363_v63 }
0x3ccc   :  { %7974 = vmatprep.subr.bf16.mxu1 %v8327_v7 }
0x3ccf   :  { %7976 = vmatpush3.bf16.msra.mxu1 %v9374_v48 }
0x3cd0   :  { %7977 = vmatprep.subr.bf16.mxu1 %v8327_v7 }
0x3cd3   :  { %7979 = vmatpush3.bf16.msra.mxu1 %v9383_v37 }
0x3cd4   :  { %8004 = vmatprep.subr.bf16.mxu1 %v8327_v7 }
0x3d87   :  { %v4416_v32 = vpop.f32.mrb[38].mxu0 }
0x3d88   :  { %v4526_v36 = vpop.f32.mrb[36].mxu1  ;;  %v4417_v14 = vadd.f32 %v9792_v17, %v4416_v32  ;;  %v7003_v47 = vpop.f32.mrb[39].mxu0 }
0x3d89   :  { %v4537_v0 = vrot.slane %v4526_v36, %v8521_v42  ;;  %v7038_v49 = vpop.f32.mrb[37].mxu1  ;;  %v9832_v36 = vld [vmem:[%s10006_s6] ss:$0 sm:$0xff] }
0x3d8a   :  { %v4427_v11 = vrot.slane %v4417_v14, %v8521_v42  ;;  %v4454_v58 = vrot.slane %v4417_v14, 1  ;;  %v4457_v16 = vsel %vm4453_vm9, %v4449_v1, %v4417_v14 }
0x3d8b   :  { %v4538_v4 = vcombine.high %v4537_v0, %v4537_v0  ;;  %v4545_v56 = vrot.slane %v4537_v0, %v8521_v42 }
0x3d8c   :  { %v4428_v28 = vcombine.high %v4427_v11, %v4427_v11  ;;  %v4435_v60 = vrot.slane %v4427_v11, %v8521_v42  ;;  %v4458_v22 = vsel %vm4453_vm9, %v4450_v54, %v4454_v58 }
0x3d8d   :  { %v4552_v9 = vrot.slane %v4538_v4, %v8521_v42  ;;  %v4628_v55 = vrot.slane %v4458_v22, 7  ;;  %v4556_v44 = vrot.slane %v4545_v56, %v8524_v45 }
0x3d8e   :  { %v4442_v59 = vrot.slane %v4428_v28, %v8521_v42  ;;  %4445 = vst.msk [vmem:[%s10013_s13 + $0x3] sm:$0x1] %vm3079_vm14, %v4435_v60 }
0x3d8f   :  { %v4560_v3 = vrot.slane %v4552_v9, %v8524_v45  ;;  %v4563_v57 = vadd.f32 %v4556_v44, %v8530_v50  ;;  %v4629_v25 = vsel %vm357_vm2, %v4628_v55, %v4457_v16 }
0x3d90   :  { %4446 = vst.msk [vmem:[%s10013_s13 + $0xb] sm:$0x1] %vm3079_vm14, %v4442_v59  ;;  %7044 = vmatmul.mubr.msk.f32.vlgmr.msra.gmra.mrb[40].mxu0 %vm381_vm7, %v4629_v25 }
0x3d91   :  { %v4564_v34 = vadd.f32 %v4560_v3, %v8534_v53  ;;  %8262 = vtanh.f32 %v4563_v57  ;;  %7934 = vmatpush3.bf16.msra.mxu0 %v8566_v23  ;;  %7078 = vmatprep.mubr.msk.f32.mxu0 %vm8328_vm1, %v8326_v6 }
0x3d92   :  { %7935 = vmatprep.subr.bf16.mxu0 %v8327_v7 }
0x3d93   :  { %8264 = vtanh.f32 %v4564_v34 }
0x3d95   :  { %7937 = vmatpush3.bf16.msra.mxu0 %v8572_v26 }
0x3d96   :  { %7938 = vmatprep.subr.bf16.mxu0 %v8327_v7 }
0x3d99   :  { %7940 = vmatpush3.bf16.msra.mxu0 %v8582_v31 }
0x3d9a   :  { %7941 = vmatprep.subr.bf16.mxu0 %v8327_v7 }
0x3d9b   :  { %v8263_v62 = vpop.eup %8262 }
0x3d9c   :  { %v4567_v14 = vmul.f32 %v9832_v36, %v8263_v62 }
0x3d9d   :  { %v8265_v32 = vpop.eup %8264  ;;  %7943 = vmatpush3.bf16.msra.mxu0 %v8592_v35 }
0x3d9e   :  { %v4568_v39 = vmul.f32 %v9832_v36, %v8265_v32  ;;  %v4569_v0 = vsel %vm108_vm0, %v4567_v14, 0.0  ;;  %7944 = vmatprep.subr.bf16.mxu0 %v8327_v7 }
0x3d9f   :  { %4570 = vadd.xlane.f32.xlu0 %v4569_v0 }
0x3da0   :  { %v4572_v47 = vsel %vm108_vm0, %v4568_v39, 0.0 }
0x3da1   :  { %4573 = vadd.xlane.f32.xlu1 %v4572_v47  ;;  %7946 = vmatpush3.bf16.msra.mxu0 %v8602_v38 }
0x3da2   :  { %7947 = vmatprep.subr.bf16.mxu0 %v8327_v7 }
0x3da5   :  { %7949 = vmatpush3.bf16.msra.mxu0 %v8612_v41 }
0x3da6   :  { %7950 = vmatprep.subr.bf16.mxu0 %v8327_v7 }
0x3da9   :  { %7952 = vmatpush3.bf16.msra.mxu0 %v8627_v61 }
0x3daa   :  { %7953 = vmatprep.subr.bf16.mxu0 %v8327_v7 }
0x3dad   :  { %7955 = vmatpush3.bf16.msra.mxu0 %v8649_v13 }
0x3dae   :  { %7980 = vmatprep.subr.bf16.mxu0 %v8327_v7 }
0x3e2c   :  { %v4571_v49 = vpop.xlane.xlu0 %4570 }
0x3e2d   :  { %v4575_v54 = vmul.f32 1.442695, %v4571_v49 }
0x3e2e   :  { %v4574_v11 = vpop.xlane.xlu1 %4573 }
0x3e2f   :  { %v4577_v58 = vmul.f32 1.442695, %v4574_v11  ;;  %8266 = vpow2.f32 %v4575_v54 }
0x3e31   :  { %8268 = vpow2.f32 %v4577_v58 }
0x3e39   :  { %v8267_v4 = vpop.eup %8266 }
0x3e3a   :  { %v4600_v56 = vrot.slane %v8267_v4, %v8551_v8  ;;  %v4579_v59 = vmul.f32 %v9725_v51, %v8267_v4 }
0x3e3b   :  { %v8269_v1 = vpop.eup %8268 }
0x3e3c   :  { %v4604_v28 = vrot.slane %v8269_v1, %v8551_v8  ;;  %v4580_v44 = vmul.f32 %v9719_v5, %v8269_v1  ;;  %v4581_v3 = vsel %vm108_vm0, %v4579_v59, 0.0 }
0x3e3d   :  { %v4582_v25 = vrot.slane %v4581_v3, 4 }
0x3e3e   :  { %v4605_v60 = vsel %vm357_vm2, %v4604_v28, %v4600_v56  ;;  %v4588_v16 = vsel %vm108_vm0, %v4580_v44, 0.0 }
0x3e3f   :  { %v4607_v22 = vsel %vm360_vm3, %v4605_v60, 0.0  ;;  %v4589_v57 = vrot.slane %v4588_v16, 4  ;;  %v4583_v62 = vadd.f32 %v4582_v25, %v4581_v3 }
0x3e40   :  { %4608 = vadd.xlane.f32.xlu0 %v4607_v22 }
0x3e41   :  { %v4590_v34 = vadd.f32 %v4589_v57, %v4588_v16  ;;  %v4584_v39 = vrot.slane %v4583_v62, 2 }
0x3e43   :  { %v4591_v14 = vrot.slane %v4590_v34, 2  ;;  %v4585_v47 = vadd.f32 %v4584_v39, %v4583_v62 }
0x3e45   :  { %v4592_v0 = vadd.f32 %v4591_v14, %v4590_v34  ;;  %v4586_v54 = vrot.slane %v4585_v47, 1 }
0x3e47   :  { %v4593_v49 = vrot.slane %v4592_v0, 1  ;;  %v4587_v4 = vadd.f32 %v4586_v54, %v4585_v47  ;;  %v4904_v54 = vld [vmem:[%s10003_s3 + $0x4] sm:$0x1] }
0x3e49   :  { %v4594_v58 = vadd.f32 %v4593_v49, %v4592_v0 }
0x3e63   :  { %v4698_v9 = vpop.f32.mrb[40].mxu0 }
0x3e64   :  { %v7045_v55 = vpop.f32.mrb[41].mxu0 }
0x3ecd   :  { %v4609_v32 = vpop.xlane.xlu0 %4608 }
0x3ece   :  { %8270 = vrcp.f32 %v4609_v32 }
0x3ed8   :  { %v8271_v11 = vpop.eup %8270 }
0x3ed9   :  { %v4612_v1 = vrot.slane %v8271_v11, 1  ;;  %v4615_v28 = vmul.f32 %v8271_v11, %v4587_v4 }
0x3edb   :  { %v4616_v56 = vmul.f32 %v4612_v1, %v4594_v58 }
0x3edd   :  { %v4619_v60 = vrot.slane %v4616_v56, 7 }
0x3edf   :  { %v4620_v22 = vsel %vm357_vm2, %v4619_v60, %v4615_v28 }
0x3ee0   :  { %4621 = vrot.lane.b32.xlu0 %v4620_v22, %s8331_s0 }
0x3f52   :  { %v4622_v55 = vpop.permute.xlu0 %4621 }
0x3f53   :  { %4624 = vst.msk [vmem:[#allocation2] sm:$0x3] %vm378_vm8, %v4622_v55 }
0x3f5a   :  { %v4625_v44 = vld [vmem:[#allocation2] sm:$0x3] }
0x3f5b   :  { %7079 = vmatmul.mubr.f32.vlgmr.msra.gmra.mrb[42].mxu0 %v4625_v44 }
0x3f5c   :  { %7982 = vmatpush3.bf16.msra.mxu0 %v8440_v12  ;;  %7148 = vmatprep.mubr.msk.f32.mxu0 %vm8328_vm1, %v8326_v6 }
0x3f5d   :  { %7983 = vmatprep.subr.bf16.mxu0 %v8327_v7 }
0x3f60   :  { %7985 = vmatpush3.bf16.msra.mxu0 %v8452_v15 }
0x3f61   :  { %7986 = vmatprep.subr.bf16.mxu0 %v8327_v7 }
0x3f64   :  { %7988 = vmatpush3.bf16.msra.mxu0 %v8464_v18 }
0x3f65   :  { %7989 = vmatprep.subr.bf16.mxu0 %v8327_v7 }
0x3f68   :  { %7991 = vmatpush3.bf16.msra.mxu0 %v8474_v21  ;;  %v9880_v21 = vld [vmem:[%s10010_s10] ss:$0 sm:$0xff]  ;;  %s5413_s10 = sld [smem:[#allocation4 + $0x4]] }
0x3f69   :  { %7992 = vmatprep.subr.bf16.mxu0 %v8327_v7 }
0x3f6c   :  { %7994 = vmatpush3.bf16.msra.mxu0 %v8484_v24 }
0x3f6d   :  { %7995 = vmatprep.subr.bf16.mxu0 %v8327_v7 }
0x3f6e   :  { %p4903_p9 = scmp.gt.s32.totalorder %s5413_s10, 0 }
0x3f70   :  { %7997 = vmatpush3.bf16.msra.mxu0 %v8494_v27  ;;  %s4906_s7 = scalar_select %p4903_p9, 1, 0 }
0x3f71   :  { %7998 = vmatprep.subr.bf16.mxu0 %v8327_v7 }
0x3f74   :  { %8000 = vmatpush3.bf16.msra.mxu0 %v8504_v30 }
0x3f75   :  { %8001 = vmatprep.subr.bf16.mxu0 %v8327_v7 }
0x3f78   :  { %8003 = vmatpush3.bf16.msra.mxu0 %v8514_v33 }
0x3f79   :  { %8032 = vmatprep.subr.bf16.mxu0 %v8327_v7 }
0x402e   :  { %v4768_v12 = vpop.f32.mrb[42].mxu0 }
0x402f   :  { %v4769_v15 = vadd.f32 %v4768_v12, %v4698_v9  ;;  %v7080_v18 = vpop.f32.mrb[43].mxu0 }
0x4031   :  { %v4772_v24 = vadd.f32 %v9880_v21, %v4769_v15 }
0x4033   :  { %v5412_v27 = vmul.f32 -1.442695, %v4772_v24 }
0x4035   :  { %8272 = vpow2.f32 %v5412_v27 }
0x4036   :  { %8274 = vtanh.f32 %v4772_v24 }
0x403f   :  { %v8273_v59 = vpop.eup %8272 }
0x4040   :  { %v4777_v30 = vadd.f32 1.0, %v8273_v59  ;;  %v8275_v16 = vpop.eup %8274 }
0x4042   :  { %8276 = vrcp.f32 %v4777_v30 }
0x404c   :  { %v8277_v33 = vpop.eup %8276 }
0x404d   :  { %v4780_v3 = vsel %vm8696_vm11, %v8275_v16, %v8277_v33 }
0x404e   :  { %4783 = vrot.lane.b32.xlu1 %v4780_v3, %s8331_s0  ;;  %v4781_v25 = vmul.f32 %v4780_v3, %v9757_v46 }
0x40c0   :  { %v4784_v9 = vpop.permute.xlu1 %4783 }
0x40c1   :  { %v4786_v57 = vmul.f32 %v4784_v9, %v4780_v3 }
0x40c3   :  { %4788 = vrot.lane.b32.xlu1 %v4786_v57, %s8332_s18 }
0x4135   :  { %v4789_v34 = vpop.permute.xlu1 %4788 }
0x4136   :  { %v9888_v62 = vadd.f32 %v4789_v34, %v4781_v25 }
0x4138   :  { %8278 = vtanh.f32 %v9888_v62 }
0x4142   :  { %v8279_v32 = vpop.eup %8278 }
0x4143   :  { %4794 = vrot.lane.b32.xlu0 %v8279_v32, %s8331_s0 }
0x41b5   :  { %v4795_v14 = vpop.permute.xlu0 %4794 }
0x41b6   :  { %v4797_v39 = vmul.f32 %v4795_v14, %v4780_v3 }
0x41b8   :  { %4799 = vrot.lane.b32.xlu1 %v4797_v39, %s8332_s18 }
0x422a   :  { %v4800_v0 = vpop.permute.xlu1 %4799 }
0x422b   :  { %4802 = vst.msk [vmem:[#allocation2] sm:$0x3] %vm565_vm12, %v4800_v0 }
0x422c   :  { %4803 = vst.msk [vmem:[#allocation2] sm:$0x3] %vm567_vm13, %v9888_v62 }
0x4233   :  { %v4804_v47 = vld [vmem:[#allocation2] sm:$0x3] }
0x4234   :  { %v4914_v46 = vld [vmem:[#allocation2] sm:$0x3]  ;;  %7114 = vmatmul.mubr.f32.vlgmr.msra.gmra.mrb[38].mxu1 %v4804_v47 }
0x4235   :  { %7149 = vmatmul.mubr.f32.vlgmr.msra.gmra.mrb[44].mxu0 %v4914_v46  ;;  %8007 = vmatpush3.bf16.msk.msra.mxu1 %vm8645_vm6, %v8636_v2 }
0x4236   :  { %7155 = vmatprep.mubr.msk.f32.mxu1 %vm8328_vm1, %v8326_v6  ;;  %8008 = vmatprep.subr.bf16.mxu1 %v8327_v7 }
0x4237   :  { %8034 = vmatpush3.bf16.msra.mxu0 %v9316_v19  ;;  %7225 = vmatprep.mubr.msk.f32.mxu0 %vm8328_vm1, %v8326_v6 }
0x4238   :  { %8035 = vmatprep.subr.bf16.mxu0 %v8327_v7 }
0x423b   :  { %8037 = vmatpush3.bf16.msra.mxu0 %v9322_v20  ;;  %v4907_v20 = vstv %s4906_s7 }
0x423c   :  { %8038 = vmatprep.subr.bf16.mxu0 %v8327_v7  ;;  %vm4908_vm6 = vcmp.eq.s32.totalorder %v4907_v20, 1 }
0x423f   :  { %8040 = vmatpush3.bf16.msra.mxu0 %v9332_v29 }
0x4240   :  { %8041 = vmatprep.subr.bf16.mxu0 %v8327_v7 }
0x4243   :  { %8043 = vmatpush3.bf16.msra.mxu0 %v9343_v40 }
0x4244   :  { %8044 = vmatprep.subr.bf16.mxu0 %v8327_v7 }
0x4247   :  { %8046 = vmatpush3.bf16.msra.mxu0 %v9353_v43 }
0x4248   :  { %8047 = vmatprep.subr.bf16.mxu0 %v8327_v7 }
0x424b   :  { %8049 = vmatpush3.bf16.msra.mxu0 %v9363_v63  ;;  %v4905_v63 = vld [vmem:[%s10003_s3 + $0xc] sm:$0x1] }
0x424c   :  { %8050 = vmatprep.subr.bf16.mxu0 %v8327_v7 }
0x424f   :  { %8052 = vmatpush3.bf16.msra.mxu0 %v9374_v48 }
0x4250   :  { %8053 = vmatprep.subr.bf16.mxu0 %v8327_v7 }
0x4253   :  { %8055 = vmatpush3.bf16.msra.mxu0 %v9383_v37 }
0x4307   :  { %v4871_v2 = vpop.f32.mrb[38].mxu1 }
0x4308   :  { %v4981_v10 = vpop.f32.mrb[44].mxu0  ;;  %v4872_v19 = vadd.f32 %v9792_v17, %v4871_v2  ;;  %v7115_v40 = vpop.f32.mrb[39].mxu1 }
0x4309   :  { %v4992_v29 = vrot.slane %v4981_v10, %v8521_v42  ;;  %v7150_v43 = vpop.f32.mrb[45].mxu0 }
0x430a   :  { %v4882_v48 = vrot.slane %v4872_v19, %v8521_v42  ;;  %v4909_v49 = vrot.slane %v4872_v19, 1  ;;  %v4912_v55 = vsel %vm4908_vm6, %v4904_v54, %v4872_v19 }
0x430b   :  { %v4993_v37 = vcombine.high %v4992_v29, %v4992_v29  ;;  %v5000_v11 = vrot.slane %v4992_v29, %v8521_v42 }
0x430c   :  { %v4883_v58 = vcombine.high %v4882_v48, %v4882_v48  ;;  %v4890_v1 = vrot.slane %v4882_v48, %v8521_v42  ;;  %v4913_v4 = vsel %vm4908_vm6, %v4905_v63, %v4909_v49 }
0x430d   :  { %v5007_v56 = vrot.slane %v4993_v37, %v8521_v42  ;;  %v5083_v28 = vrot.slane %v4913_v4, 7  ;;  %v5011_v60 = vrot.slane %v5000_v11, %v8524_v45 }
0x430e   :  { %v4897_v22 = vrot.slane %v4883_v58, %v8521_v42  ;;  %4900 = vst.msk [vmem:[%s10013_s13 + $0x4] sm:$0x1] %vm3079_vm14, %v4890_v1 }
0x430f   :  { %v5015_v44 = vrot.slane %v5007_v56, %v8524_v45  ;;  %v5018_v12 = vadd.f32 %v5011_v60, %v8530_v50  ;;  %v5084_v15 = vsel %vm357_vm2, %v5083_v28, %v4912_v55 }
0x4310   :  { %4901 = vst.msk [vmem:[%s10013_s13 + $0xc] sm:$0x1] %vm3079_vm14, %v4897_v22  ;;  %7156 = vmatmul.mubr.msk.f32.vlgmr.msra.gmra.mrb[40].mxu1 %vm381_vm7, %v5084_v15 }
0x4311   :  { %v5019_v18 = vadd.f32 %v5015_v44, %v8534_v53  ;;  %8280 = vtanh.f32 %v5018_v12  ;;  %8010 = vmatpush3.bf16.msra.mxu1 %v8566_v23  ;;  %7190 = vmatprep.mubr.msk.f32.mxu1 %vm8328_vm1, %v8326_v6 }
0x4312   :  { %8011 = vmatprep.subr.bf16.mxu1 %v8327_v7 }
0x4313   :  { %8282 = vtanh.f32 %v5019_v18 }
0x4315   :  { %8013 = vmatpush3.bf16.msra.mxu1 %v8572_v26 }
0x4316   :  { %8014 = vmatprep.subr.bf16.mxu1 %v8327_v7 }
0x4319   :  { %8016 = vmatpush3.bf16.msra.mxu1 %v8582_v31 }
0x431a   :  { %8017 = vmatprep.subr.bf16.mxu1 %v8327_v7 }
0x431b   :  { %v8281_v45 = vpop.eup %8280 }
0x431c   :  { %v5022_v53 = vmul.f32 %v9832_v36, %v8281_v45 }
0x431d   :  { %v8283_v50 = vpop.eup %8282  ;;  %8019 = vmatpush3.bf16.msra.mxu1 %v8592_v35 }
0x431e   :  { %v5023_v23 = vmul.f32 %v9832_v36, %v8283_v50  ;;  %v5024_v6 = vsel %vm108_vm0, %v5022_v53, 0.0  ;;  %8020 = vmatprep.subr.bf16.mxu1 %v8327_v7 }
0x431f   :  { %5025 = vadd.xlane.f32.xlu0 %v5024_v6 }
0x4320   :  { %v5027_v26 = vsel %vm108_vm0, %v5023_v23, 0.0 }
0x4321   :  { %5028 = vadd.xlane.f32.xlu1 %v5027_v26  ;;  %8022 = vmatpush3.bf16.msra.mxu1 %v8602_v38 }
0x4322   :  { %8023 = vmatprep.subr.bf16.mxu1 %v8327_v7 }
0x4325   :  { %8025 = vmatpush3.bf16.msra.mxu1 %v8612_v41 }
0x4326   :  { %8026 = vmatprep.subr.bf16.mxu1 %v8327_v7 }
0x4329   :  { %8028 = vmatpush3.bf16.msra.mxu1 %v8627_v61 }
0x432a   :  { %8029 = vmatprep.subr.bf16.mxu1 %v8327_v7 }
0x432d   :  { %8031 = vmatpush3.bf16.msra.mxu1 %v8649_v13 }
0x43ac   :  { %v5026_v31 = vpop.xlane.xlu0 %5025 }
0x43ad   :  { %v5030_v35 = vmul.f32 1.442695, %v5026_v31 }
0x43ae   :  { %v5029_v36 = vpop.xlane.xlu1 %5028 }
0x43af   :  { %v5032_v24 = vmul.f32 1.442695, %v5029_v36  ;;  %8284 = vpow2.f32 %v5030_v35 }
0x43b1   :  { %8286 = vpow2.f32 %v5032_v24 }
0x43b9   :  { %v8285_v27 = vpop.eup %8284 }
0x43ba   :  { %v5055_v59 = vrot.slane %v8285_v27, %v8551_v8  ;;  %v5034_v33 = vmul.f32 %v9725_v51, %v8285_v27 }
0x43bb   :  { %v8287_v38 = vpop.eup %8286 }
0x43bc   :  { %v5059_v41 = vrot.slane %v8287_v38, %v8551_v8  ;;  %v5035_v13 = vmul.f32 %v9719_v5, %v8287_v38  ;;  %v5036_v9 = vsel %vm108_vm0, %v5034_v33, 0.0 }
0x43bd   :  { %v5037_v25 = vrot.slane %v5036_v9, 4 }
0x43be   :  { %v5060_v30 = vsel %vm357_vm2, %v5059_v41, %v5055_v59  ;;  %v5043_v3 = vsel %vm108_vm0, %v5035_v13, 0.0 }
0x43bf   :  { %v5062_v61 = vsel %vm360_vm3, %v5060_v30, 0.0  ;;  %v5044_v57 = vrot.slane %v5043_v3, 4  ;;  %v5038_v32 = vadd.f32 %v5037_v25, %v5036_v9 }
0x43c0   :  { %5063 = vadd.xlane.f32.xlu0 %v5062_v61 }
0x43c1   :  { %v5045_v34 = vadd.f32 %v5044_v57, %v5043_v3  ;;  %v5039_v39 = vrot.slane %v5038_v32, 2 }
0x43c3   :  { %v5046_v14 = vrot.slane %v5045_v34, 2  ;;  %v5040_v47 = vadd.f32 %v5039_v39, %v5038_v32 }
0x43c5   :  { %v5047_v0 = vadd.f32 %v5046_v14, %v5045_v34  ;;  %v5041_v2 = vrot.slane %v5040_v47, 1 }
0x43c7   :  { %v5048_v46 = vrot.slane %v5047_v0, 1  ;;  %v5042_v51 = vadd.f32 %v5041_v2, %v5040_v47 }
0x43c9   :  { %v5049_v5 = vadd.f32 %v5048_v46, %v5047_v0 }
0x43e3   :  { %v5153_v7 = vpop.f32.mrb[40].mxu1 }
0x43e4   :  { %v7157_v16 = vpop.f32.mrb[41].mxu1 }
0x444d   :  { %v5064_v8 = vpop.xlane.xlu0 %5063 }
0x444e   :  { %8288 = vrcp.f32 %v5064_v8 }
0x4458   :  { %v8289_v10 = vpop.eup %8288 }
0x4459   :  { %v5067_v19 = vrot.slane %v8289_v10, 1  ;;  %v5070_v29 = vmul.f32 %v8289_v10, %v5042_v51 }
0x445b   :  { %v5071_v20 = vmul.f32 %v5067_v19, %v5049_v5 }
0x445d   :  { %v5074_v40 = vrot.slane %v5071_v20, 7 }
0x445f   :  { %v5075_v43 = vsel %vm357_vm2, %v5074_v40, %v5070_v29 }
0x4460   :  { %5076 = vrot.lane.b32.xlu0 %v5075_v43, %s8331_s0 }
0x44d2   :  { %v5077_v63 = vpop.permute.xlu0 %5076 }
0x44d3   :  { %5079 = vst.msk [vmem:[#allocation2] sm:$0x3] %vm378_vm8, %v5077_v63 }
0x44da   :  { %v5080_v48 = vld [vmem:[#allocation2] sm:$0x3] }
0x44db   :  { %7191 = vmatmul.mubr.f32.vlgmr.msra.gmra.mrb[42].mxu1 %v5080_v48 }
0x45ae   :  { %v5223_v49 = vpop.f32.mrb[42].mxu1 }
0x45af   :  { %v5224_v37 = vadd.f32 %v5223_v49, %v5153_v7  ;;  %v7192_v54 = vpop.f32.mrb[43].mxu1 }
0x45b1   :  { %v5227_v11 = vadd.f32 %v9880_v21, %v5224_v37 }
0x45b3   :  { %v5416_v58 = vmul.f32 -1.442695, %v5227_v11 }
0x45b5   :  { %8290 = vpow2.f32 %v5416_v58 }
0x45b6   :  { %8292 = vtanh.f32 %v5227_v11 }
0x45bf   :  { %v8291_v1 = vpop.eup %8290 }
0x45c0   :  { %v5232_v4 = vadd.f32 1.0, %v8291_v1  ;;  %v8293_v56 = vpop.eup %8292 }
0x45c2   :  { %8294 = vrcp.f32 %v5232_v4 }
0x45cc   :  { %v8295_v28 = vpop.eup %8294 }
0x45cd   :  { %v5235_v60 = vsel %vm8696_vm11, %v8293_v56, %v8295_v28 }
0x45ce   :  { %5238 = vrot.lane.b32.xlu1 %v5235_v60, %s8331_s0  ;;  %v5236_v44 = vmul.f32 %v5235_v60, %v9888_v62 }
0x4640   :  { %v5239_v22 = vpop.permute.xlu1 %5238 }
0x4641   :  { %v5241_v55 = vmul.f32 %v5239_v22, %v5235_v60 }
0x4643   :  { %5243 = vrot.lane.b32.xlu1 %v5241_v55, %s8332_s18 }
0x46b5   :  { %v5244_v21 = vpop.permute.xlu1 %5243 }
0x46b6   :  { %v5246_v12 = vadd.f32 %v5244_v21, %v5236_v44 }
0x46b8   :  { %8296 = vtanh.f32 %v5246_v12 }
0x46c2   :  { %v8297_v15 = vpop.eup %8296 }
0x46c3   :  { %5249 = vrot.lane.b32.xlu0 %v8297_v15, %s8331_s0 }
0x4735   :  { %v5250_v18 = vpop.permute.xlu0 %5249 }
0x4736   :  { %v5252_v45 = vmul.f32 %v5250_v18, %v5235_v60 }
0x4738   :  { %5254 = vrot.lane.b32.xlu1 %v5252_v45, %s8332_s18 }
0x47aa   :  { %v5255_v52 = vpop.permute.xlu1 %5254 }
0x47ab   :  { %5257 = vst.msk [vmem:[#allocation2] sm:$0x3] %vm565_vm12, %v5255_v52 }
0x47ac   :  { %5258 = vst.msk [vmem:[#allocation2] sm:$0x3] %vm567_vm13, %v5246_v12 }
0x47b3   :  { %v5259_v50 = vld [vmem:[#allocation2] sm:$0x3] }
0x47b4   :  { %7226 = vmatmul.mubr.f32.vlgmr.msra.gmra.mrb[46].mxu0 %v5259_v50 }
0x4887   :  { %v5326_v53 = vpop.f32.mrb[46].mxu0 }
0x4888   :  { %v5327_v62 = vadd.f32 %v9792_v17, %v5326_v53  ;;  %v7227_v23 = vpop.f32.mrb[47].mxu0 }
0x488a   :  { %v5337_v6 = vrot.slane %v5327_v62, %v8521_v42 }
0x488c   :  { %v5338_v26 = vcombine.high %v5337_v6, %v5337_v6  ;;  %v5345_v31 = vrot.slane %v5337_v6, %v8521_v42 }
0x488e   :  { %v5352_v35 = vrot.slane %v5338_v26, %v8521_v42  ;;  %5355 = vst.msk [vmem:[%s10013_s13 + $0x5] sm:$0x1] %vm3079_vm14, %v5345_v31 }
0x4890   :  { %5356 = vst.msk [vmem:[%s10013_s13 + $0xd] sm:$0x1] %vm3079_vm14, %v5352_v35 }

</bundles_post_ra>
